<compile_context>
chip_gen: v7x
topology: tpu7x:2x2x1
jax: 0.10.0
libtpu: 0.0.40
codegen_flags: <defaults>
</compile_context>

<pallas_src>
import jax
import jax.numpy as jnp
from jax.experimental import pallas as pl
from jax.experimental.pallas import tpu as pltpu


def _round_up(a, b):
    return ((a + b - 1) // b) * b


def _cdiv(a, b):
    return (a + b - 1) // b


def _fuse_encoder_kernel(mask_ref,           # VMEM (TB, 1)
                         x_ref,              # VMEM (TB, N, F)
                         w1_ref, b1_ref,     # (F, 32), (1, 32)
                         w2_ref, b2_ref,     # (32, O), (1, O)
                         tw_ref, tb_ref,     # (O, F*128), (1, F*128)  fused fc(+I) @ conv1-w
                         c1b_ref,            # (1, 128)   conv1 bias, lane-padded
                         c2w_ref, c2b_ref,   # (128, O), (1, O)  conv2, row-padded
                         out_ref):           # VMEM (TB, O)
    TB, N, F = x_ref.shape
    O = w2_ref.shape[1]
    CP = c1b_ref.shape[1]                    # 128-lane padded conv1 width

    x3 = x_ref[...]                          # (TB, N, F)
    # N == 8 matches the sublane tile -> leading-dim reshape is a layout no-op.
    x2 = x3.reshape(TB * N, F)

    # ---- TNet pointwise MLP (batched over TB*N rows) + per-sample max over N ----
    h = jnp.dot(x2, w1_ref[...], preferred_element_type=jnp.float32) + b1_ref[...]
    h = jnp.maximum(h, 0.0)                                  # (TB*N, 32)
    h = jnp.dot(h, w2_ref[...], preferred_element_type=jnp.float32) + b2_ref[...]
    h = jnp.maximum(h, 0.0)                                  # (TB*N, O)
    g = jnp.max(h.reshape(TB, N, O), axis=1)                 # (TB, O)

    # ---- fused fc -> (+identity) -> (@ conv1 weight): one MXU matmul ----
    # tp[b, f*128 + c] = (reshape(g@fc_w + fc_b + I, (F,F)) @ c1w)[f, c], zero-padded lanes.
    tp = jnp.dot(g, tw_ref[...], preferred_element_type=jnp.float32) + tb_ref[...]  # (TB, F*128)

    # ---- bmm(x, T) fused with conv1: per-feature VPU accumulation at width 128 ----
    # Every tp chunk slice is 128-lane aligned (whole vreg, no lane rotate).
    acc = x3[:, :, 0:1] * tp[:, 0:CP][:, None, :]            # (TB, N, 128)
    for f in range(1, F):
        lo = f * CP
        acc = acc + x3[:, :, f:f + 1] * tp[:, lo:lo + CP][:, None, :]
    z = jnp.maximum(acc + c1b_ref[...], 0.0)                 # (TB, N, 128)

    # ---- conv2 (1x1 = channels-last matmul) + per-sample max over N ----
    z2 = jnp.dot(z.reshape(TB * N, CP), c2w_ref[...],
                 preferred_element_type=jnp.float32) + c2b_ref[...]
    m = jnp.max(z2.reshape(TB, N, O), axis=1)                # (TB, O)

    # ---- padding mask:  x * (1 - mask) ----
    out_ref[...] = m * (1.0 - mask_ref[...])


def _prepare_fused_params(params, k):
    """Fold fc bias + identity buffer and the conv1 weight into lane-aligned operands."""
    O = params["w2"].shape[1]
    c1w = params["c1w"]                                       # (k, C1)
    C1 = c1w.shape[1]
    CP = _round_up(C1, 128)
    lane_pad = CP - C1

    fc_w3 = params["fc_w"].reshape(O, k, k)                   # [o, f, j]
    tw = jnp.einsum("ofj,jc->ofc", fc_w3, c1w)                # (O, k, C1)
    tw = jnp.pad(tw, ((0, 0), (0, 0), (0, lane_pad))).reshape(O, k * CP)

    fcb_full = params["fc_b"] + jnp.eye(k, dtype=jnp.float32).reshape(-1)
    tb = fcb_full.reshape(k, k) @ c1w                         # (k, C1)
    tb = jnp.pad(tb, ((0, 0), (0, lane_pad))).reshape(1, k * CP)

    c1b = jnp.pad(params["c1b"], ((0, 0), (0, lane_pad)))     # (1, CP)
    c2w = jnp.pad(params["c2w"], ((0, lane_pad), (0, 0)))     # (CP, O)
    return tw, tb, c1b, c2w


def fuse_encoder_forward(x, padding_mask, params, block_bw=256):
    """x: (B, W, N, F) f32, padding_mask: (B, W) f32 -> (B, W, out_size) f32."""
    B, W, N, F = x.shape
    O = params["w2"].shape[1]
    BW = B * W

    # TB samples per grid step: multiple of 8 (sublane), capped by block_bw.
    TB = min(_round_up(block_bw, 8), _round_up(BW, 8))
    # Prefer >= 2 grid steps when there is enough work so v7x's two TensorCores
    # can both be used via the "parallel" grid axis.
    if _round_up(BW, TB) // TB < 2 and BW > 8:
        TB = max(8, _round_up(_cdiv(BW, 2), 8))
    BW_pad = _round_up(BW, TB)
    grid = BW_pad // TB

    x_flat = x.reshape(BW, N, F).astype(jnp.float32)
    mask_flat = padding_mask.reshape(BW, 1).astype(jnp.float32)
    if BW_pad != BW:
        pad = BW_pad - BW
        x_flat = jnp.pad(x_flat, ((0, pad), (0, 0), (0, 0)))
        mask_flat = jnp.pad(mask_flat, ((0, pad), (0, 0)), constant_values=1.0)

    tw, tb, c1b_pad, c2w_pad = _prepare_fused_params(params, F)
    CP = c1b_pad.shape[1]

    resident = pl.BlockSpec(memory_space=pltpu.MemorySpace.VMEM)  # full array, VMEM-resident

    grid_spec = pltpu.PrefetchScalarGridSpec(
        num_scalar_prefetch=0,
        grid=(grid,),
        in_specs=[
            pl.BlockSpec((TB, 1), lambda i: (i, 0)),          # mask block
            pl.BlockSpec((TB, N, F), lambda i: (i, 0, 0)),    # x block
            resident, resident,                               # w1, b1
            resident, resident,                               # w2, b2
            resident, resident,                               # tw, tb
            resident,                                         # c1b (padded)
            resident, resident,                               # c2w (padded), c2b
        ],
        out_specs=pl.BlockSpec((TB, O), lambda i: (i, 0)),
    )

    # Advisory cost estimate for XLA's scheduler.
    rows = BW_pad * N
    flops = 2.0 * (rows * (F * 32 + 32 * O)      # TNet MLP
                   + BW_pad * O * (F * CP)       # fused fc/transform matmul
                   + rows * F * CP               # bmm+conv1 accumulation
                   + rows * CP * O)              # conv2
    bytes_accessed = 4 * (x_flat.size + mask_flat.size + BW_pad * O
                          + params["w1"].size + params["b1"].size
                          + params["w2"].size + params["b2"].size
                          + tw.size + tb.size + c1b_pad.size
                          + c2w_pad.size + params["c2b"].size)

    out = pl.pallas_call(
        _fuse_encoder_kernel,
        out_shape=jax.ShapeDtypeStruct((BW_pad, O), jnp.float32),
        grid_spec=grid_spec,
        compiler_params=pltpu.CompilerParams(
            dimension_semantics=("parallel",),
            # Explicit scoped-VMEM limit: above the v5e 16 MiB default, well
            # below v7x's 64 MiB physical; keeps double-buffering intact.
            vmem_limit_bytes=48 * 1024 * 1024,
        ),
        cost_estimate=pl.CostEstimate(flops=int(flops), transcendentals=0,
                                      bytes_accessed=int(bytes_accessed)),
    )(mask_flat, x_flat,
      params["w1"], params["b1"], params["w2"], params["b2"],
      tw, tb, c1b_pad, c2w_pad, params["c2b"])

    return out[:BW].reshape(B, W, O)


def make_params(key, input_dim, out_size):
    """Deterministic synthetic parameters (Linear weights stored input-major)."""
    k = input_dim
    keys = jax.random.split(key, 8)
    s = 0.1
    return {
        "w1": s * jax.random.normal(keys[0], (k, 32), jnp.float32),
        "b1": s * jax.random.normal(keys[1], (1, 32), jnp.float32),
        "w2": s * jax.random.normal(keys[2], (32, out_size), jnp.float32),
        "b2": s * jax.random.normal(keys[3], (1, out_size), jnp.float32),
        "fc_w": s * jax.random.normal(keys[4], (out_size, k * k), jnp.float32),
        "fc_b": s * jax.random.normal(keys[5], (k * k,), jnp.float32),
        "c1w": s * jax.random.normal(keys[6], (k, 64), jnp.float32),
        "c1b": jnp.zeros((1, 64), jnp.float32),
        "c2w": s * jax.random.normal(keys[7], (64, out_size), jnp.float32),
        "c2b": jnp.zeros((1, out_size), jnp.float32),
    }


def ref_forward(x, padding_mask, params):
    """Pure-JAX reference mirroring the PyTorch forward (uses the raw params)."""
    B, W, N, F = x.shape
    xf = x.reshape(B * W, N, F).astype(jnp.float32)
    h = jax.nn.relu(xf @ params["w1"] + params["b1"])
    h = jax.nn.relu(h @ params["w2"] + params["b2"])
    g = h.max(axis=1)                                            # (BW, O)
    t = (g @ params["fc_w"] + params["fc_b"]).reshape(B * W, F, F)
    t = t + jnp.eye(F, dtype=jnp.float32)
    y = jnp.einsum("bnf,bfk->bnk", xf, t)                        # (BW, N, F)
    z = jax.nn.relu(y @ params["c1w"] + params["c1b"])
    z = z @ params["c2w"] + params["c2b"]
    m = z.max(axis=1)                                            # (BW, O)
    return m.reshape(B, W, -1) * (1.0 - padding_mask[..., None])


if __name__ == "__main__":
    B, W, N, INPUT_DIM, OUT_SIZE = 2, 12, 8, 10, 32

    key = jax.random.PRNGKey(0)
    k_x, k_m, k_p = jax.random.split(key, 3)
    x = jax.random.normal(k_x, (B, W, N, INPUT_DIM), jnp.float32)
    padding_mask = jax.random.bernoulli(k_m, 0.3, (B, W)).astype(jnp.float32)
    params = make_params(k_p, INPUT_DIM, OUT_SIZE)

    out = fuse_encoder_forward(x, padding_mask, params)
    out = jax.block_until_ready(out)

    ref = ref_forward(x, padding_mask, params)
    assert out.shape == (B, W, OUT_SIZE)
    assert jnp.allclose(out, ref, rtol=1e-3, atol=1e-3), "mismatch vs JAX reference"

    print("KERNEL_OK")
</pallas_src>

<mosaic_0001>
module attributes {stable_mosaic.version = 11 : i64} {
  func.func @_fuse_encoder_kernel(%arg0: i32, %arg1: memref<16x1xf32, #tpu.memory_space<vmem>>, %arg2: memref<16x8x10xf32, #tpu.memory_space<vmem>>, %arg3: memref<10x32xf32, #tpu.memory_space<vmem>>, %arg4: memref<1x32xf32, #tpu.memory_space<vmem>>, %arg5: memref<32x32xf32, #tpu.memory_space<vmem>>, %arg6: memref<1x32xf32, #tpu.memory_space<vmem>>, %arg7: memref<32x1280xf32, #tpu.memory_space<vmem>>, %arg8: memref<1x1280xf32, #tpu.memory_space<vmem>>, %arg9: memref<1x128xf32, #tpu.memory_space<vmem>>, %arg10: memref<128x32xf32, #tpu.memory_space<vmem>>, %arg11: memref<1x32xf32, #tpu.memory_space<vmem>>, %arg12: memref<16x32xf32, #tpu.memory_space<vmem>>) attributes {dimension_semantics = [#tpu.dimension_semantics<parallel>], iteration_bounds = array<i64: 2>, scalar_prefetch = 0 : i64, scratch_operands = 0 : i64, tpu.core_type = #tpu.core_type<tc>, window_params = [{transform_indices = @transform_0, window_bounds = array<i64: 16, 1>}, {transform_indices = @transform_1, window_bounds = array<i64: 16, 8, 10>}, {pipeline_mode = #tpu.pipeline_mode<synchronous>, transform_indices = @transform_2, window_bounds = array<i64: 10, 32>}, {pipeline_mode = #tpu.pipeline_mode<synchronous>, transform_indices = @transform_3, window_bounds = array<i64: 1, 32>}, {pipeline_mode = #tpu.pipeline_mode<synchronous>, transform_indices = @transform_4, window_bounds = array<i64: 32, 32>}, {pipeline_mode = #tpu.pipeline_mode<synchronous>, transform_indices = @transform_5, window_bounds = array<i64: 1, 32>}, {pipeline_mode = #tpu.pipeline_mode<synchronous>, transform_indices = @transform_6, window_bounds = array<i64: 32, 1280>}, {pipeline_mode = #tpu.pipeline_mode<synchronous>, transform_indices = @transform_7, window_bounds = array<i64: 1, 1280>}, {pipeline_mode = #tpu.pipeline_mode<synchronous>, transform_indices = @transform_8, window_bounds = array<i64: 1, 128>}, {pipeline_mode = #tpu.pipeline_mode<synchronous>, transform_indices = @transform_9, window_bounds = array<i64: 128, 32>}, {pipeline_mode = #tpu.pipeline_mode<synchronous>, transform_indices = @transform_10, window_bounds = array<i64: 1, 32>}, {transform_indices = @transform_11, window_bounds = array<i64: 16, 32>}]} {
    %c0 = arith.constant 0 : index
    %c0_0 = arith.constant 0 : index
    %c0_1 = arith.constant 0 : index
    %0 = vector.load %arg2[%c0, %c0_0, %c0_1] : memref<16x8x10xf32, #tpu.memory_space<vmem>>, vector<16x8x10xf32>
    %1 = vector.shape_cast %0 : vector<16x8x10xf32> to vector<128x10xf32>
    %c0_2 = arith.constant 0 : index
    %c0_3 = arith.constant 0 : index
    %2 = vector.load %arg3[%c0_2, %c0_3] : memref<10x32xf32, #tpu.memory_space<vmem>>, vector<10x32xf32>
    %cst = arith.constant dense<0.000000e+00> : vector<128x32xf32>
    %3 = tpu.matmul %1, %2, %cst {dimension_numbers = #tpu.dot_dimension_numbers<[1], [0], [0], [1], [0, 0, 1, 1], [], []>} : vector<128x10xf32>, vector<10x32xf32>, vector<128x32xf32> -> vector<128x32xf32>
    %c0_4 = arith.constant 0 : index
    %c0_5 = arith.constant 0 : index
    %4 = vector.load %arg4[%c0_4, %c0_5] : memref<1x32xf32, #tpu.memory_space<vmem>>, vector<1x32xf32>
    %5 = vector.broadcast %4 : vector<1x32xf32> to vector<128x32xf32>
    %6 = arith.addf %3, %5 : vector<128x32xf32>
    %cst_6 = arith.constant 0.000000e+00 : f32
    %7 = vector.broadcast %cst_6 : f32 to vector<128x32xf32>
    %8 = arith.maximumf %6, %7 : vector<128x32xf32>
    %c0_7 = arith.constant 0 : index
    %c0_8 = arith.constant 0 : index
    %9 = vector.load %arg5[%c0_7, %c0_8] : memref<32x32xf32, #tpu.memory_space<vmem>>, vector<32x32xf32>
    %cst_9 = arith.constant dense<0.000000e+00> : vector<128x32xf32>
    %10 = tpu.matmul %8, %9, %cst_9 {dimension_numbers = #tpu.dot_dimension_numbers<[1], [0], [0], [1], [0, 0, 1, 1], [], []>} : vector<128x32xf32>, vector<32x32xf32>, vector<128x32xf32> -> vector<128x32xf32>
    %c0_10 = arith.constant 0 : index
    %c0_11 = arith.constant 0 : index
    %11 = vector.load %arg6[%c0_10, %c0_11] : memref<1x32xf32, #tpu.memory_space<vmem>>, vector<1x32xf32>
    %12 = vector.broadcast %11 : vector<1x32xf32> to vector<128x32xf32>
    %13 = arith.addf %10, %12 : vector<128x32xf32>
    %cst_12 = arith.constant 0.000000e+00 : f32
    %14 = vector.broadcast %cst_12 : f32 to vector<128x32xf32>
    %15 = arith.maximumf %13, %14 : vector<128x32xf32>
    %16 = vector.shape_cast %15 : vector<128x32xf32> to vector<16x8x32xf32>
    %cst_13 = arith.constant dense<0xFF800000> : vector<16x32xf32>
    %17 = vector.multi_reduction <maximumf>, %16, %cst_13 [1] : vector<16x8x32xf32> to vector<16x32xf32>
    %c0_14 = arith.constant 0 : index
    %c0_15 = arith.constant 0 : index
    %18 = vector.load %arg7[%c0_14, %c0_15] : memref<32x1280xf32, #tpu.memory_space<vmem>>, vector<32x1280xf32>
    %cst_16 = arith.constant dense<0.000000e+00> : vector<16x1280xf32>
    %19 = tpu.matmul %17, %18, %cst_16 {dimension_numbers = #tpu.dot_dimension_numbers<[1], [0], [0], [1], [0, 0, 1, 1], [], []>} : vector<16x32xf32>, vector<32x1280xf32>, vector<16x1280xf32> -> vector<16x1280xf32>
    %c0_17 = arith.constant 0 : index
    %c0_18 = arith.constant 0 : index
    %20 = vector.load %arg8[%c0_17, %c0_18] : memref<1x1280xf32, #tpu.memory_space<vmem>>, vector<1x1280xf32>
    %21 = vector.broadcast %20 : vector<1x1280xf32> to vector<16x1280xf32>
    %22 = arith.addf %19, %21 : vector<16x1280xf32>
    %23 = vector.extract_strided_slice %0 {offsets = [0, 0, 0], sizes = [16, 8, 1], strides = [1, 1, 1]} : vector<16x8x10xf32> to vector<16x8x1xf32>
    %24 = vector.extract_strided_slice %22 {offsets = [0, 0], sizes = [16, 128], strides = [1, 1]} : vector<16x1280xf32> to vector<16x128xf32>
    %25 = vector.shape_cast %24 : vector<16x128xf32> to vector<16x1x128xf32>
    %26 = vector.broadcast %23 : vector<16x8x1xf32> to vector<16x8x128xf32>
    %27 = vector.broadcast %25 : vector<16x1x128xf32> to vector<16x8x128xf32>
    %28 = arith.mulf %26, %27 : vector<16x8x128xf32>
    %29 = vector.extract_strided_slice %0 {offsets = [0, 0, 1], sizes = [16, 8, 1], strides = [1, 1, 1]} : vector<16x8x10xf32> to vector<16x8x1xf32>
    %30 = vector.extract_strided_slice %22 {offsets = [0, 128], sizes = [16, 128], strides = [1, 1]} : vector<16x1280xf32> to vector<16x128xf32>
    %31 = vector.shape_cast %30 : vector<16x128xf32> to vector<16x1x128xf32>
    %32 = vector.broadcast %29 : vector<16x8x1xf32> to vector<16x8x128xf32>
    %33 = vector.broadcast %31 : vector<16x1x128xf32> to vector<16x8x128xf32>
    %34 = arith.mulf %32, %33 : vector<16x8x128xf32>
    %35 = arith.addf %28, %34 : vector<16x8x128xf32>
    %36 = vector.extract_strided_slice %0 {offsets = [0, 0, 2], sizes = [16, 8, 1], strides = [1, 1, 1]} : vector<16x8x10xf32> to vector<16x8x1xf32>
    %37 = vector.extract_strided_slice %22 {offsets = [0, 256], sizes = [16, 128], strides = [1, 1]} : vector<16x1280xf32> to vector<16x128xf32>
    %38 = vector.shape_cast %37 : vector<16x128xf32> to vector<16x1x128xf32>
    %39 = vector.broadcast %36 : vector<16x8x1xf32> to vector<16x8x128xf32>
    %40 = vector.broadcast %38 : vector<16x1x128xf32> to vector<16x8x128xf32>
    %41 = arith.mulf %39, %40 : vector<16x8x128xf32>
    %42 = arith.addf %35, %41 : vector<16x8x128xf32>
    %43 = vector.extract_strided_slice %0 {offsets = [0, 0, 3], sizes = [16, 8, 1], strides = [1, 1, 1]} : vector<16x8x10xf32> to vector<16x8x1xf32>
    %44 = vector.extract_strided_slice %22 {offsets = [0, 384], sizes = [16, 128], strides = [1, 1]} : vector<16x1280xf32> to vector<16x128xf32>
    %45 = vector.shape_cast %44 : vector<16x128xf32> to vector<16x1x128xf32>
    %46 = vector.broadcast %43 : vector<16x8x1xf32> to vector<16x8x128xf32>
    %47 = vector.broadcast %45 : vector<16x1x128xf32> to vector<16x8x128xf32>
    %48 = arith.mulf %46, %47 : vector<16x8x128xf32>
    %49 = arith.addf %42, %48 : vector<16x8x128xf32>
    %50 = vector.extract_strided_slice %0 {offsets = [0, 0, 4], sizes = [16, 8, 1], strides = [1, 1, 1]} : vector<16x8x10xf32> to vector<16x8x1xf32>
    %51 = vector.extract_strided_slice %22 {offsets = [0, 512], sizes = [16, 128], strides = [1, 1]} : vector<16x1280xf32> to vector<16x128xf32>
    %52 = vector.shape_cast %51 : vector<16x128xf32> to vector<16x1x128xf32>
    %53 = vector.broadcast %50 : vector<16x8x1xf32> to vector<16x8x128xf32>
    %54 = vector.broadcast %52 : vector<16x1x128xf32> to vector<16x8x128xf32>
    %55 = arith.mulf %53, %54 : vector<16x8x128xf32>
    %56 = arith.addf %49, %55 : vector<16x8x128xf32>
    %57 = vector.extract_strided_slice %0 {offsets = [0, 0, 5], sizes = [16, 8, 1], strides = [1, 1, 1]} : vector<16x8x10xf32> to vector<16x8x1xf32>
    %58 = vector.extract_strided_slice %22 {offsets = [0, 640], sizes = [16, 128], strides = [1, 1]} : vector<16x1280xf32> to vector<16x128xf32>
    %59 = vector.shape_cast %58 : vector<16x128xf32> to vector<16x1x128xf32>
    %60 = vector.broadcast %57 : vector<16x8x1xf32> to vector<16x8x128xf32>
    %61 = vector.broadcast %59 : vector<16x1x128xf32> to vector<16x8x128xf32>
    %62 = arith.mulf %60, %61 : vector<16x8x128xf32>
    %63 = arith.addf %56, %62 : vector<16x8x128xf32>
    %64 = vector.extract_strided_slice %0 {offsets = [0, 0, 6], sizes = [16, 8, 1], strides = [1, 1, 1]} : vector<16x8x10xf32> to vector<16x8x1xf32>
    %65 = vector.extract_strided_slice %22 {offsets = [0, 768], sizes = [16, 128], strides = [1, 1]} : vector<16x1280xf32> to vector<16x128xf32>
    %66 = vector.shape_cast %65 : vector<16x128xf32> to vector<16x1x128xf32>
    %67 = vector.broadcast %64 : vector<16x8x1xf32> to vector<16x8x128xf32>
    %68 = vector.broadcast %66 : vector<16x1x128xf32> to vector<16x8x128xf32>
    %69 = arith.mulf %67, %68 : vector<16x8x128xf32>
    %70 = arith.addf %63, %69 : vector<16x8x128xf32>
    %71 = vector.extract_strided_slice %0 {offsets = [0, 0, 7], sizes = [16, 8, 1], strides = [1, 1, 1]} : vector<16x8x10xf32> to vector<16x8x1xf32>
    %72 = vector.extract_strided_slice %22 {offsets = [0, 896], sizes = [16, 128], strides = [1, 1]} : vector<16x1280xf32> to vector<16x128xf32>
    %73 = vector.shape_cast %72 : vector<16x128xf32> to vector<16x1x128xf32>
    %74 = vector.broadcast %71 : vector<16x8x1xf32> to vector<16x8x128xf32>
    %75 = vector.broadcast %73 : vector<16x1x128xf32> to vector<16x8x128xf32>
    %76 = arith.mulf %74, %75 : vector<16x8x128xf32>
    %77 = arith.addf %70, %76 : vector<16x8x128xf32>
    %78 = vector.extract_strided_slice %0 {offsets = [0, 0, 8], sizes = [16, 8, 1], strides = [1, 1, 1]} : vector<16x8x10xf32> to vector<16x8x1xf32>
    %79 = vector.extract_strided_slice %22 {offsets = [0, 1024], sizes = [16, 128], strides = [1, 1]} : vector<16x1280xf32> to vector<16x128xf32>
    %80 = vector.shape_cast %79 : vector<16x128xf32> to vector<16x1x128xf32>
    %81 = vector.broadcast %78 : vector<16x8x1xf32> to vector<16x8x128xf32>
    %82 = vector.broadcast %80 : vector<16x1x128xf32> to vector<16x8x128xf32>
    %83 = arith.mulf %81, %82 : vector<16x8x128xf32>
    %84 = arith.addf %77, %83 : vector<16x8x128xf32>
    %85 = vector.extract_strided_slice %0 {offsets = [0, 0, 9], sizes = [16, 8, 1], strides = [1, 1, 1]} : vector<16x8x10xf32> to vector<16x8x1xf32>
    %86 = vector.extract_strided_slice %22 {offsets = [0, 1152], sizes = [16, 128], strides = [1, 1]} : vector<16x1280xf32> to vector<16x128xf32>
    %87 = vector.shape_cast %86 : vector<16x128xf32> to vector<16x1x128xf32>
    %88 = vector.broadcast %85 : vector<16x8x1xf32> to vector<16x8x128xf32>
    %89 = vector.broadcast %87 : vector<16x1x128xf32> to vector<16x8x128xf32>
    %90 = arith.mulf %88, %89 : vector<16x8x128xf32>
    %91 = arith.addf %84, %90 : vector<16x8x128xf32>
    %c0_19 = arith.constant 0 : index
    %c0_20 = arith.constant 0 : index
    %92 = vector.load %arg9[%c0_19, %c0_20] : memref<1x128xf32, #tpu.memory_space<vmem>>, vector<1x128xf32>
    %93 = vector.shape_cast %92 : vector<1x128xf32> to vector<1x1x128xf32>
    %94 = vector.broadcast %93 : vector<1x1x128xf32> to vector<16x8x128xf32>
    %95 = arith.addf %91, %94 : vector<16x8x128xf32>
    %cst_21 = arith.constant 0.000000e+00 : f32
    %96 = vector.broadcast %cst_21 : f32 to vector<16x8x128xf32>
    %97 = arith.maximumf %95, %96 : vector<16x8x128xf32>
    %98 = vector.shape_cast %97 : vector<16x8x128xf32> to vector<128x128xf32>
    %c0_22 = arith.constant 0 : index
    %c0_23 = arith.constant 0 : index
    %99 = vector.load %arg10[%c0_22, %c0_23] : memref<128x32xf32, #tpu.memory_space<vmem>>, vector<128x32xf32>
    %cst_24 = arith.constant dense<0.000000e+00> : vector<128x32xf32>
    %100 = tpu.matmul %98, %99, %cst_24 {dimension_numbers = #tpu.dot_dimension_numbers<[1], [0], [0], [1], [0, 0, 1, 1], [], []>} : vector<128x128xf32>, vector<128x32xf32>, vector<128x32xf32> -> vector<128x32xf32>
    %c0_25 = arith.constant 0 : index
    %c0_26 = arith.constant 0 : index
    %101 = vector.load %arg11[%c0_25, %c0_26] : memref<1x32xf32, #tpu.memory_space<vmem>>, vector<1x32xf32>
    %102 = vector.broadcast %101 : vector<1x32xf32> to vector<128x32xf32>
    %103 = arith.addf %100, %102 : vector<128x32xf32>
    %104 = vector.shape_cast %103 : vector<128x32xf32> to vector<16x8x32xf32>
    %cst_27 = arith.constant dense<0xFF800000> : vector<16x32xf32>
    %105 = vector.multi_reduction <maximumf>, %104, %cst_27 [1] : vector<16x8x32xf32> to vector<16x32xf32>
    %c0_28 = arith.constant 0 : index
    %c0_29 = arith.constant 0 : index
    %106 = vector.load %arg1[%c0_28, %c0_29] : memref<16x1xf32, #tpu.memory_space<vmem>>, vector<16x1xf32>
    %cst_30 = arith.constant 1.000000e+00 : f32
    %107 = vector.broadcast %cst_30 : f32 to vector<16x1xf32>
    %108 = arith.subf %107, %106 : vector<16x1xf32>
    %109 = vector.broadcast %108 : vector<16x1xf32> to vector<16x32xf32>
    %110 = arith.mulf %105, %109 : vector<16x32xf32>
    %c0_31 = arith.constant 0 : index
    %c0_32 = arith.constant 0 : index
    %111 = vector.load %arg12[%c0_31, %c0_32] : memref<16x32xf32, #tpu.memory_space<vmem>>, vector<16x32xf32>
    tpu.vector_store %arg12[%c0_31, %c0_32], %110 {strides = array<i32>} : memref<16x32xf32, #tpu.memory_space<vmem>>, vector<16x32xf32>,
    return
  }
  func.func @transform_0(%arg0: i32) -> (i32, i32) {
    %c0_i32 = arith.constant 0 : i32
    %c0_i32_0 = arith.constant 0 : i32
    return %arg0, %c0_i32 : i32, i32
  }
  func.func @transform_1(%arg0: i32) -> (i32, i32, i32) {
    %c0_i32 = arith.constant 0 : i32
    %c0_i32_0 = arith.constant 0 : i32
    %c0_i32_1 = arith.constant 0 : i32
    return %arg0, %c0_i32, %c0_i32_0 : i32, i32, i32
  }
  func.func @transform_2(%arg0: i32) -> (i32, i32) {
    %c0_i32 = arith.constant 0 : i32
    %c0_i32_0 = arith.constant 0 : i32
    %c0_i32_1 = arith.constant 0 : i32
    return %c0_i32, %c0_i32_0 : i32, i32
  }
  func.func @transform_3(%arg0: i32) -> (i32, i32) {
    %c0_i32 = arith.constant 0 : i32
    %c0_i32_0 = arith.constant 0 : i32
    %c0_i32_1 = arith.constant 0 : i32
    return %c0_i32, %c0_i32_0 : i32, i32
  }
  func.func @transform_4(%arg0: i32) -> (i32, i32) {
    %c0_i32 = arith.constant 0 : i32
    %c0_i32_0 = arith.constant 0 : i32
    %c0_i32_1 = arith.constant 0 : i32
    return %c0_i32, %c0_i32_0 : i32, i32
  }
  func.func @transform_5(%arg0: i32) -> (i32, i32) {
    %c0_i32 = arith.constant 0 : i32
    %c0_i32_0 = arith.constant 0 : i32
    %c0_i32_1 = arith.constant 0 : i32
    return %c0_i32, %c0_i32_0 : i32, i32
  }
  func.func @transform_6(%arg0: i32) -> (i32, i32) {
    %c0_i32 = arith.constant 0 : i32
    %c0_i32_0 = arith.constant 0 : i32
    %c0_i32_1 = arith.constant 0 : i32
    return %c0_i32, %c0_i32_0 : i32, i32
  }
  func.func @transform_7(%arg0: i32) -> (i32, i32) {
    %c0_i32 = arith.constant 0 : i32
    %c0_i32_0 = arith.constant 0 : i32
    %c0_i32_1 = arith.constant 0 : i32
    return %c0_i32, %c0_i32_0 : i32, i32
  }
  func.func @transform_8(%arg0: i32) -> (i32, i32) {
    %c0_i32 = arith.constant 0 : i32
    %c0_i32_0 = arith.constant 0 : i32
    %c0_i32_1 = arith.constant 0 : i32
    return %c0_i32, %c0_i32_0 : i32, i32
  }
  func.func @transform_9(%arg0: i32) -> (i32, i32) {
    %c0_i32 = arith.constant 0 : i32
    %c0_i32_0 = arith.constant 0 : i32
    %c0_i32_1 = arith.constant 0 : i32
    return %c0_i32, %c0_i32_0 : i32, i32
  }
  func.func @transform_10(%arg0: i32) -> (i32, i32) {
    %c0_i32 = arith.constant 0 : i32
    %c0_i32_0 = arith.constant 0 : i32
    %c0_i32_1 = arith.constant 0 : i32
    return %c0_i32, %c0_i32_0 : i32, i32
  }
  func.func @transform_11(%arg0: i32) -> (i32, i32) {
    %c0_i32 = arith.constant 0 : i32
    %c0_i32_0 = arith.constant 0 : i32
    return %arg0, %c0_i32 : i32, i32
  }
}

</mosaic_0001>

<bundles_post_ra>
// kernel: tpu_custom_call.1
= control target key start
LH: loop header
LB: loop body
LE: loop exit
PB: predicated region body
PF: predicated region fallthrough
CT: control target
= control target key end

     0   :  { %16 = vsyncpa [#allocation3], 0  ;;  %s7606_s0 = inlined_call_operand.vmem [shape: f32[32,1], index: 0, kind: input, shape index: {}]   ;;  %s7607_s1 = inlined_call_operand.vmem [shape: f32[32,8,10], index: 1, kind: input, shape index: {}]   ;;  %s7608_s2 = inlined_call_operand.vmem [shape: f32[10,32], index: 2, kind: input, shape index: {}]   ;;  %s7609_s3 = inlined_call_operand.vmem [shape: f32[1,32], index: 3, kind: input, shape index: {}]   ;;  %s7610_s4 = inlined_call_operand.vmem [shape: f32[32,32], index: 4, kind: input, shape index: {}]   ;;  %s7611_s5 = inlined_call_operand.vmem [shape: f32[1,32], index: 5, kind: input, shape index: {}]   ;;  %s7612_s6 = inlined_call_operand.vmem [shape: f32[32,1280], index: 6, kind: input, shape index: {}]   ;;  %s7613_s7 = inlined_call_operand.vmem [shape: f32[1,1280], index: 7, kind: input, shape index: {}]   ;;  %s7614_s8 = inlined_call_operand.vmem [shape: f32[1,128], index: 8, kind: input, shape index: {}]   ;;  %s7615_s9 = inlined_call_operand.vmem [shape: f32[128,32], index: 9, kind: input, shape index: {}]   ;;  %s7616_s10 = inlined_call_operand.vmem [shape: f32[1,32], index: 10, kind: input, shape index: {}]   ;;  %s7617_s11 = inlined_call_operand.hbm [shape: f32[32,32], index: 11, kind: output, shape index: {}]  }
   0x1   :  { %18 = vsyncpa [#allocation3 + $0x1], 0  ;;  %s5355_s17 = smov 0   ;;  %s5357_s18 = smov 0  }
   0x2   :  { %s5359_s19 = smov 0   ;;  %s5361_s20 = smov 0  }
   0x3 LB: > { %s5376_s21 = sadd.s32 4294967295, %s5277_s20   ;;  %s4759_s22 = sadd.s32 4294967294, %s5277_s20   ;;  %s5277_s20 = sphi %s5361_s20, %s7991_s20   ;;  %s5273_s19 = sphi %s5359_s19, %s7990_s19   ;;  %s5269_s18 = sphi %s5357_s18, %s7989_s18   ;;  %s5265_s17 = sphi %s5355_s17, %s7988_s17  }
   0x4   : > { %s5380_s23 = sadd.s32 1, %s5277_s20   ;;  %s272_s24 = sadd.s32 1, %s5273_s19 }
   0x5   : > { %s269_s25 = ssub.s32 %s5277_s20, %s5380_s23  ;;  %p282_p0 = scmp.ne.s32.totalorder %s5273_s19, %s5269_s18 }
   0x6   : > { %p270_p1 = scmp.eq.s32.totalorder %s269_s25, 0  ;;  %p283_p2 = scmp.eq.s32.totalorder %s5376_s21, 1 }
   0x7   : > { %p288_p3 = scmp.ne.s32.totalorder %s5269_s18, %s5265_s17  ;;  %p289_p4 = scmp.eq.s32.totalorder %s4759_s22, 1 }
   0x8   : > { %s5391_s26 = scalar_select %p270_p1, %s5273_s19, %s272_s24  }
   0x9   : > { %p5393_p5 = por %p283_p2, %p282_p0  ;;  %p5397_p6 = por %p289_p4, %p288_p3 }
   0xa   : > { %p4762_p7 = scmp.ge.s32.totalorder %s5277_s20, 1  ;;  %p352_p8 = scmp.lt.s32.totalorder %s5277_s20, 3 }
   0xc   : > { %p353_p9 = pnand %p4762_p7, %p352_p8 }
   0xe   : > { %356 = sbr.rel (%p353_p9) target bundleno = 1175 (0x497), region = 64 }
  0x15   : > { %v426_v0 = vld [vmem:[%s7608_s2] sm:$0xff]  ;;  %v427_v1 = vld [vmem:[%s7608_s2 + $0x8] sm:$0x3]  ;;  %vm484_vm0 = vcmask 1041408   ;;  %s4766_s14 = sshll.u32 %s5376_s21, 4  ;;  %vm5279_vm1 = vmmov 1  }
  0x16   : > { %v5007_v2 = vpack.c.bf16 %v427_v1, %v426_v0  ;;  %vm5008_vm2 = vmpackc.low %vm484_vm0, %vm5279_vm1  ;;  %p404_p10 = scmp.lt.s32.totalorder %s4766_s14, 31  ;;  %v649_v3 = vld [vmem:[%s7610_s4] sm:$0xff]  ;;  %v650_v4 = vld [vmem:[%s7610_s4 + $0x8] sm:$0xff]  ;;  %v7620_v5 = vmov 0   ;;  %vm435_vm3 = vcmask 80896   ;;  %v5281_v26 = vmov 1  }
  0x17   : > { %5152 = vset.pattern.permute.xlu1 %v7620_v5  ;;  %v5013_v6 = vpack.c.bf16 %v650_v4, %v649_v3  ;;  %v651_v7 = vld [vmem:[%s7610_s4 + $0x10] sm:$0xff]  ;;  %v652_v8 = vld [vmem:[%s7610_s4 + $0x18] sm:$0xff]  ;;  %5151 = vset.pattern.permute.xlu0 %v7620_v5  ;;  %v5282_v27 = vmov 2   ;;  %v5283_v28 = vmov 3   ;;  %v5284_v29 = vmov 6   ;;  %s4764_s25 = sshll.u32 %s5376_s21, 1 }
  0x18   : > { %5009 = vmatprep.subr.msk.bf16.mxu0 %vm5008_vm2, %v5007_v2  ;;  %s7993_s14 = smov (!%p404_p10, %s4766_s14), 31  ;;  %v5017_v9 = vpack.c.bf16 %v652_v8, %v651_v7  ;;  %v5285_v30 = vmov 4   ;;  %v5286_v31 = vmov 5   ;;  %v5604_v33 = vld [vmem:[%s7609_s3] ss:$0 sm:$0xff]  ;;  %vm660_vm4 = vcmask 261120  }
  0x19   : > { %5012 = vmatpush3.bf16.msk.msra.mxu0 %vm5008_vm2, %v5007_v2  ;;  %5093 = vmatprep.subr.bf16.mxu1 %v5013_v6  ;;  %s4767_s13 = sshll.u32 %s7993_s14, 3  ;;  %v7625_v39 = vmov 7   ;;  %v7623_v3 = vmov 8   ;;  %vm1092_vm5 = vcmask 1041409   ;;  %vm1094_vm6 = vcmask 1042434   ;;  %p7355_p11 = scmp.lt.s32.totalorder %s4764_s25, 3 }
  0x1a   : > { %5014 = vmatprep.subr.bf16.mxu0 %v5013_v6  ;;  %5095 = vmatpush3.bf16.msra.mxu1 %v5013_v6  ;;  %s5427_s22 = scalar_lea.vmem %s7607_s1, %s4767_s13  ;;  %vm1096_vm7 = vcmask 1043459   ;;  %vm1098_vm8 = vcmask 1044484   ;;  %vm1100_vm9 = vcmask 1045509   ;;  %vm1102_vm10 = vcmask 1046534   ;;  %s394_s14 = sand.u32 1, %s5269_s18  }
  0x1b   : > { %5094 = vmatprep.subr.bf16.mxu1 %v5017_v9  ;;  %v5430_v10 = vld [vmem:[%s5427_s22] sm:$0xff]  ;;  %v5433_v11 = vld [vmem:[%s5427_s22 + $0x8] sm:$0xff]  ;;  %v5436_v12 = vld [vmem:[%s5427_s22 + $0x10] sm:$0xff]  ;;  %vm1104_vm11 = vcmask 1047559   ;;  %s7995_s25 = smov (!%p7355_p11, %s4764_s25), 3  ;;  %s4763_s24 = sshll.u32 %s394_s14, 4 }
  0x1c   : > { %4895 = vmatprep.mubr.msk.f32.mxu0 %vm435_vm3, %v5430_v10  ;;  %1611 = vperm.xlu1 %5152, %v5436_v12   ;;  %v5446_v13 = vld [vmem:[%s5427_s22 + $0x18] sm:$0xff]  ;;  %v5449_v14 = vld [vmem:[%s5427_s22 + $0x20] sm:$0xff]  ;;  %v5458_v15 = vld [vmem:[%s5427_s22 + $0x28] sm:$0xff]  ;;  %s4765_s30 = sshll.u32 %s7995_s25, 3  ;;  %s396_s25 = scalar_lea.vmem [#allocation2], %s4763_s24 }
  0x1d   : > { %4896 = vmatmul.mubr.msk.f32.vlgmr.msra.gmra.mrb[0].mxu0 %vm435_vm3, %v5433_v11  ;;  %1603 = vperm.xlu0 %5151, %v5430_v10   ;;  %v5461_v16 = vld [vmem:[%s5427_s22 + $0x30] sm:$0xff]  ;;  %v5470_v17 = vld [vmem:[%s5427_s22 + $0x38] sm:$0xff]  ;;  %v5473_v18 = vld [vmem:[%s5427_s22 + $0x40] sm:$0xff]  ;;  %s401_s15 = scalar_lea.vmem %s7606_s0, %s4765_s30  ;;  %s4820_s29 = sshll.u32 %s5376_s21, 8 }
  0x1e   : > { %5096 = vmatpush3.bf16.msra.mxu1 %v5017_v9  ;;  %4898 = vmatprep.mubr.msk.f32.mxu0 %vm435_vm3, %v5436_v12  ;;  %v5482_v19 = vld [vmem:[%s5427_s22 + $0x48] sm:$0xff]  ;;  %v5485_v20 = vld [vmem:[%s5427_s22 + $0x50] sm:$0xff]  ;;  %v5494_v21 = vld [vmem:[%s5427_s22 + $0x58] sm:$0xff]  ;;  %s4685_s30 = sshll.u32 %s396_s25, 4  ;;  %s7565_s21 = scalar_lea.sflag [#allocation3], %s394_s14  ;;  %s7558_s30 = int_to_ptr.vmem [resolvable:$true] %s4685_s30 }
  0x1f   : > { %5016 = vmatpush3.bf16.msra.mxu0 %v5013_v6  ;;  %v5497_v22 = vld [vmem:[%s5427_s22 + $0x60] sm:$0xff]  ;;  %v5506_v23 = vld [vmem:[%s5427_s22 + $0x68] sm:$0xff]  ;;  %v5509_v24 = vld [vmem:[%s5427_s22 + $0x70] sm:$0xff]  ;;  %s5215_s16 = scalar_lea.vmem %s7558_s30, 256 }
  0x20   : > { %5018 = vmatprep.subr.bf16.mxu0 %v5017_v9  ;;  %1615 = vperm.xlu1 %5152, %v5446_v13   ;;  %v5518_v25 = vld [vmem:[%s5427_s22 + $0x78] sm:$0xff]  ;;  %p5216_p12 = scmp.ne.s32.totalorder %s7558_s30, %s5215_s16  ;;  %s5292_s22 = smov [#allocation2]  }
  0x21   : > { %4899 = vmatmul.mubr.msk.f32.gmra.mrb[2].mxu0 %vm435_vm3, %v5446_v13  ;;  %1607 = vperm.xlu0 %5151, %v5433_v11   ;;  %s5219_s24 = sshll.u32 %s5292_s22, 4  ;;  %s5220_s24 = int_to_ptr.vmem [resolvable:$false] %s5219_s24 }
  0x22   : > { %4901 = vmatprep.mubr.msk.f32.mxu0 %vm435_vm3, %v5449_v14  ;;  %p5217_p13 = pnand %p5216_p12, %p5393_p5  ;;  %p5222_p1 = scmp.lt.s32.totalorder %s7558_s30, %s5220_s24 }
  0x23   : > { %5020 = vmatpush3.bf16.msra.mxu0 %v5017_v9 }
  0x24   : > { %1623 = vperm.xlu1 %5152, %v5458_v15   ;;  %p5218_p0 = pneg %p5217_p13 }
  0x25   : > { %4902 = vmatmul.mubr.msk.f32.gmra.mrb[4].mxu0 %vm435_vm3, %v5458_v15  ;;  %1619 = vperm.xlu0 %5151, %v5449_v14  }
  0x26   : > { %4904 = vmatprep.mubr.msk.f32.mxu0 %vm435_vm3, %v5461_v16 }
  0x28   : > { %1631 = vperm.xlu1 %5152, %v5470_v17  }
  0x29   : > { %4905 = vmatmul.mubr.msk.f32.gmra.mrb[6].mxu0 %vm435_vm3, %v5470_v17  ;;  %1627 = vperm.xlu0 %5151, %v5461_v16  }
  0x2a   : > { %4907 = vmatprep.mubr.msk.f32.mxu0 %vm435_vm3, %v5473_v18 }
  0x2c   : > { %1639 = vperm.xlu1 %5152, %v5482_v19  }
  0x2d   : > { %4908 = vmatmul.mubr.msk.f32.gmra.mrb[8].mxu0 %vm435_vm3, %v5482_v19  ;;  %1635 = vperm.xlu0 %5151, %v5473_v18  }
  0x2e   : > { %4910 = vmatprep.mubr.msk.f32.mxu0 %vm435_vm3, %v5485_v20 }
  0x30   : > { %1647 = vperm.xlu1 %5152, %v5494_v21  }
  0x31   : > { %4911 = vmatmul.mubr.msk.f32.gmra.mrb[10].mxu0 %vm435_vm3, %v5494_v21  ;;  %1643 = vperm.xlu0 %5151, %v5485_v20  }
  0x32   : > { %4913 = vmatprep.mubr.msk.f32.mxu0 %vm435_vm3, %v5497_v22 }
  0x34   : > { %1655 = vperm.xlu1 %5152, %v5506_v23  }
  0x35   : > { %4914 = vmatmul.mubr.msk.f32.gmra.mrb[12].mxu0 %vm435_vm3, %v5506_v23  ;;  %1651 = vperm.xlu0 %5151, %v5497_v22  }
  0x36   : > { %4916 = vmatprep.mubr.msk.f32.mxu0 %vm435_vm3, %v5509_v24 }
  0x38   : > { %1663 = vperm.xlu1 %5152, %v5518_v25  }
  0x39   : > { %4917 = vmatmul.mubr.msk.f32.gmra.mrb[14].mxu0 %vm435_vm3, %v5518_v25  ;;  %1659 = vperm.xlu0 %5151, %v5509_v24  }
  0x3c   : > { %5154 = vset.pattern.permute.xlu1 %v5281_v26 }
  0x3d   : > { %1867 = vperm.xlu1 %5154, %v5433_v11   ;;  %5153 = vset.pattern.permute.xlu0 %v5281_v26 }
  0x3e   : > { %1863 = vperm.xlu0 %5153, %v5430_v10  }
  0x41   : > { %1871 = vperm.xlu1 %5154, %v5436_v12  }
  0x42   : > { %1875 = vperm.xlu0 %5153, %v5446_v13  }
  0x45   : > { %1879 = vperm.xlu1 %5154, %v5449_v14  }
  0x46   : > { %1883 = vperm.xlu0 %5153, %v5458_v15  }
  0x49   : > { %1887 = vperm.xlu1 %5154, %v5461_v16  }
  0x4a   : > { %1891 = vperm.xlu0 %5153, %v5470_v17  }
  0x4d   : > { %1895 = vperm.xlu1 %5154, %v5473_v18  }
  0x4e   : > { %1899 = vperm.xlu0 %5153, %v5482_v19  }
  0x51   : > { %1903 = vperm.xlu1 %5154, %v5485_v20  }
  0x52   : > { %1907 = vperm.xlu0 %5153, %v5494_v21  }
  0x55   : > { %1911 = vperm.xlu1 %5154, %v5497_v22  }
  0x56   : > { %1915 = vperm.xlu0 %5153, %v5506_v23  }
  0x59   : > { %1919 = vperm.xlu1 %5154, %v5509_v24  }
  0x5a   : > { %1923 = vperm.xlu0 %5153, %v5518_v25  }
  0x5d   : > { %5155 = vset.pattern.permute.xlu1 %v5282_v27 }
  0x5e   : > { %5156 = vset.pattern.permute.xlu0 %v5282_v27  ;;  %2139 = vperm.xlu1 %5155, %v5430_v10  }
  0x5f   : > { %2143 = vperm.xlu0 %5156, %v5433_v11  }
  0x62   : > { %2147 = vperm.xlu1 %5155, %v5436_v12  }
  0x63   : > { %2155 = vperm.xlu0 %5156, %v5449_v14  }
  0x66   : > { %2151 = vperm.xlu1 %5155, %v5446_v13  }
  0x67   : > { %2163 = vperm.xlu0 %5156, %v5461_v16  }
  0x6a   : > { %2159 = vperm.xlu1 %5155, %v5458_v15  }
  0x6b   : > { %2171 = vperm.xlu0 %5156, %v5473_v18  }
  0x6e   : > { %2167 = vperm.xlu1 %5155, %v5470_v17  }
  0x6f   : > { %2179 = vperm.xlu0 %5156, %v5485_v20  }
  0x72   : > { %2175 = vperm.xlu1 %5155, %v5482_v19  }
  0x73   : > { %2187 = vperm.xlu0 %5156, %v5497_v22  }
  0x76   : > { %2183 = vperm.xlu1 %5155, %v5494_v21  }
  0x77   : > { %2195 = vperm.xlu0 %5156, %v5509_v24  }
  0x7a   : > { %2191 = vperm.xlu1 %5155, %v5506_v23  }
  0x7b   : > { %5157 = vset.pattern.permute.xlu0 %v5283_v28 }
  0x7c   : > { %2415 = vperm.xlu0 %5157, %v5430_v10  }
  0x7e   : > { %2199 = vperm.xlu1 %5155, %v5518_v25  }
  0x80   : > { %2427 = vperm.xlu0 %5157, %v5446_v13  }
  0x82   : > { %5158 = vset.pattern.permute.xlu1 %v5283_v28 }
  0x83   : > { %2419 = vperm.xlu1 %5158, %v5433_v11  }
  0x84   : > { %2435 = vperm.xlu0 %5157, %v5458_v15  }
  0x87   : > { %2423 = vperm.xlu1 %5158, %v5436_v12  }
  0x88   : > { %2443 = vperm.xlu0 %5157, %v5470_v17  }
  0x8b   : > { %2431 = vperm.xlu1 %5158, %v5449_v14  }
  0x8c   : > { %2451 = vperm.xlu0 %5157, %v5482_v19  }
  0x8f   : > { %2439 = vperm.xlu1 %5158, %v5461_v16  }
  0x90   : > { %2459 = vperm.xlu0 %5157, %v5494_v21  }
  0x93   : > { %2447 = vperm.xlu1 %5158, %v5473_v18  }
  0x94   : > { %2467 = vperm.xlu0 %5157, %v5506_v23  }
  0x97   : > { %2455 = vperm.xlu1 %5158, %v5485_v20  }
  0x98   : > { %2475 = vperm.xlu0 %5157, %v5518_v25  }
  0x9b   : > { %2463 = vperm.xlu1 %5158, %v5497_v22   ;;  %v5596_v32 = vpop.permute.xlu1 %1611 }
  0x9c   : > { %5162 = vset.pattern.permute.xlu0 %v5284_v29 }
  0x9d   : > { %3247 = vperm.xlu0 %5162, %v5433_v11  }
  0x9f   : > { %2471 = vperm.xlu1 %5158, %v5509_v24   ;;  %v5606_v34 = vpop.permute.xlu1 %1615 }
  0xa1   : > { %3263 = vperm.xlu0 %5162, %v5458_v15  }
  0xa3   : > { %5159 = vset.pattern.permute.xlu1 %v5285_v30  ;;  %v5615_v42 = vpop.permute.xlu1 %1623 }
  0xa4   : > { %2691 = vperm.xlu1 %5159, %v5430_v10  }
  0xa5   : > { %3267 = vperm.xlu0 %5162, %v5461_v16  }
  0xa7   : > { %v5627_v53 = vpop.permute.xlu1 %1631 }
  0xa8   : > { %2699 = vperm.xlu1 %5159, %v5436_v12  }
  0xa9   : > { %5176 = vset.pattern.permute.xlu0 %v5286_v31 }
  0xaa   : > { %2967 = vperm.xlu0 %5176, %v5430_v10  }
  0xab   : > { %v5638_v62 = vpop.permute.xlu1 %1639 }
  0xac   : > { %2703 = vperm.xlu1 %5159, %v5446_v13   ;;  %7638 = vst [vmem:[#allocation5_spill] sm:$0xff] %v5638_v62 }
  0xae   : > { %2979 = vperm.xlu0 %5176, %v5446_v13  }
  0xaf   : > { %v5651_v27 = vpop.permute.xlu1 %1647 }
  0xb0   : > { %2711 = vperm.xlu1 %5159, %v5458_v15   ;;  %7639 = vst [vmem:[#allocation6_spill] sm:$0xff] %v5651_v27 }
  0xb2   : > { %2983 = vperm.xlu0 %5176, %v5449_v14  }
  0xb4   : > { %2719 = vperm.xlu1 %5159, %v5470_v17  }
  0xb6   : > { %2987 = vperm.xlu0 %5176, %v5458_v15  }
  0xb8   : > { %2727 = vperm.xlu1 %5159, %v5482_v19  }
  0xba   : > { %3007 = vperm.xlu0 %5176, %v5485_v20  }
  0xbc   : > { %2735 = vperm.xlu1 %5159, %v5494_v21  }
  0xbe   : > { %3011 = vperm.xlu0 %5176, %v5494_v21  }
  0xc0   : > { %5160 = vset.pattern.permute.xlu1 %v5286_v31 }
  0xc1   : > { %2971 = vperm.xlu1 %5160, %v5433_v11  }
  0xc2   : > { %5187 = vset.pattern.permute.xlu0 %v5285_v30 }
  0xc3   : > { %2695 = vperm.xlu0 %5187, %v5433_v11  }
  0xc5   : > { %5161 = vset.pattern.permute.xlu1 %v5284_v29 }
  0xc6   : > { %3243 = vperm.xlu1 %5161, %v5430_v10  }
  0xc7   : > { %2707 = vperm.xlu0 %5187, %v5449_v14  }
  0xca   : > { %5163 = vset.pattern.permute.xlu1 %v5286_v31 }
  0xcb   : > { %2715 = vperm.xlu0 %5187, %v5461_v16   ;;  %2975 = vperm.xlu1 %5163, %v5436_v12  }
  0xcf   : > { %2723 = vperm.xlu0 %5187, %v5473_v18   ;;  %5164 = vset.pattern.permute.xlu1 %v7625_v39 }
  0xd0   : > { %3519 = vperm.xlu1 %5164, %v5430_v10  }
  0xd3   : > { %2731 = vperm.xlu0 %5187, %v5485_v20  }
  0xd4   : > { %3523 = vperm.xlu1 %5164, %v5433_v11  }
  0xd7   : > { %2747 = vperm.xlu0 %5187, %v5509_v24  }
  0xd8   : > { %5165 = vset.pattern.permute.xlu1 %v5284_v29 }
  0xd9   : > { %3251 = vperm.xlu1 %5165, %v5436_v12  }
  0xdb   : > { %2751 = vperm.xlu0 %5187, %v5518_v25  }
  0xdd   : > { %3255 = vperm.xlu1 %5165, %v5446_v13  }
  0xdf   : > { %5199 = vset.pattern.permute.xlu0 %v7623_v3 }
  0xe0   : > { %3795 = vperm.xlu0 %5199, %v5430_v10  }
  0xe1   : > { %5166 = vset.pattern.permute.xlu1 %v7623_v3 }
  0xe2   : > { %3799 = vperm.xlu1 %5166, %v5433_v11  }
  0xe4   : > { %3815 = vperm.xlu0 %5199, %v5458_v15  }
  0xe6   : > { %5167 = vset.pattern.permute.xlu1 %v7625_v39 }
  0xe7   : > { %3527 = vperm.xlu1 %5167, %v5436_v12  }
  0xf0   : > { %v4897_v35 = vpop.f32.mrb[0].mxu0 }
  0xf1   : > { %v560_v36 = vadd.f32 %v4897_v35, %v5604_v33  ;;  %v554_v37 = vpop.f32.mrb[1].mxu0 }
  0xf2   : > { %v555_v38 = vadd.f32 %v5604_v33, %v554_v37 }
  0xf3   : > { %v634_v43 = vmax.f32 %v560_v36, 0.0 }
  0xf4   : > { %v633_v40 = vmax.f32 %v555_v38, 0.0  ;;  %v4900_v41 = vpop.f32.mrb[2].mxu0 }
  0xf5   : > { %v570_v44 = vadd.f32 %v4900_v41, %v5604_v33  ;;  %v564_v45 = vpop.f32.mrb[3].mxu0 }
  0xf6   : > { %v565_v46 = vadd.f32 %v5604_v33, %v564_v45  ;;  %4927 = vmatprep.mubr.msk.f32.mxu0 %vm660_vm4, %v633_v40 }
  0xf7   : > { %4928 = vmatmul.mubr.msk.f32.vlgmr.msra.gmra.mrb[16].mxu0 %vm660_vm4, %v634_v43  ;;  %v636_v49 = vmax.f32 %v570_v44, 0.0  ;;  %v5662_v44 = vpop.permute.xlu1 %1655 }
  0xf8   : > { %v635_v47 = vmax.f32 %v565_v46, 0.0  ;;  %v4903_v48 = vpop.f32.mrb[4].mxu0  ;;  %7640 = vst [vmem:[#allocation7_spill] sm:$0xff] %v5662_v44 }
  0xf9   : > { %v580_v50 = vadd.f32 %v4903_v48, %v5604_v33  ;;  %v574_v51 = vpop.f32.mrb[5].mxu0 }
  0xfa   : > { %v575_v52 = vadd.f32 %v5604_v33, %v574_v51  ;;  %4930 = vmatprep.mubr.msk.f32.mxu0 %vm660_vm4, %v635_v47 }
  0xfb   : > { %4931 = vmatmul.mubr.msk.f32.gmra.mrb[18].mxu0 %vm660_vm4, %v636_v49  ;;  %v638_v56 = vmax.f32 %v580_v50, 0.0  ;;  %v7621_v49 = vmov 9  }
  0xfc   : > { %v637_v54 = vmax.f32 %v575_v52, 0.0  ;;  %v4906_v55 = vpop.f32.mrb[6].mxu0  ;;  %5168 = vset.pattern.permute.xlu1 %v7621_v49  ;;  %v5671_v52 = vpop.permute.xlu1 %1663 }
  0xfd   : > { %v590_v57 = vadd.f32 %v4906_v55, %v5604_v33  ;;  %v584_v58 = vpop.f32.mrb[7].mxu0  ;;  %4071 = vperm.xlu1 %5168, %v5430_v10   ;;  %7641 = vst [vmem:[#allocation8_spill] sm:$0xff] %v5671_v52 }
  0xfe   : > { %v585_v59 = vadd.f32 %v5604_v33, %v584_v58  ;;  %4933 = vmatprep.mubr.msk.f32.mxu0 %vm660_vm4, %v637_v54 }
  0xff   : > { %4934 = vmatmul.mubr.msk.f32.gmra.mrb[20].mxu0 %vm660_vm4, %v638_v56  ;;  %v640_v63 = vmax.f32 %v590_v57, 0.0 }
 0x100   : > { %v639_v60 = vmax.f32 %v585_v59, 0.0  ;;  %v4909_v61 = vpop.f32.mrb[8].mxu0 }
 0x101   : > { %v600_v0 = vadd.f32 %v4909_v61, %v5604_v33  ;;  %v594_v1 = vpop.f32.mrb[9].mxu0  ;;  %5169 = vset.pattern.permute.xlu1 %v7625_v39  ;;  %v5721_v61 = vpop.permute.xlu0 %1603  ;;  %3819 = vperm.xlu0 %5199, %v5461_v16  }
 0x102   : > { %v595_v2 = vadd.f32 %v5604_v33, %v594_v1  ;;  %4936 = vmatprep.mubr.msk.f32.mxu0 %vm660_vm4, %v639_v60  ;;  %3531 = vperm.xlu1 %5169, %v5446_v13  }
 0x103   : > { %4937 = vmatmul.mubr.msk.f32.gmra.mrb[22].mxu0 %vm660_vm4, %v640_v63  ;;  %v642_v7 = vmax.f32 %v600_v0, 0.0 }
 0x104   : > { %v641_v4 = vmax.f32 %v595_v2, 0.0  ;;  %v4912_v6 = vpop.f32.mrb[10].mxu0 }
 0x105   : > { %v610_v8 = vadd.f32 %v4912_v6, %v5604_v33  ;;  %v604_v9 = vpop.f32.mrb[11].mxu0  ;;  %v5729_v0 = vpop.permute.xlu0 %1607  ;;  %3827 = vperm.xlu0 %5199, %v5473_v18   ;;  %v993_v6 = vld [vmem:[%s7612_s6 + $0x58] sm:$0xff] }
 0x106   : > { %v605_v26 = vadd.f32 %v5604_v33, %v604_v9  ;;  %4939 = vmatprep.mubr.msk.f32.mxu0 %vm660_vm4, %v641_v4  ;;  %5170 = vset.pattern.permute.xlu1 %v5284_v29  ;;  %v983_v4 = vld [vmem:[%s7612_s6 + $0x8] sm:$0xff] }
 0x107   : > { %4940 = vmatmul.mubr.msk.f32.gmra.mrb[24].mxu0 %vm660_vm4, %v642_v7  ;;  %v644_v36 = vmax.f32 %v610_v8, 0.0  ;;  %3259 = vperm.xlu1 %5170, %v5449_v14   ;;  %v985_v8 = vld [vmem:[%s7612_s6 + $0x18] sm:$0xff] }
 0x108   : > { %v643_v28 = vmax.f32 %v605_v26, 0.0  ;;  %v4915_v35 = vpop.f32.mrb[12].mxu0  ;;  %v5021_v26 = vpack.c.bf16 %v993_v6, %v983_v4  ;;  %v1002_v4 = vld [vmem:[%s7612_s6 + $0xa0] sm:$0xff]  ;;  %v1012_v6 = vld [vmem:[%s7612_s6 + $0xf0] sm:$0xff] }
 0x109   : > { %v620_v37 = vadd.f32 %v4915_v35, %v5604_v33  ;;  %v614_v38 = vpop.f32.mrb[13].mxu0  ;;  %v5736_v2 = vpop.permute.xlu0 %1619  ;;  %3831 = vperm.xlu0 %5199, %v5482_v19   ;;  %v992_v35 = vld [vmem:[%s7612_s6 + $0x50] sm:$0xff] }
 0x10a   : > { %v615_v40 = vadd.f32 %v5604_v33, %v614_v38  ;;  %4942 = vmatprep.mubr.msk.f32.mxu0 %vm660_vm4, %v643_v28  ;;  %v982_v28 = vld [vmem:[%s7612_s6] sm:$0xff]  ;;  %5022 = vmatprep.subr.bf16.mxu0 %v5021_v26  ;;  %v5027_v26 = vpack.c.bf16 %v1012_v6, %v1002_v4  ;;  %v989_v4 = vld [vmem:[%s7612_s6 + $0x38] sm:$0xff]  ;;  %v999_v6 = vld [vmem:[%s7612_s6 + $0x88] sm:$0xff] }
 0x10b   : > { %4943 = vmatmul.mubr.msk.f32.gmra.mrb[26].mxu0 %vm660_vm4, %v644_v36  ;;  %v646_v45 = vmax.f32 %v620_v37, 0.0  ;;  %5171 = vset.pattern.permute.xlu1 %v7623_v3  ;;  %v995_v36 = vld [vmem:[%s7612_s6 + $0x68] sm:$0xff]  ;;  %v5023_v37 = vpack.c.bf16 %v992_v35, %v982_v28  ;;  %v1004_v28 = vld [vmem:[%s7612_s6 + $0xb0] sm:$0xff]  ;;  %v1014_v35 = vld [vmem:[%s7612_s6 + $0x100] sm:$0xff] }
 0x10c   : > { %v645_v41 = vmax.f32 %v615_v40, 0.0  ;;  %v4918_v43 = vpop.f32.mrb[14].mxu0  ;;  %3803 = vperm.xlu1 %5171, %v5436_v12   ;;  %v5029_v38 = vpack.c.bf16 %v995_v36, %v985_v8  ;;  %v984_v40 = vld [vmem:[%s7612_s6 + $0x10] sm:$0xff] }
 0x10d   : > { %v630_v46 = vadd.f32 %v4918_v43, %v5604_v33  ;;  %v624_v47 = vpop.f32.mrb[15].mxu0  ;;  %v5747_v7 = vpop.permute.xlu0 %1627  ;;  %3839 = vperm.xlu0 %5199, %v5494_v21   ;;  %5024 = vmatpush1.bf16.msra.mxu0 %v5023_v37  ;;  %v5035_v37 = vpack.c.bf16 %v1014_v35, %v1004_v28 }
 0x10e   : > { %v625_v48 = vadd.f32 %v5604_v33, %v624_v47  ;;  %4945 = vmatprep.mubr.msk.f32.mxu1 %vm660_vm4, %v645_v41  ;;  %v5676_v33 = vpop.permute.xlu1 %1867  ;;  %v994_v41 = vld [vmem:[%s7612_s6 + $0x60] sm:$0xff]  ;;  %5030 = vmatprep.subr.bf16.mxu1 %v5029_v38  ;;  %v1013_v47 = vld [vmem:[%s7612_s6 + $0xf8] sm:$0xff] }
 0x10f   : > { %4946 = vmatmul.mubr.msk.f32.vlgmr.msra.gmra.mrb[0].mxu1 %vm660_vm4, %v646_v45  ;;  %v648_v51 = vmax.f32 %v630_v46, 0.0  ;;  %v5031_v43 = vpack.c.bf16 %v994_v41, %v984_v40  ;;  %v1003_v46 = vld [vmem:[%s7612_s6 + $0xa8] sm:$0xff]  ;;  %v7618_v40 = vmov 0.0  }
 0x110   : > { %v647_v50 = vmax.f32 %v625_v48, 0.0  ;;  %3807 = vperm.xlu1 %5171, %v5446_v13   ;;  %v1005_v48 = vld [vmem:[%s7612_s6 + $0xb8] sm:$0xff]  ;;  %1181 = vmatprep.mubr.f32.mxu0 %v7618_v40 }
 0x111   : > { %v5772_v45 = vpop.permute.xlu0 %1635  ;;  %5032 = vmatpush1.bf16.msra.mxu1 %v5031_v43  ;;  %3843 = vperm.xlu0 %5199, %v5497_v22  }
 0x112   : > { %4948 = vmatprep.mubr.msk.f32.mxu1 %vm660_vm4, %v647_v50  ;;  %v5680_v54 = vpop.permute.xlu1 %1871  ;;  %7648 = vst [vmem:[#allocation15_spill] sm:$0xff] %v5772_v45  ;;  %v5025_v50 = vpack.c.bf16 %v1013_v47, %v1003_v46  ;;  %v987_v47 = vld [vmem:[%s7612_s6 + $0x28] sm:$0xff] }
 0x113   : > { %4949 = vmatmul.mubr.msk.f32.gmra.mrb[2].mxu1 %vm660_vm4, %v648_v51  ;;  %v1015_v51 = vld [vmem:[%s7612_s6 + $0x108] sm:$0xff] }
 0x114   : > { %5172 = vset.pattern.permute.xlu1 %v5286_v31  ;;  %v5033_v8 = vpack.c.bf16 %v1015_v51, %v1005_v48  ;;  %5026 = vmatprep.subr.bf16.mxu0 %v5025_v50  ;;  %v997_v48 = vld [vmem:[%s7612_s6 + $0x78] sm:$0xff] }
 0x115   : > { %2991 = vperm.xlu1 %5172, %v5461_v16   ;;  %5028 = vmatpush1.bf16.msra.mxu0 %v5027_v26  ;;  %v5803_v38 = vpop.permute.xlu0 %1643  ;;  %v5037_v51 = vpack.c.bf16 %v997_v48, %v987_v47  ;;  %v5045_v26 = vpack.c.bf16 %v999_v6, %v989_v4 }
 0x116   : > { %v5685_v10 = vpop.permute.xlu1 %1879  ;;  %5034 = vmatprep.subr.bf16.mxu1 %v5033_v8  ;;  %7650 = vst [vmem:[#allocation17_spill] sm:$0xff] %v5803_v38  ;;  %1258 = vmatprep.mubr.f32.mxu1 %v7618_v40 }
 0x117   : > { %5036 = vmatpush1.bf16.msra.mxu1 %v5035_v37  ;;  %5206 = vset.pattern.permute.xlu0 %v7625_v39 }
 0x118   : > { %3535 = vperm.xlu0 %5206, %v5449_v14   ;;  %5038 = vmatprep.subr.bf16.mxu0 %v5037_v51 }
 0x119   : > { %5173 = vset.pattern.permute.xlu1 %v7621_v49  ;;  %v5813_v43 = vpop.permute.xlu0 %1651  ;;  %5046 = vmatprep.subr.bf16.mxu1 %v5045_v26 }
 0x11a   : > { %v5689_v55 = vpop.permute.xlu1 %1887  ;;  %4079 = vperm.xlu1 %5173, %v5436_v12   ;;  %7652 = vst [vmem:[#allocation19_spill] sm:$0xff] %v5813_v43 }
 0x11b   : > { %7642 = vst [vmem:[#allocation9_spill] sm:$0xff] %v5689_v55 }
 0x11c   : > { %3539 = vperm.xlu0 %5206, %v5458_v15  }
 0x11d   : > { %v5820_v46 = vpop.permute.xlu0 %1659 }
 0x11e   : > { %v5693_v56 = vpop.permute.xlu1 %1895  ;;  %5174 = vset.pattern.permute.xlu1 %v5286_v31  ;;  %7654 = vst [vmem:[#allocation21_spill] sm:$0xff] %v5820_v46 }
 0x11f   : > { %7643 = vst [vmem:[#allocation10_spill] sm:$0xff] %v5693_v56  ;;  %2995 = vperm.xlu1 %5174, %v5470_v17   ;;  %v7679_v56 = vmov 7  }
 0x120   : > { %3559 = vperm.xlu0 %5206, %v5485_v20  }
 0x121   : > { %v5838_v8 = vpop.permute.xlu0 %1863 }
 0x122   : > { %v5697_v57 = vpop.permute.xlu1 %1903 }
 0x123   : > { %7644 = vst [vmem:[#allocation11_spill] sm:$0xff] %v5697_v57  ;;  %5175 = vset.pattern.permute.xlu1 %v7621_v49  ;;  %v5977_v57 = vld [vmem:[%s7612_s6 + $0x118] sm:$0xff] }
 0x124   : > { %4083 = vperm.xlu1 %5175, %v5446_v13   ;;  %3563 = vperm.xlu0 %5206, %v5494_v21  }
 0x125   : > { %v5842_v28 = vpop.permute.xlu0 %1875 }
 0x126   : > { %v5702_v58 = vpop.permute.xlu1 %1911 }
 0x127   : > { %7645 = vst [vmem:[#allocation12_spill] sm:$0xff] %v5702_v58 }
 0x128   : > { %5177 = vset.pattern.permute.xlu1 %v7623_v3  ;;  %3575 = vperm.xlu0 %5206, %v5509_v24  }
 0x129   : > { %3811 = vperm.xlu1 %5177, %v5449_v14   ;;  %v5849_v37 = vpop.permute.xlu0 %1883 }
 0x12a   : > { %v5707_v12 = vpop.permute.xlu1 %1919  ;;  %7657 = vst [vmem:[#allocation24_spill] sm:$0xff] %v5849_v37 }
 0x12b   : > { %7646 = vst [vmem:[#allocation13_spill] sm:$0xff] %v5707_v12 }
 0x12c   : > { %5208 = vset.pattern.permute.xlu0 %v7621_v49 }
 0x12d   : > { %5178 = vset.pattern.permute.xlu1 %v5284_v29  ;;  %4075 = vperm.xlu0 %5208, %v5433_v11   ;;  %v5857_v48 = vpop.permute.xlu0 %1891 }
 0x12e   : > { %3271 = vperm.xlu1 %5178, %v5470_v17   ;;  %v5711_v59 = vpop.permute.xlu1 %2139  ;;  %7659 = vst [vmem:[#allocation26_spill] sm:$0xff] %v5857_v48 }
 0x131   : > { %4087 = vperm.xlu0 %5208, %v5449_v14  }
 0x132   : > { %5179 = vset.pattern.permute.xlu1 %v5286_v31  ;;  %v5715_v13 = vpop.permute.xlu1 %2147 }
 0x133   : > { %2999 = vperm.xlu1 %5179, %v5473_v18  }
 0x136   : > { %v5719_v60 = vpop.permute.xlu1 %2151 }
 0x137   : > { %5180 = vset.pattern.permute.xlu1 %v7625_v39 }
 0x138   : > { %3543 = vperm.xlu1 %5180, %v5461_v16  }
 0x13a   : > { %v5727_v63 = vpop.permute.xlu1 %2159 }
 0x13c   : > { %5181 = vset.pattern.permute.xlu1 %v5286_v31 }
 0x13d   : > { %3003 = vperm.xlu1 %5181, %v5482_v19  }
 0x13e   : > { %v5734_v1 = vpop.permute.xlu1 %2167 }
 0x141   : > { %5182 = vset.pattern.permute.xlu1 %v7625_v39 }
 0x142   : > { %3547 = vperm.xlu1 %5182, %v5470_v17   ;;  %v5753_v9 = vpop.permute.xlu1 %2175 }
 0x143   : > { %7647 = vst [vmem:[#allocation14_spill] sm:$0xff] %v5753_v9 }
 0x146   : > { %5183 = vset.pattern.permute.xlu1 %v5284_v29  ;;  %v5799_v36 = vpop.permute.xlu1 %2183 }
 0x147   : > { %3275 = vperm.xlu1 %5183, %v5473_v18   ;;  %7649 = vst [vmem:[#allocation16_spill] sm:$0xff] %v5799_v36 }
 0x14a   : > { %v5809_v41 = vpop.permute.xlu1 %2191 }
 0x14b   : > { %3279 = vperm.xlu1 %5183, %v5482_v19   ;;  %7651 = vst [vmem:[#allocation18_spill] sm:$0xff] %v5809_v41 }
 0x14f   : > { %5184 = vset.pattern.permute.xlu1 %v7623_v3 }
 0x150   : > { %3823 = vperm.xlu1 %5184, %v5470_v17  }
 0x154   : > { %5185 = vset.pattern.permute.xlu1 %v7625_v39 }
 0x155   : > { %3551 = vperm.xlu1 %5185, %v5473_v18  }
 0x159   : > { %5186 = vset.pattern.permute.xlu1 %v7621_v49 }
 0x15a   : > { %4095 = vperm.xlu1 %5186, %v5461_v16   ;;  %v5817_v16 = vpop.permute.xlu1 %2199 }
 0x15b   : > { %7653 = vst [vmem:[#allocation20_spill] sm:$0xff] %v5817_v16 }
 0x15e   : > { %5188 = vset.pattern.permute.xlu1 %v7625_v39  ;;  %v5829_v50 = vpop.permute.xlu1 %2419 }
 0x15f   : > { %3555 = vperm.xlu1 %5188, %v5482_v19   ;;  %7655 = vst [vmem:[#allocation22_spill] sm:$0xff] %v5829_v50 }
 0x162   : > { %v5846_v35 = vpop.permute.xlu1 %2423 }
 0x163   : > { %5189 = vset.pattern.permute.xlu1 %v5285_v30  ;;  %7656 = vst [vmem:[#allocation23_spill] sm:$0xff] %v5846_v35 }
 0x164   : > { %2739 = vperm.xlu1 %5189, %v5497_v22  }
 0x166   : > { %v5855_v47 = vpop.permute.xlu1 %2431 }
 0x167   : > { %7658 = vst [vmem:[#allocation25_spill] sm:$0xff] %v5855_v47 }
 0x168   : > { %5190 = vset.pattern.permute.xlu1 %v5284_v29 }
 0x169   : > { %3283 = vperm.xlu1 %5190, %v5485_v20  }
 0x16a   : > { %v5864_v51 = vpop.permute.xlu1 %2439 }
 0x16b   : > { %7661 = vst [vmem:[#allocation28_spill] sm:$0xff] %v5864_v51 }
 0x16d   : > { %5191 = vset.pattern.permute.xlu1 %v5285_v30  ;;  %v5862_v30 = vpop.permute.xlu0 %1899  ;;  %4091 = vperm.xlu0 %5208, %v5458_v15  }
 0x16e   : > { %2743 = vperm.xlu1 %5191, %v5506_v23   ;;  %7660 = vst [vmem:[#allocation27_spill] sm:$0xff] %v5862_v30  ;;  %v5872_v4 = vpop.permute.xlu1 %2447 }
 0x16f   : > { %7663 = vst [vmem:[#allocation30_spill] sm:$0xff] %v5872_v4 }
 0x171   : > { %v5868_v11 = vpop.permute.xlu0 %1907  ;;  %4099 = vperm.xlu0 %5208, %v5470_v17  }
 0x172   : > { %5192 = vset.pattern.permute.xlu1 %v5284_v29  ;;  %7662 = vst [vmem:[#allocation29_spill] sm:$0xff] %v5868_v11  ;;  %v5881_v15 = vpop.permute.xlu1 %2455  ;;  %v5961_v11 = vld [vmem:[%s7612_s6 + $0x80] sm:$0xff] }
 0x173   : > { %3287 = vperm.xlu1 %5192, %v5494_v21   ;;  %7666 = vst [vmem:[#allocation33_spill] sm:$0xff] %v5881_v15 }
 0x175   : > { %v5874_v14 = vpop.permute.xlu0 %1915  ;;  %4111 = vperm.xlu0 %5208, %v5485_v20  }
 0x176   : > { %7664 = vst [vmem:[#allocation31_spill] sm:$0xff] %v5874_v14 }
 0x177   : > { %5193 = vset.pattern.permute.xlu1 %v5286_v31 }
 0x178   : > { %3015 = vperm.xlu1 %5193, %v5497_v22  }
 0x179   : > { %v5879_v6 = vpop.permute.xlu0 %1923  ;;  %4115 = vperm.xlu0 %5208, %v5494_v21  }
 0x17a   : > { %7665 = vst [vmem:[#allocation32_spill] sm:$0xff] %v5879_v6 }
 0x17c   : > { %5194 = vset.pattern.permute.xlu1 %v7621_v49 }
 0x17d   : > { %4103 = vperm.xlu1 %5194, %v5473_v18   ;;  %v5886_v17 = vpop.permute.xlu0 %2143  ;;  %4123 = vperm.xlu0 %5208, %v5506_v23   ;;  %v5890_v18 = vpop.permute.xlu1 %2463 }
 0x17e   : > { %7667 = vst [vmem:[#allocation34_spill] sm:$0xff] %v5890_v18 }
 0x181   : > { %5195 = vset.pattern.permute.xlu1 %v5286_v31  ;;  %v5893_v26 = vpop.permute.xlu0 %2155  ;;  %4127 = vperm.xlu0 %5208, %v5509_v24   ;;  %v5898_v21 = vpop.permute.xlu1 %2471 }
 0x182   : > { %3019 = vperm.xlu1 %5195, %v5506_v23   ;;  %7668 = vst [vmem:[#allocation35_spill] sm:$0xff] %v5898_v21 }
 0x185   : > { %5213 = vset.pattern.permute.xlu0 %v7620_v5 }
 0x186   : > { %5196 = vset.pattern.permute.xlu1 %v7621_v49 }
 0x187   : > { %4107 = vperm.xlu1 %5196, %v5482_v19   ;;  %v5902_v19 = vpop.permute.xlu1 %2691 }
 0x188   : > { %7669 = vst [vmem:[#allocation36_spill] sm:$0xff] %v5902_v19 }
 0x18b   : > { %5197 = vset.pattern.permute.xlu1 %v5284_v29  ;;  %v5907_v40 = vpop.permute.xlu1 %2699 }
 0x18c   : > { %3291 = vperm.xlu1 %5197, %v5497_v22   ;;  %7670 = vst [vmem:[#allocation37_spill] sm:$0xff] %v5907_v40  ;;  %v7675_v40 = vmov 8  }
 0x190   : > { %5198 = vset.pattern.permute.xlu1 %v7623_v3 }
 0x191   : > { %3835 = vperm.xlu1 %5198, %v5485_v20   ;;  %v5911_v20 = vpop.permute.xlu1 %2703 }
 0x192   : > { %7671 = vst [vmem:[#allocation38_spill] sm:$0xff] %v5911_v20 }
 0x195   : > { %5200 = vset.pattern.permute.xlu1 %v5284_v29  ;;  %v5915_v5 = vpop.permute.xlu1 %2711 }
 0x196   : > { %3295 = vperm.xlu1 %5200, %v5506_v23   ;;  %7672 = vst [vmem:[#allocation39_spill] sm:$0xff] %v5915_v5 }
 0x199   : > { %v5919_v49 = vpop.permute.xlu1 %2719 }
 0x19a   : > { %5201 = vset.pattern.permute.xlu1 %v5286_v31  ;;  %7673 = vst [vmem:[#allocation40_spill] sm:$0xff] %v5919_v49 }
 0x19b   : > { %3023 = vperm.xlu1 %5201, %v5509_v24  }
 0x19d   : > { %v5929_v3 = vpop.permute.xlu1 %2727 }
 0x19e   : > { %7674 = vst [vmem:[#allocation41_spill] sm:$0xff] %v5929_v3 }
 0x19f   : > { %5202 = vset.pattern.permute.xlu1 %v7625_v39 }
 0x1a0   : > { %3567 = vperm.xlu1 %5202, %v5497_v22  }
 0x1a1   : > { %v5935_v21 = vpop.permute.xlu1 %2735 }
 0x1a2   : > { %7676 = vst [vmem:[#allocation42_spill] sm:$0xff] %v5935_v21  ;;  %v5956_v21 = vld [vmem:[%s7612_s6 + $0x30] sm:$0xff] }
 0x1a4   : > { %5203 = vset.pattern.permute.xlu1 %v5286_v31  ;;  %v5927_v31 = vld [vmem:[%s7611_s5] ss:$0 sm:$0xff] }
 0x1a5   : > { %3027 = vperm.xlu1 %5203, %v5518_v25   ;;  %v5963_v12 = vpop.permute.xlu1 %2971 }
 0x1a6   : > { %7678 = vst [vmem:[#allocation43_spill] sm:$0xff] %v5963_v12 }
 0x1a9   : > { %5204 = vset.pattern.permute.xlu1 %v7625_v39 }
 0x1aa   : > { %3571 = vperm.xlu1 %5204, %v5506_v23  }
 0x1ae   : > { %5205 = vset.pattern.permute.xlu1 %v5284_v29 }
 0x1af   : > { %3299 = vperm.xlu1 %5205, %v5509_v24  }
 0x1b3   : > { %3303 = vperm.xlu1 %5205, %v5518_v25  }
 0x1b7   : > { %5207 = vset.pattern.permute.xlu1 %v7675_v40 }
 0x1b8   : > { %3847 = vperm.xlu1 %5207, %v5506_v23   ;;  %v5949_v23 = vld [vmem:[%s7612_s6 + $0x70] sm:$0xff] }
 0x1ca   : > { %v4929_v16 = vpop.f32.mrb[16].mxu0 }
 0x1cb   : > { %v781_v39 = vadd.f32 %v4929_v16, %v5927_v31  ;;  %v775_v20 = vpop.f32.mrb[17].mxu0 }
 0x1cc   : > { %v776_v49 = vadd.f32 %v5927_v31, %v775_v20  ;;  %v5944_v20 = vld [vmem:[%s7612_s6 + $0x20] sm:$0xff] }
 0x1cd   : > { %v855_v29 = vmax.f32 %v781_v39, 0.0  ;;  %v7677_v39 = vmov 9  }
 0x1ce   : > { %v854_v5 = vmax.f32 %v776_v49, 0.0  ;;  %v4932_v19 = vpop.f32.mrb[18].mxu0  ;;  %5209 = vset.pattern.permute.xlu1 %v7677_v39 }
 0x1cf   : > { %v877_v15 = vsel %vm660_vm4, %v855_v29, -inf  ;;  %v791_v18 = vadd.f32 %v4932_v19, %v5927_v31  ;;  %v785_v3 = vpop.f32.mrb[19].mxu0  ;;  %4119 = vperm.xlu1 %5209, %v5497_v22  }
 0x1d0   : > { %v878_v4 = vrot.slane %v877_v15, 4  ;;  %v870_v16 = vsel %vm660_vm4, %v854_v5, -inf  ;;  %v786_v6 = vadd.f32 %v5927_v31, %v785_v3 }
 0x1d1   : > { %v871_v49 = vrot.slane %v870_v16, 4  ;;  %v857_v19 = vmax.f32 %v791_v18, 0.0 }
 0x1d2   : > { %v879_v29 = vmax.f32 %v877_v15, %v878_v4  ;;  %v856_v5 = vmax.f32 %v786_v6, 0.0  ;;  %v4935_v3 = vpop.f32.mrb[20].mxu0  ;;  %v5972_v15 = vld [vmem:[%s7612_s6 + $0xc8] sm:$0xff] }
 0x1d3   : > { %v872_v14 = vmax.f32 %v870_v16, %v871_v49  ;;  %v891_v18 = vsel %vm660_vm4, %v857_v19, -inf  ;;  %v801_v22 = vadd.f32 %v4935_v3, %v5927_v31  ;;  %v795_v4 = vpop.f32.mrb[21].mxu0  ;;  %5210 = vset.pattern.permute.xlu1 %v7679_v56 }
 0x1d4   : > { %v880_v12 = vrot.slane %v879_v29, 2  ;;  %v892_v16 = vrot.slane %v891_v18, 4  ;;  %v884_v49 = vsel %vm660_vm4, %v856_v5, -inf  ;;  %v796_v19 = vadd.f32 %v5927_v31, %v795_v4  ;;  %3579 = vperm.xlu1 %5210, %v5518_v25  }
 0x1d5   : > { %v873_v3 = vrot.slane %v872_v14, 2  ;;  %v885_v30 = vrot.slane %v884_v49, 4  ;;  %v859_v58 = vmax.f32 %v801_v22, 0.0 }
 0x1d6   : > { %v881_v36 = vmax.f32 %v879_v29, %v880_v12  ;;  %v893_v41 = vmax.f32 %v891_v18, %v892_v16  ;;  %v858_v9 = vmax.f32 %v796_v19, 0.0  ;;  %v4938_v52 = vpop.f32.mrb[22].mxu0  ;;  %v5990_v18 = vpop.permute.xlu1 %3243 }
 0x1d7   : > { %v874_v5 = vmax.f32 %v872_v14, %v873_v3  ;;  %v886_v4 = vmax.f32 %v884_v49, %v885_v30  ;;  %v905_v46 = vsel %vm660_vm4, %v859_v58, -inf  ;;  %v811_v22 = vadd.f32 %v4938_v52, %v5927_v31  ;;  %v805_v6 = vpop.f32.mrb[23].mxu0  ;;  %7680 = vst [vmem:[#allocation44_spill] sm:$0xff] %v5990_v18  ;;  %v5998_v18 = vld [vmem:[%s7612_s6 + $0xd8] sm:$0xff] }
 0x1d8   : > { %v882_v44 = vrot.slane %v881_v36, 1  ;;  %v894_v56 = vrot.slane %v893_v41, 2  ;;  %v906_v12 = vrot.slane %v905_v46, 4  ;;  %v898_v29 = vsel %vm660_vm4, %v858_v9, -inf  ;;  %5211 = vset.pattern.permute.xlu1 %v7675_v40 }
 0x1d9   : > { %v875_v16 = vrot.slane %v874_v5, 1  ;;  %v887_v19 = vrot.slane %v886_v4, 2  ;;  %v899_v27 = vrot.slane %v898_v29, 4  ;;  %v861_v38 = vmax.f32 %v811_v22, 0.0  ;;  %3851 = vperm.xlu1 %5211, %v5509_v24  }
 0x1da   : > { %v883_v62 = vmax.f32 %v881_v36, %v882_v44  ;;  %v895_v14 = vmax.f32 %v893_v41, %v894_v56  ;;  %v907_v30 = vmax.f32 %v905_v46, %v906_v12  ;;  %v806_v58 = vadd.f32 %v5927_v31, %v805_v6  ;;  %v4941_v49 = vpop.f32.mrb[24].mxu0  ;;  %v6003_v44 = vld [vmem:[%s7612_s6 + $0x128] sm:$0xff] }
 0x1db   : > { %v876_v52 = vmax.f32 %v874_v5, %v875_v16  ;;  %v888_v3 = vmax.f32 %v886_v4, %v887_v19  ;;  %v900_v43 = vmax.f32 %v898_v29, %v899_v27  ;;  %v919_v9 = vsel %vm660_vm4, %v861_v38, -inf  ;;  %v815_v45 = vpop.f32.mrb[25].mxu0  ;;  %v6011_v16 = vpop.permute.xlu1 %2975 }
 0x1dc   : > { %v896_v36 = vrot.slane %v895_v14, 1  ;;  %v908_v40 = vrot.slane %v907_v30, 2  ;;  %v920_v41 = vrot.slane %v919_v9, 4  ;;  %v860_v46 = vmax.f32 %v806_v58, 0.0  ;;  %7681 = vst [vmem:[#allocation45_spill] sm:$0xff] %v6011_v16 }
 0x1dd   : > { %v1093_v27 = vsel %vm1092_vm5, %v883_v62, %v876_v52  ;;  %v889_v38 = vrot.slane %v888_v3, 1  ;;  %v901_v6 = vrot.slane %v900_v43, 2  ;;  %v821_v5 = vadd.f32 %v4941_v49, %v5927_v31  ;;  %3855 = vperm.xlu1 %5211, %v5518_v25  }
 0x1de   : > { %v909_v4 = vmax.f32 %v907_v30, %v908_v40  ;;  %v921_v22 = vmax.f32 %v919_v9, %v920_v41  ;;  %v912_v56 = vsel %vm660_vm4, %v860_v46, -inf  ;;  %v4944_v12 = vpop.f32.mrb[26].mxu0  ;;  %v897_v62 = vmax.f32 %v895_v14, %v896_v36 }
 0x1df   : > { %v890_v24 = vmax.f32 %v888_v3, %v889_v38  ;;  %v902_v19 = vmax.f32 %v900_v43, %v901_v6  ;;  %v913_v51 = vrot.slane %v912_v56, 4  ;;  %v863_v58 = vmax.f32 %v821_v5, 0.0  ;;  %v825_v47 = vpop.f32.mrb[27].mxu0 }
 0x1e0   : > { %v922_v52 = vrot.slane %v921_v22, 2  ;;  %v816_v30 = vadd.f32 %v5927_v31, %v815_v45  ;;  %v831_v49 = vadd.f32 %v4944_v12, %v5927_v31  ;;  %v910_v29 = vrot.slane %v909_v4, 1 }
 0x1e1   : > { %v1095_v9 = vsel %vm1094_vm6, %v890_v24, %v1093_v27  ;;  %v903_v40 = vrot.slane %v902_v19, 1  ;;  %v914_v41 = vmax.f32 %v912_v56, %v913_v51  ;;  %v933_v46 = vsel %vm660_vm4, %v863_v58, -inf  ;;  %5212 = vset.pattern.permute.xlu1 %v7677_v39  ;;  %v6022_v56 = vpop.permute.xlu1 %3519 }
 0x1e2   : > { %v1097_v43 = vsel %vm1096_vm7, %v897_v62, %v1095_v9  ;;  %v923_v3 = vmax.f32 %v921_v22, %v922_v52  ;;  %v934_v38 = vrot.slane %v933_v46, 4  ;;  %v4947_v6 = vpop.f32.mrb[0].mxu1  ;;  %v862_v14 = vmax.f32 %v816_v30, 0.0  ;;  %7682 = vst [vmem:[#allocation46_spill] sm:$0xff] %v6022_v56  ;;  %4131 = vperm.xlu1 %5212, %v5518_v25  }
 0x1e3   : > { %v904_v5 = vmax.f32 %v902_v19, %v903_v40  ;;  %v915_v16 = vrot.slane %v914_v41, 2  ;;  %v865_v36 = vmax.f32 %v831_v49, 0.0  ;;  %v835_v35 = vpop.f32.mrb[1].mxu1  ;;  %v826_v27 = vadd.f32 %v5927_v31, %v825_v47 }
 0x1e4   : > { %v924_v45 = vrot.slane %v923_v3, 1  ;;  %v935_v12 = vmax.f32 %v933_v46, %v934_v38  ;;  %v841_v51 = vadd.f32 %v4947_v6, %v5927_v31  ;;  %v926_v19 = vsel %vm660_vm4, %v862_v14, -inf }
 0x1e5   : > { %v1099_v22 = vsel %vm1098_vm8, %v904_v5, %v1097_v43  ;;  %v916_v24 = vmax.f32 %v914_v41, %v915_v16  ;;  %v947_v58 = vsel %vm660_vm4, %v865_v36, -inf  ;;  %v911_v62 = vmax.f32 %v909_v4, %v910_v29 }
 0x1e6   : > { %v936_v39 = vrot.slane %v935_v12, 2  ;;  %v927_v52 = vrot.slane %v926_v19, 4  ;;  %v948_v30 = vrot.slane %v947_v58, 4  ;;  %v4950_v49 = vpop.f32.mrb[2].mxu1  ;;  %v864_v9 = vmax.f32 %v826_v27, 0.0 }
 0x1e7   : > { %v917_v47 = vrot.slane %v916_v24, 1  ;;  %v867_v40 = vmax.f32 %v841_v51, 0.0  ;;  %v836_v46 = vadd.f32 %v5927_v31, %v835_v35  ;;  %v845_v38 = vpop.f32.mrb[3].mxu1  ;;  %v851_v41 = vadd.f32 %v4950_v49, %v5927_v31 }
 0x1e8   : > { %v937_v25 = vmax.f32 %v935_v12, %v936_v39  ;;  %v928_v43 = vmax.f32 %v926_v19, %v927_v52  ;;  %v949_v16 = vmax.f32 %v947_v58, %v948_v30  ;;  %v7683_v6 = vmov 0  }
 0x1e9   : > { %5214 = vset.pattern.permute.xlu1 %v7683_v6  ;;  %v925_v4 = vmax.f32 %v923_v3, %v924_v45  ;;  %v940_v29 = vsel %vm660_vm4, %v864_v9, -inf  ;;  %v961_v5 = vsel %vm660_vm4, %v867_v40, -inf  ;;  %v866_v14 = vmax.f32 %v836_v46, 0.0 }
 0x1ea   : > { %v938_v36 = vrot.slane %v937_v25, 1  ;;  %v929_v27 = vrot.slane %v928_v43, 2  ;;  %v950_v51 = vrot.slane %v949_v16, 2  ;;  %v941_v56 = vrot.slane %v940_v29, 4 }
 0x1eb   : > { %v962_v35 = vrot.slane %v961_v5, 4  ;;  %v954_v50 = vsel %vm660_vm4, %v866_v14, -inf  ;;  %v869_v12 = vmax.f32 %v851_v41, 0.0  ;;  %v846_v19 = vadd.f32 %v5927_v31, %v845_v38 }
 0x1ec   : > { %v918_v58 = vmax.f32 %v916_v24, %v917_v47  ;;  %v930_v39 = vmax.f32 %v928_v43, %v929_v27  ;;  %v951_v52 = vmax.f32 %v949_v16, %v950_v51  ;;  %v942_v30 = vmax.f32 %v940_v29, %v941_v56  ;;  %v1006_v56 = vld [vmem:[%s7612_s6 + $0xc0] sm:$0xff]  ;;  %v1001_v51 = vld [vmem:[%s7612_s6 + $0x98] sm:$0xff] }
 0x1ed   : > { %v963_v3 = vmax.f32 %v961_v5, %v962_v35  ;;  %v955_v45 = vrot.slane %v954_v50, 4  ;;  %v975_v49 = vsel %vm660_vm4, %v869_v12, -inf  ;;  %v868_v9 = vmax.f32 %v846_v19, 0.0 }
 0x1ee   : > { %v939_v40 = vmax.f32 %v937_v25, %v938_v36  ;;  %v931_v46 = vrot.slane %v930_v39, 1  ;;  %v943_v6 = vrot.slane %v942_v30, 2  ;;  %v976_v48 = vrot.slane %v975_v49, 4  ;;  %v1016_v25 = vld [vmem:[%s7612_s6 + $0x110] sm:$0xff] }
 0x1ef   : > { %v964_v55 = vrot.slane %v963_v3, 2  ;;  %v956_v37 = vmax.f32 %v954_v50, %v955_v45  ;;  %v968_v14 = vsel %vm660_vm4, %v868_v9, -inf  ;;  %v1101_v41 = vsel %vm1100_vm9, %v911_v62, %v1099_v22  ;;  %v1008_v22 = vld [vmem:[%s7612_s6 + $0xd0] sm:$0xff] }
 0x1f0   : > { %v932_v31 = vmax.f32 %v930_v39, %v931_v46  ;;  %v952_v24 = vrot.slane %v951_v52, 1  ;;  %v944_v47 = vmax.f32 %v942_v30, %v943_v6  ;;  %v977_v38 = vmax.f32 %v975_v49, %v976_v48  ;;  %v1018_v48 = vld [vmem:[%s7612_s6 + $0x120] sm:$0xff] }
 0x1f1   : > { %v965_v43 = vmax.f32 %v963_v3, %v964_v55  ;;  %v957_v16 = vrot.slane %v956_v37, 2  ;;  %v969_v29 = vrot.slane %v968_v14, 4  ;;  %v1103_v50 = vsel %vm1102_vm10, %v918_v58, %v1101_v41  ;;  %v991_v55 = vld [vmem:[%s7612_s6 + $0x48] sm:$0xff] }
 0x1f2   : > { %v1106_v62 = vsel %vm1092_vm5, %v939_v40, %v932_v31  ;;  %v945_v5 = vrot.slane %v944_v47, 1  ;;  %v978_v36 = vrot.slane %v977_v38, 2  ;;  %v1105_v27 = vsel %vm1104_vm11, %v925_v4, %v1103_v50  ;;  %v1010_v50 = vld [vmem:[%s7612_s6 + $0xe0] sm:$0xff] }
 0x1f3   : > { %v958_v35 = vmax.f32 %v956_v37, %v957_v16  ;;  %v970_v12 = vmax.f32 %v968_v14, %v969_v29  ;;  %4803 = vmatmul.mubr.msk.f32.vlgmr.msra.gmra.mrb[28].mxu0 %vm660_vm4, %v1105_v27  ;;  %4805 = vmatmul.mubr.msk.f32.vlgmr.msra.gmra.mrb[4].mxu1 %vm660_vm4, %v1105_v27  ;;  %v5043_v19 = vpack.c.bf16 %v1016_v25, %v1006_v56  ;;  %v966_v39 = vrot.slane %v965_v43, 1  ;;  %v1011_v25 = vld [vmem:[%s7612_s6 + $0xe8] sm:$0xff] }
 0x1f4   : > { %v946_v58 = vmax.f32 %v944_v47, %v945_v5  ;;  %v979_v30 = vmax.f32 %v977_v38, %v978_v36  ;;  %v7684_v4 = vpack.c.bf16 %v5949_v23, %v5944_v20  ;;  %v7685_v3 = vpack.c.bf16 %v5961_v11, %v5956_v21  ;;  %v6115_v5 = vpop.permute.xlu1 %3523 }
 0x1f5   : > { %v5051_v45 = vpack.c.bf16 %v1018_v48, %v1008_v22  ;;  %v953_v49 = vmax.f32 %v951_v52, %v952_v24  ;;  %v959_v37 = vrot.slane %v958_v35, 1  ;;  %v971_v9 = vrot.slane %v970_v12, 2  ;;  %v1020_v22 = vld [vmem:[%s7612_s6 + $0x130] sm:$0xff]  ;;  %7689 = vst [vmem:[#allocation47_spill] sm:$0xff] %v6115_v5 }
 0x1f6   : > { %5040 = vmatpush1.bf16.msra.mxu0 %v7684_v4  ;;  %5048 = vmatpush1.bf16.msra.mxu1 %v7685_v3  ;;  %v7686_v40 = vmov 0.0   ;;  %v5053_v46 = vpack.c.bf16 %v1001_v51, %v991_v55  ;;  %v1107_v6 = vsel %vm1094_vm6, %v946_v58, %v1106_v62  ;;  %v7687_v14 = vpack.c.bf16 %v5977_v57, %v5972_v15  ;;  %v6113_v62 = vpop.permute.xlu0 %2163 }
 0x1f7   : > { %1187 = vmatprep.mubr.f32.mxu0 %v7686_v40  ;;  %1264 = vmatprep.mubr.f32.mxu1 %v7686_v40  ;;  %v7688_v20 = vpack.c.bf16 %v6003_v44, %v5998_v18  ;;  %v960_v11 = vmax.f32 %v958_v35, %v959_v37  ;;  %v972_v21 = vmax.f32 %v970_v12, %v971_v9  ;;  %v980_v41 = vrot.slane %v979_v30, 1  ;;  %v990_v18 = vld [vmem:[%s7612_s6 + $0x40] sm:$0xff]  ;;  %v1000_v44 = vld [vmem:[%s7612_s6 + $0x90] sm:$0xff] }
 0x1f8   : > { %5042 = vmatprep.subr.bf16.mxu0 %v7687_v14  ;;  %v1108_v23 = vsel %vm1096_vm7, %v953_v49, %v1107_v6  ;;  %v967_v52 = vmax.f32 %v965_v43, %v966_v39  ;;  %v1021_v43 = vld [vmem:[%s7612_s6 + $0x138] sm:$0xff]  ;;  %v5055_v16 = vpack.c.bf16 %v1000_v44, %v990_v18  ;;  %v5059_v48 = vpack.c.bf16 %v1020_v22, %v1010_v50  ;;  %v6119_v55 = vpop.permute.xlu1 %3251  ;;  %v4285_v6 = vld [vmem:[%s7615_s9] sm:$0xff]  ;;  %v4286_v14 = vld [vmem:[%s7615_s9 + $0x8] sm:$0xff] }
 0x1f9   : > { %5050 = vmatprep.subr.bf16.mxu1 %v7688_v20  ;;  %v973_v31 = vrot.slane %v972_v21, 1  ;;  %v1109_v24 = vsel %vm1098_vm8, %v960_v11, %v1108_v23  ;;  %v981_v15 = vmax.f32 %v979_v30, %v980_v41  ;;  %v5057_v29 = vpack.c.bf16 %v1021_v43, %v1011_v25  ;;  %7690 = vst [vmem:[#allocation48_spill] sm:$0xff] %v6119_v55  ;;  %v4287_v44 = vld [vmem:[%s7615_s9 + $0x10] sm:$0xff] }
 0x1fa   : > { %5044 = vmatpush1.bf16.msra.mxu0 %v5043_v19  ;;  %5052 = vmatpush1.bf16.msra.mxu1 %v5051_v45  ;;  %v1110_v47 = vsel %vm1100_vm9, %v967_v52, %v1109_v24  ;;  %v6117_v36 = vpop.permute.xlu0 %2171  ;;  %v5061_v20 = vpack.c.bf16 %v4286_v14, %v4285_v6  ;;  %v1026_v6 = vlaneseq }
 0x1fb   : > { %5054 = vmatprep.subr.bf16.mxu0 %v5053_v46  ;;  %v974_v57 = vmax.f32 %v972_v21, %v973_v31 }
 0x1fc   : > { %v6123_v35 = vpop.permute.xlu1 %3255  ;;  %5062 = vmatprep.subr.bf16.mxu1 %v5061_v20 }
 0x1fd   : > { %v1111_v38 = vsel %vm1102_vm10, %v974_v57, %v1110_v47  ;;  %7691 = vst [vmem:[#allocation49_spill] sm:$0xff] %v6123_v35 }
 0x1fe   : > { %v1112_v56 = vsel %vm1104_vm11, %v981_v15, %v1111_v38  ;;  %v6121_v51 = vpop.permute.xlu0 %2179 }
 0x1ff   : > { %4804 = vmatmul.mubr.msk.f32.gmra.mrb[30].mxu0 %vm660_vm4, %v1112_v56  ;;  %4806 = vmatmul.mubr.msk.f32.gmra.mrb[6].mxu1 %vm660_vm4, %v1112_v56 }
 0x200   : > { %1335 = vmatprep.mubr.f32.mxu0 %v7686_v40  ;;  %1412 = vmatprep.mubr.f32.mxu1 %v7686_v40  ;;  %v6125_v12 = vpop.permute.xlu1 %3799 }
 0x201   : > { %7692 = vst [vmem:[#allocation50_spill] sm:$0xff] %v6125_v12 }
 0x202   : > { %v6127_v19 = vpop.permute.xlu0 %2187 }
 0x203   : > { %4807 = vmatmul.mubr.msk.f32.vlgmr.msra.gmra.mrb[32].mxu0 %vm660_vm4, %v1105_v27  ;;  %4809 = vmatmul.mubr.msk.f32.vlgmr.msra.gmra.mrb[8].mxu1 %vm660_vm4, %v1105_v27 }
 0x204   : > { %5056 = vmatpush1.bf16.msra.mxu0 %v5055_v16  ;;  %1341 = vmatprep.mubr.f32.mxu0 %v7686_v40 }
 0x205   : > { %1418 = vmatprep.mubr.f32.mxu1 %v7686_v40  ;;  %5058 = vmatprep.subr.bf16.mxu0 %v5057_v29 }
 0x206   : > { %v6131_v58 = vpop.permute.xlu0 %2195  ;;  %5064 = vmatpush3.bf16.msra.mxu1 %v5061_v20 }
 0x207   : > { %4808 = vmatmul.mubr.msk.f32.gmra.mrb[34].mxu0 %vm660_vm4, %v1112_v56  ;;  %4810 = vmatmul.mubr.msk.f32.gmra.mrb[10].mxu1 %vm660_vm4, %v1112_v56 }
 0x208   : > { %5060 = vmatpush1.bf16.msra.mxu0 %v5059_v48  ;;  %1489 = vmatprep.mubr.f32.mxu0 %v7686_v40 }
 0x20a   : > { %v6135_v30 = vpop.permute.xlu0 %2415 }
 0x20b   : > { %4811 = vmatmul.mubr.msk.f32.vlgmr.msra.gmra.mrb[36].mxu0 %vm660_vm4, %v1105_v27  ;;  %v6129_v27 = vpop.permute.xlu1 %3527 }
 0x20c   : > { %1495 = vmatprep.mubr.f32.mxu0 %v7686_v40  ;;  %7693 = vst [vmem:[#allocation51_spill] sm:$0xff] %v6129_v27 }
 0x20e   : > { %v6139_v3 = vpop.permute.xlu0 %2427 }
 0x20f   : > { %4812 = vmatmul.mubr.msk.f32.gmra.mrb[38].mxu0 %vm660_vm4, %v1112_v56  ;;  %v6133_v39 = vpop.permute.xlu1 %4071  ;;  %v4288_v56 = vld [vmem:[%s7615_s9 + $0x18] sm:$0xff] }
 0x210   : > { %7694 = vst [vmem:[#allocation52_spill] sm:$0xff] %v6133_v39  ;;  %v5065_v25 = vpack.c.bf16 %v4288_v56, %v4287_v44  ;;  %v1027_v44 = vshrl.u32 %v1026_v6, 7  ;;  %v4289_v56 = vld [vmem:[%s7615_s9 + $0x20] sm:$0xff] }
 0x211   : > { %v1022_v6 = vld [vmem:[%s7613_s7] sm:$0xff] }
 0x212   : > { %v6143_v49 = vpop.permute.xlu0 %2435  ;;  %5066 = vmatprep.subr.bf16.mxu1 %v5065_v25  ;;  %v1052_v12 = vsub.s32 6, %v1027_v44 }
 0x213   : > { %v6137_v4 = vpop.permute.xlu1 %3531  ;;  %5068 = vmatpush3.bf16.msra.mxu1 %v5065_v25  ;;  %v4290_v25 = vld [vmem:[%s7615_s9 + $0x28] sm:$0xff] }
 0x214   : > { %7695 = vst [vmem:[#allocation53_spill] sm:$0xff] %v6137_v4  ;;  %v6215_v4 = vsub.s32 0, %v1027_v44 }
 0x216   : > { %v6147_v9 = vpop.permute.xlu0 %2443 }
 0x217   : > { %v6141_v45 = vpop.permute.xlu1 %3259 }
 0x218   : > { %7696 = vst [vmem:[#allocation54_spill] sm:$0xff] %v6141_v45 }
 0x21a   : > { %v6151_v46 = vpop.permute.xlu0 %2451 }
 0x21b   : > { %v6145_v37 = vpop.permute.xlu1 %3803  ;;  %7699 = vst [vmem:[#allocation57_spill] sm:$0xff] %v6151_v46 }
 0x21c   : > { %7697 = vst [vmem:[#allocation55_spill] sm:$0xff] %v6145_v37  ;;  %v1040_v37 = vsub.s32 3, %v1027_v44 }
 0x21e   : > { %v6161_v21 = vpop.permute.xlu0 %2459 }
 0x21f   : > { %v6149_v40 = vpop.permute.xlu1 %3807  ;;  %7701 = vst [vmem:[#allocation59_spill] sm:$0xff] %v6161_v21 }
 0x220   : > { %7698 = vst [vmem:[#allocation56_spill] sm:$0xff] %v6149_v40 }
 0x222   : > { %v6165_v52 = vpop.permute.xlu0 %2467 }
 0x223   : > { %v6159_v11 = vpop.permute.xlu1 %2991  ;;  %7703 = vst [vmem:[#allocation61_spill] sm:$0xff] %v6165_v52 }
 0x224   : > { %7700 = vst [vmem:[#allocation58_spill] sm:$0xff] %v6159_v11 }
 0x226   : > { %v6169_v31 = vpop.permute.xlu0 %2475 }
 0x227   : > { %v6163_v23 = vpop.permute.xlu1 %4079  ;;  %7705 = vst [vmem:[#allocation63_spill] sm:$0xff] %v6169_v31  ;;  %v1044_v31 = vsub.s32 4, %v1027_v44 }
 0x228   : > { %7702 = vst [vmem:[#allocation60_spill] sm:$0xff] %v6163_v23  ;;  %v1032_v23 = vsub.s32 1, %v1027_v44 }
 0x229   : > { %v6238_v11 = vrot.slane %v1022_v6, %v1044_v31 }
 0x22a   : > { %v6173_v47 = vpop.permute.xlu0 %3247 }
 0x22b   : > { %v6167_v41 = vpop.permute.xlu1 %2995  ;;  %7707 = vst [vmem:[#allocation65_spill] sm:$0xff] %v6173_v47 }
 0x22c   : > { %7704 = vst [vmem:[#allocation62_spill] sm:$0xff] %v6167_v41 }
 0x22e   : > { %v6177_v15 = vpop.permute.xlu0 %3263 }
 0x22f   : > { %v6171_v24 = vpop.permute.xlu1 %4083  ;;  %7709 = vst [vmem:[#allocation67_spill] sm:$0xff] %v6177_v15 }
 0x230   : > { %7706 = vst [vmem:[#allocation64_spill] sm:$0xff] %v6171_v24  ;;  %v5069_v24 = vpack.c.bf16 %v4290_v25, %v4289_v56  ;;  %v6221_v56 = vrot.slane %v1022_v6, %v6215_v4 }
 0x232   : > { %v6181_v18 = vpop.permute.xlu0 %3267  ;;  %5070 = vmatprep.subr.bf16.mxu1 %v5069_v24 }
 0x233   : > { %v6175_v57 = vpop.permute.xlu1 %3811  ;;  %7711 = vst [vmem:[#allocation69_spill] sm:$0xff] %v6181_v18  ;;  %5072 = vmatpush3.bf16.msra.mxu1 %v5069_v24 }
 0x234   : > { %7708 = vst [vmem:[#allocation66_spill] sm:$0xff] %v6175_v57 }
 0x236   : > { %v6191_v16 = vpop.permute.xlu0 %2967 }
 0x237   : > { %v6179_v38 = vpop.permute.xlu1 %3271  ;;  %7713 = vst [vmem:[#allocation71_spill] sm:$0xff] %v6191_v16 }
 0x238   : > { %7710 = vst [vmem:[#allocation68_spill] sm:$0xff] %v6179_v38  ;;  %v5291_v38 = vmov 1966171168  }
 0x23a   : > { %v6195_v50 = vpop.permute.xlu0 %2979 }
 0x23b   : > { %v6189_v43 = vpop.permute.xlu1 %2999  ;;  %7715 = vst [vmem:[#allocation73_spill] sm:$0xff] %v6195_v50 }
 0x23c   : > { %7712 = vst [vmem:[#allocation70_spill] sm:$0xff] %v6189_v43  ;;  %v6227_v43 = vrot.slane %v1022_v6, %v1040_v37 }
 0x23e   : > { %v6199_v48 = vpop.permute.xlu0 %2983 }
 0x23f   : > { %v6193_v29 = vpop.permute.xlu1 %3543  ;;  %7717 = vst [vmem:[#allocation75_spill] sm:$0xff] %v6199_v48 }
 0x240   : > { %7714 = vst [vmem:[#allocation72_spill] sm:$0xff] %v6193_v29  ;;  %v1506_v29 = vunpack.c.l.s4 %v5291_v38  ;;  %v1048_v38 = vsub.s32 5, %v1027_v44 }
 0x242   : > { %v6203_v20 = vpop.permute.xlu0 %2987  ;;  %v1507_v39 = vunpack.c.0.s8 %v1506_v29 }
 0x243   : > { %v6197_v22 = vpop.permute.xlu1 %3003  ;;  %7719 = vst [vmem:[#allocation77_spill] sm:$0xff] %v6203_v20  ;;  %v6242_v20 = vrot.slane %v1022_v6, %v1048_v38 }
 0x244   : > { %7716 = vst [vmem:[#allocation74_spill] sm:$0xff] %v6197_v22  ;;  %v6225_v22 = vrot.slane %v1022_v6, %v1032_v23  ;;  %v6236_v29 = vsub.s32 %v1507_v39, %v1027_v44  ;;  %v4291_v39 = vld [vmem:[%s7615_s9 + $0x30] sm:$0xff] }
 0x245   : > { %7725 = vst [vmem:[#allocation83_spill] sm:$0xff] %v6242_v20 }
 0x246   : > { %v6213_v40 = vpop.permute.xlu0 %3007 }
 0x247   : > { %v6201_v14 = vpop.permute.xlu1 %3547  ;;  %7721 = vst [vmem:[#allocation79_spill] sm:$0xff] %v6213_v40  ;;  %v1056_v40 = vsub.s32 7, %v1027_v44 }
 0x248   : > { %7718 = vst [vmem:[#allocation76_spill] sm:$0xff] %v6201_v14  ;;  %v1036_v14 = vsub.s32 2, %v1027_v44 }
 0x249   : > { %v6246_v18 = vrot.slane %v1022_v6, %v1056_v40 }
 0x24a   : > { %v6223_v25 = vrot.slane %v1022_v6, %v1036_v14  ;;  %v6234_v24 = vpop.permute.xlu0 %3011  ;;  %v6240_v14 = vrot.slane %v1022_v6, %v1052_v12  ;;  %v4292_v12 = vld [vmem:[%s7615_s9 + $0x38] sm:$0xff] }
 0x24b   : > { %v6211_v57 = vpop.permute.xlu1 %3275  ;;  %7723 = vst [vmem:[#allocation81_spill] sm:$0xff] %v6234_v24  ;;  %7726 = vst [vmem:[#allocation84_spill] sm:$0xff] %v6246_v18  ;;  %v5073_v40 = vpack.c.bf16 %v4292_v12, %v4291_v39 }
 0x24c   : > { %7720 = vst [vmem:[#allocation78_spill] sm:$0xff] %v6211_v57  ;;  %v1023_v57 = vld [vmem:[%s7613_s7 + $0x8] sm:$0x3]  ;;  %7724 = vst [vmem:[#allocation82_spill] sm:$0xff] %v6240_v14 }
 0x24d   : > { %v6249_v24 = vrot.slane %v1023_v57, %v6215_v4  ;;  %5074 = vmatprep.subr.bf16.mxu1 %v5073_v40 }
 0x24e   : > { %5076 = vmatpush3.bf16.msra.mxu1 %v5073_v40 }
 0x24f   : > { %v6232_v27 = vpop.permute.xlu1 %3279  ;;  %7727 = vst [vmem:[#allocation85_spill] sm:$0xff] %v6249_v24 }
 0x250   : > { %7722 = vst [vmem:[#allocation80_spill] sm:$0xff] %v6232_v27 }
 0x2c6   : > { %v1183_v5 = vpop.f32.mrb[28].mxu0  ;;  %v1260_v41 = vpop.f32.mrb[4].mxu1 }
 0x2c7   : > { %v1184_v37 = vadd.f32 %v1183_v5, %v6221_v56  ;;  %v1261_v50 = vadd.f32 %v1260_v41, %v6223_v25  ;;  %v1185_v48 = vpop.f32.mrb[29].mxu0  ;;  %v1262_v16 = vpop.f32.mrb[5].mxu1  ;;  %v6261_v41 = vrot.slane %v1023_v57, %v1032_v23 }
 0x2c8   : > { %v1186_v31 = vadd.f32 %v1185_v48, %v6225_v22  ;;  %v6259_v5 = vadd.f32 %v1262_v16, %v6227_v43  ;;  %v6274_v23 = vpop.permute.xlu0 %2695  ;;  %v6276_v57 = vpop.permute.xlu1 %3823 }
 0x2c9   : > { %7728 = vst [vmem:[#allocation86_spill] sm:$0xff] %v6261_v41  ;;  %v1504_v44 = vcombine.high %v1184_v37, %v1184_v37  ;;  %v1511_v6 = vrot.slane %v1184_v37, %v6236_v29  ;;  %v2040_v38 = vcombine.high %v1261_v50, %v1261_v50  ;;  %v2047_v27 = vrot.slane %v1261_v50, %v6236_v29 }
 0x2ca   : > { %v1764_v24 = vcombine.high %v1186_v31, %v1186_v31  ;;  %v6266_v15 = vrot.slane %v1186_v31, %v6236_v29  ;;  %v6272_v16 = vrot.slane %v6259_v5, %v6236_v29  ;;  %7729 = vst [vmem:[#allocation87_spill] sm:$0xff] %v6274_v23  ;;  %7730 = vst [vmem:[#allocation88_spill] sm:$0xff] %v6276_v57 }
 0x2cb   : > { %v1518_v48 = vrot.slane %v1504_v44, %v6236_v29  ;;  %v1519_v37 = vcombine.high %v1511_v6, %v1511_v6  ;;  %v1527_v50 = vrot.slane %v1511_v6, %v6236_v29  ;;  %v2054_v39 = vrot.slane %v2040_v38, %v6236_v29 }
 0x2cc   : > { %v2055_v12 = vcombine.high %v2047_v27, %v2047_v27  ;;  %v2063_v31 = vrot.slane %v2047_v27, %v6236_v29  ;;  %v6283_v35 = vrot.slane %v1764_v24, %v6236_v29  ;;  %v6300_v23 = vpop.permute.xlu0 %2707 }
 0x2cd   : > { %v1520_v45 = vcombine.high %v1518_v48, %v1518_v48  ;;  %v1534_v57 = vrot.slane %v1518_v48, %v6236_v29  ;;  %v1541_v44 = vrot.slane %v1519_v37, %v6236_v29  ;;  %v1549_v55 = vcombine.high %v1527_v50, %v1527_v50  ;;  %7731 = vst [vmem:[#allocation89_spill] sm:$0xff] %v6300_v23 }
 0x2ce   : > { %v1669_v6 = vrot.slane %v1527_v50, %v6215_v4  ;;  %v2056_v47 = vcombine.high %v2054_v39, %v2054_v39  ;;  %v2070_v40 = vrot.slane %v2054_v39, %v6236_v29  ;;  %v2077_v38 = vrot.slane %v2055_v12, %v6236_v29  ;;  %v6302_v39 = vpop.permute.xlu1 %3551 }
 0x2cf   : > { %v1548_v27 = vrot.slane %v1520_v45, %v6236_v29  ;;  %v1550_v24 = vcombine.high %v1534_v57, %v1534_v57  ;;  %v1551_v18 = vcombine.high %v1541_v44, %v1541_v44  ;;  %v1673_v20 = vrot.slane %v1541_v44, %v6215_v4  ;;  %7732 = vst [vmem:[#allocation90_spill] sm:$0xff] %v6302_v39 }
 0x2d0   : > { %v1677_v41 = vrot.slane %v1549_v55, %v6215_v4  ;;  %v1685_v48 = vrot.slane %v1534_v57, %v6215_v4  ;;  %v6297_v37 = vmul.f32 %v1669_v6, %v5721_v61  ;;  %v2084_v50 = vrot.slane %v2056_v47, %v6236_v29  ;;  %v6359_v14 = vpop.permute.xlu0 %2715 }
 0x2d1   : > { %v1552_v12 = vcombine.high %v1548_v27, %v1548_v27  ;;  %v1681_v45 = vrot.slane %v1551_v18, %v6215_v4  ;;  %v1689_v21 = vrot.slane %v1548_v27, %v6215_v4  ;;  %v1693_v44 = vrot.slane %v1550_v24, %v6215_v4  ;;  %7736 = vst [vmem:[#allocation94_spill] sm:$0xff] %v6359_v14 }
 0x2d2   : > { %v6308_v55 = vmul.f32 %v1673_v20, %v5729_v0  ;;  %v6311_v57 = vmul.f32 %v1677_v41, %v5596_v32  ;;  %v6314_v61 = vmul.f32 %v1685_v48, %v5736_v2  ;;  %v2085_v47 = vcombine.high %v2063_v31, %v2063_v31  ;;  %v1189_v6 = vpop.f32.mrb[30].mxu0  ;;  %v6316_v23 = vpop.f32.mrb[6].mxu1 }
 0x2d3   : > { %v1697_v39 = vrot.slane %v1552_v12, %v6215_v4  ;;  %v6320_v18 = vmul.f32 %v1681_v45, %v5606_v34  ;;  %v6323_v27 = vmul.f32 %v1689_v21, %v5615_v42  ;;  %v6326_v0 = vmul.f32 %v1693_v44, %v5747_v7  ;;  %v6328_v32 = vpop.f32.mrb[31].mxu0  ;;  %v6330_v20 = vpop.f32.mrb[7].mxu1 }
 0x2d4   : > { %v2086_v2 = vcombine.high %v2070_v40, %v2070_v40  ;;  %v2087_v41 = vcombine.high %v2077_v38, %v2077_v38  ;;  %v2088_v24 = vcombine.high %v2084_v50, %v2084_v50  ;;  %v2205_v48 = vrot.slane %v2063_v31, %v6215_v4 }
 0x2d5   : > { %v6334_v12 = vmul.f32 %v1697_v39, %v5627_v53  ;;  %v2209_v34 = vrot.slane %v2077_v38, %v6215_v4  ;;  %v2213_v42 = vrot.slane %v2085_v47, %v6215_v4  ;;  %v2221_v21 = vrot.slane %v2070_v40, %v6215_v4 }
 0x2d6   : > { %v2217_v7 = vrot.slane %v2087_v41, %v6215_v4  ;;  %v2225_v45 = vrot.slane %v2084_v50, %v6215_v4  ;;  %v2229_v44 = vrot.slane %v2086_v2, %v6215_v4  ;;  %v2233_v52 = vrot.slane %v2088_v24, %v6215_v4  ;;  %v6343_v46 = vpop.f32.mrb[32].mxu0  ;;  %v6345_v31 = vpop.f32.mrb[8].mxu1 }
 0x2d7   : > { %7733 = vst [vmem:[#allocation91_spill] sm:$0xff] %v6345_v31  ;;  %v2282_v53 = vmul.f32 %v2205_v48, %v5711_v59  ;;  %v2283_v38 = vmul.f32 %v2209_v34, %v5886_v17  ;;  %v2284_v39 = vmul.f32 %v2213_v42, %v5715_v13  ;;  %v2286_v40 = vmul.f32 %v2221_v21, %v5893_v26  ;;  %v6351_v47 = vpop.f32.mrb[33].mxu0  ;;  %v6353_v41 = vpop.f32.mrb[9].mxu1 }
 0x2d8   : > { %7734 = vst [vmem:[#allocation92_spill] sm:$0xff] %v6351_v47  ;;  %7735 = vst [vmem:[#allocation93_spill] sm:$0xff] %v6353_v41  ;;  %v2285_v50 = vmul.f32 %v2217_v7, %v5719_v60  ;;  %v2287_v2 = vmul.f32 %v2225_v45, %v5727_v63  ;;  %v2288_v24 = vmul.f32 %v2229_v44, %v6113_v62  ;;  %v6361_v59 = vpop.permute.xlu1 %4095  ;;  %v7744_v47 = vld [vmem:[#allocation24_spill] sm:$0xff] }
 0x2d9   : > { %v2289_v31 = vmul.f32 %v2233_v52, %v5734_v1  ;;  %7737 = vst [vmem:[#allocation95_spill] sm:$0xff] %v6361_v59  ;;  %v1780_v13 = vcombine.high %v6283_v35, %v6283_v35  ;;  %v1787_v17 = vrot.slane %v6266_v15, %v6236_v29  ;;  %v1794_v26 = vrot.slane %v6283_v35, %v6236_v29 }
 0x2da   : > { %v7738_v60 = vcombine.high %v6266_v15, %v6266_v15  ;;  %v7739_v1 = vcombine.high %v6259_v5, %v6259_v5  ;;  %v2331_v52 = vcombine.high %v6272_v16, %v6272_v16  ;;  %v6381_v48 = vrot.slane %v6272_v16, %v6236_v29  ;;  %v6386_v35 = vpop.f32.mrb[34].mxu0  ;;  %v6388_v42 = vpop.f32.mrb[10].mxu1 }
 0x2db   : > { %v6384_v34 = vadd.f32 %v1189_v6, %v6221_v56  ;;  %7740 = vst [vmem:[#allocation96_spill] sm:$0xff] %v6386_v35  ;;  %7741 = vst [vmem:[#allocation97_spill] sm:$0xff] %v6388_v42  ;;  %v1808_v15 = vrot.slane %v1780_v13, %v6236_v29  ;;  %v1809_v21 = vcombine.high %v1787_v17, %v1787_v17  ;;  %v6391_v45 = vpop.f32.mrb[35].mxu0  ;;  %v6393_v44 = vpop.f32.mrb[11].mxu1 }
 0x2dc   : > { %v1801_v63 = vrot.slane %v7738_v60, %v6236_v29  ;;  %v2330_v62 = vrot.slane %v7739_v1, %v6236_v29  ;;  %v1810_v7 = vcombine.high %v1794_v26, %v1794_v26  ;;  %7742 = vst [vmem:[#allocation98_spill] sm:$0xff] %v6391_v45  ;;  %7743 = vst [vmem:[#allocation99_spill] sm:$0xff] %v6393_v44 }
 0x2dd   : > { %v1929_v60 = vrot.slane %v1787_v17, %v6215_v4  ;;  %v1945_v56 = vrot.slane %v1794_v26, %v6215_v4  ;;  %v1812_v1 = vcombine.high %v1808_v15, %v1808_v15  ;;  %v1937_v59 = vrot.slane %v1809_v21, %v6215_v4 }
 0x2de   : > { %v1811_v5 = vcombine.high %v1801_v63, %v1801_v63  ;;  %v1933_v16 = vrot.slane %v1801_v63, %v6215_v4  ;;  %v2332_v6 = vcombine.high %v2330_v62, %v2330_v62  ;;  %v1949_v13 = vrot.slane %v1808_v15, %v6215_v4  ;;  %v6405_v41 = vpop.f32.mrb[36].mxu0  ;;  %v6413_v15 = vpop.permute.xlu0 %2723 }
 0x2df   : > { %v1953_v35 = vrot.slane %v1810_v7, %v6215_v4  ;;  %v2006_v45 = vmul.f32 %v1929_v60, %v5838_v8  ;;  %v2010_v17 = vmul.f32 %v1945_v56, %v5685_v10  ;;  %v1957_v26 = vrot.slane %v1812_v1, %v6215_v4  ;;  %v6411_v14 = vpop.f32.mrb[37].mxu0  ;;  %v6415_v7 = vpop.permute.xlu1 %3555  ;;  %v7746_v8 = vld [vmem:[#allocation9_spill] sm:$0xff]  ;;  %v7747_v56 = vld [vmem:[#allocation26_spill] sm:$0xff] }
 0x2e0   : > { %v1941_v42 = vrot.slane %v1811_v5, %v6215_v4  ;;  %v2007_v44 = vmul.f32 %v1933_v16, %v5676_v33  ;;  %v2008_v63 = vmul.f32 %v1937_v59, %v5680_v54  ;;  %v2011_v5 = vmul.f32 %v1949_v13, %v7744_v47  ;;  %7745 = vst [vmem:[#allocation24_spill] sm:$0xff] %v6415_v7 }
 0x2e1   : > { %v2012_v33 = vmul.f32 %v1953_v35, %v7746_v8  ;;  %v2022_v10 = vadd.f32 %v2006_v45, %v6297_v37  ;;  %v2026_v16 = vadd.f32 %v2010_v17, %v6314_v61  ;;  %v2013_v54 = vmul.f32 %v1957_v26, %v7747_v56 }
 0x2e2   : > { %v2009_v21 = vmul.f32 %v1941_v42, %v5842_v28  ;;  %v2023_v60 = vadd.f32 %v2007_v44, %v6308_v55  ;;  %v2024_v28 = vadd.f32 %v2008_v63, %v6311_v57  ;;  %v2027_v59 = vadd.f32 %v2011_v5, %v6323_v27  ;;  %v6426_v35 = vpop.f32.mrb[38].mxu0  ;;  %v7748_v5 = vld [vmem:[#allocation22_spill] sm:$0xff] }
 0x2e3   : > { %v2028_v42 = vadd.f32 %v2012_v33, %v6326_v0  ;;  %v2298_v1 = vadd.f32 %v2282_v53, %v2022_v10  ;;  %v2302_v7 = vadd.f32 %v2286_v40, %v2026_v16  ;;  %v2029_v37 = vadd.f32 %v2013_v54, %v6334_v12  ;;  %v6429_v44 = vpop.f32.mrb[39].mxu0  ;;  %v6442_v40 = vpop.permute.xlu1 %2739  ;;  %v7749_v33 = vld [vmem:[#allocation23_spill] sm:$0xff] }
 0x2e4   : > { %v2025_v47 = vadd.f32 %v2009_v21, %v6320_v18  ;;  %v2299_v13 = vadd.f32 %v2283_v38, %v2023_v60  ;;  %v2300_v55 = vadd.f32 %v2284_v39, %v2024_v28  ;;  %v2303_v61 = vadd.f32 %v2287_v2, %v2027_v59  ;;  %v6440_v39 = vpop.permute.xlu0 %2731  ;;  %v7750_v60 = vld [vmem:[#allocation25_spill] sm:$0xff] }
 0x2e5   : > { %v2304_v17 = vadd.f32 %v2288_v24, %v2028_v42  ;;  %v2346_v57 = vrot.slane %v2330_v62, %v6236_v29  ;;  %v2353_v18 = vrot.slane %v2331_v52, %v6236_v29  ;;  %v2360_v27 = vrot.slane %v2332_v6, %v6236_v29 }
 0x2e6   : > { %v2301_v45 = vadd.f32 %v2285_v50, %v2025_v47  ;;  %v2305_v0 = vadd.f32 %v2289_v31, %v2029_v37  ;;  %v2361_v53 = vcombine.high %v6381_v48, %v6381_v48  ;;  %v2481_v38 = vrot.slane %v6381_v48, %v6215_v4  ;;  %v7751_v47 = vld [vmem:[#allocation28_spill] sm:$0xff] }
 0x2e7   : > { %v1553_v12 = vcombine.high %v6384_v34, %v6384_v34  ;;  %v2362_v50 = vcombine.high %v2346_v57, %v2346_v57  ;;  %v2363_v2 = vcombine.high %v2353_v18, %v2353_v18  ;;  %v2364_v24 = vcombine.high %v2360_v27, %v2360_v27 }
 0x2e8   : > { %v2485_v62 = vrot.slane %v2353_v18, %v6215_v4  ;;  %v2489_v31 = vrot.slane %v2361_v53, %v6215_v4  ;;  %v2497_v52 = vrot.slane %v2346_v57, %v6215_v4  ;;  %v2501_v6 = vrot.slane %v2360_v27, %v6215_v4 }
 0x2e9   : > { %v2558_v48 = vmul.f32 %v2481_v38, %v6135_v30  ;;  %v2493_v26 = vrot.slane %v2363_v2, %v6215_v4  ;;  %v2505_v63 = vrot.slane %v2362_v50, %v6215_v4  ;;  %v2509_v21 = vrot.slane %v2364_v24, %v6215_v4 }
 0x2ea   : > { %v2559_v8 = vmul.f32 %v2485_v62, %v7748_v5  ;;  %v2560_v10 = vmul.f32 %v2489_v31, %v7749_v33  ;;  %v2562_v16 = vmul.f32 %v2497_v52, %v7750_v60  ;;  %v2563_v56 = vmul.f32 %v2501_v6, %v6143_v49  ;;  %v6471_v49 = vpop.permute.xlu0 %2747  ;;  %v7757_v33 = vld [vmem:[#allocation5_spill] sm:$0xff] }
 0x2eb   : > { %v6456_v54 = vadd.f32 %v2558_v48, %v2298_v1  ;;  %v2561_v28 = vmul.f32 %v2493_v26, %v6139_v3  ;;  %v2564_v30 = vmul.f32 %v2505_v63, %v7751_v47  ;;  %v2565_v59 = vmul.f32 %v2509_v21, %v6147_v9  ;;  %7752 = vst [vmem:[#allocation9_spill] sm:$0xff] %v6471_v49  ;;  %v6473_v1 = vpop.permute.xlu1 %3283  ;;  %v7756_v21 = vld [vmem:[#allocation19_spill] sm:$0xff]  ;;  %v7758_v60 = vld [vmem:[#allocation17_spill] sm:$0xff] }
 0x2ec   : > { %v6461_v42 = vadd.f32 %v2559_v8, %v2299_v13  ;;  %v6463_v37 = vadd.f32 %v2560_v10, %v2300_v55  ;;  %v6465_v57 = vadd.f32 %v2562_v16, %v2302_v7  ;;  %v6467_v18 = vadd.f32 %v2563_v56, %v2303_v61  ;;  %v7759_v47 = vld [vmem:[#allocation7_spill] sm:$0xff] }
 0x2ed   : > { %v1560_v27 = vrot.slane %v6384_v34, %v6236_v29  ;;  %v6475_v3 = vadd.f32 %v2561_v28, %v2301_v45  ;;  %v6477_v53 = vadd.f32 %v2564_v30, %v2304_v17  ;;  %v6479_v9 = vadd.f32 %v2565_v59, %v2305_v0  ;;  %v7760_v59 = vld [vmem:[#allocation21_spill] sm:$0xff] }
 0x2ee   : > { %v1567_v13 = vrot.slane %v1553_v12, %v6236_v29  ;;  %v1267_v61 = vadd.f32 %v6316_v23, %v6223_v25  ;;  %v1192_v34 = vadd.f32 %v6328_v32, %v6225_v22  ;;  %v6490_v45 = vadd.f32 %v6330_v20, %v6227_v43  ;;  %v6506_v52 = vpop.permute.xlu0 %2751 }
 0x2ef   : > { %7753 = vst [vmem:[#allocation26_spill] sm:$0xff] %v6479_v9  ;;  %v1568_v55 = vcombine.high %v1560_v27, %v1560_v27  ;;  %v1576_v7 = vrot.slane %v1560_v27, %v6236_v29  ;;  %v6494_v17 = vadd.f32 %v6343_v46, %v6238_v11  ;;  %v7754_v46 = vld [vmem:[#allocation15_spill] sm:$0xff]  ;;  %7755 = vst [vmem:[#allocation22_spill] sm:$0xff] %v6506_v52  ;;  %v6508_v6 = vpop.permute.xlu1 %2743  ;;  %v7772_v9 = vld [vmem:[#allocation12_spill] sm:$0xff] }
 0x2f0   : > { %v1569_v38 = vcombine.high %v1567_v13, %v1567_v13  ;;  %v1583_v50 = vrot.slane %v1567_v13, %v6236_v29  ;;  %v2089_v25 = vcombine.high %v1267_v61, %v1267_v61  ;;  %v2096_v24 = vrot.slane %v1267_v61, %v6236_v29  ;;  %v7775_v52 = vld [vmem:[#allocation31_spill] sm:$0xff] }
 0x2f1   : > { %v1590_v0 = vrot.slane %v1568_v55, %v6236_v29  ;;  %v1598_v12 = vcombine.high %v1576_v7, %v1576_v7  ;;  %v1701_v2 = vrot.slane %v1576_v7, %v6215_v4  ;;  %v7761_v55 = vld [vmem:[#allocation6_spill] sm:$0xff] }
 0x2f2   : > { %v1597_v23 = vrot.slane %v1569_v38, %v6236_v29  ;;  %v1599_v22 = vcombine.high %v1583_v50, %v1583_v50  ;;  %v1717_v32 = vrot.slane %v1583_v50, %v6215_v4  ;;  %v2103_v56 = vrot.slane %v2089_v25, %v6236_v29 }
 0x2f3   : > { %v1600_v62 = vcombine.high %v1590_v0, %v1590_v0  ;;  %v1705_v43 = vrot.slane %v1590_v0, %v6215_v4  ;;  %v1709_v20 = vrot.slane %v1598_v12, %v6215_v4  ;;  %v6504_v31 = vmul.f32 %v1701_v2, %v7754_v46  ;;  %v7762_v0 = vld [vmem:[#allocation8_spill] sm:$0xff]  ;;  %v6544_v46 = vpop.permute.xlu1 %3287 }
 0x2f4   : > { %v1601_v48 = vcombine.high %v1597_v23, %v1597_v23  ;;  %v1721_v26 = vrot.slane %v1597_v23, %v6215_v4  ;;  %v1725_v63 = vrot.slane %v1599_v22, %v6215_v4  ;;  %v6513_v5 = vmul.f32 %v1717_v32, %v7756_v21 }
 0x2f5   : > { %v1713_v8 = vrot.slane %v1600_v62, %v6215_v4  ;;  %v6517_v10 = vmul.f32 %v1705_v43, %v7757_v33  ;;  %v6520_v16 = vmul.f32 %v1709_v20, %v7758_v60  ;;  %v2104_v13 = vcombine.high %v2096_v24, %v2096_v24  ;;  %v6542_v20 = vpop.permute.xlu0 %3795 }
 0x2f6   : > { %v1729_v28 = vrot.slane %v1601_v48, %v6215_v4  ;;  %v6525_v30 = vmul.f32 %v1721_v26, %v7759_v47  ;;  %v6528_v27 = vmul.f32 %v1725_v63, %v7760_v59  ;;  %v2105_v61 = vcombine.high %v2103_v56, %v2103_v56 }
 0x2f7   : > { %v6531_v7 = vmul.f32 %v1713_v8, %v7761_v55  ;;  %v2112_v38 = vrot.slane %v2096_v24, %v6236_v29  ;;  %v2119_v50 = vrot.slane %v2103_v56, %v6236_v29  ;;  %v2126_v2 = vrot.slane %v2104_v13, %v6236_v29 }
 0x2f8   : > { %v6536_v12 = vmul.f32 %v1729_v28, %v7762_v0  ;;  %v1813_v25 = vcombine.high %v1192_v34, %v1192_v34  ;;  %v1820_v23 = vrot.slane %v1192_v34, %v6236_v29  ;;  %v2133_v22 = vrot.slane %v2105_v61, %v6236_v29  ;;  %v7764_v28 = vld [vmem:[#allocation14_spill] sm:$0xff]  ;;  %v7769_v0 = vld [vmem:[#allocation16_spill] sm:$0xff] }
 0x2f9   : > { %v2134_v32 = vcombine.high %v2112_v38, %v2112_v38  ;;  %v2135_v62 = vcombine.high %v2119_v50, %v2119_v50  ;;  %v2237_v43 = vrot.slane %v2112_v38, %v6215_v4  ;;  %v2136_v24 = vcombine.high %v2126_v2, %v2126_v2  ;;  %v7766_v61 = vld [vmem:[#allocation18_spill] sm:$0xff] }
 0x2fa   : > { %7763 = vst [vmem:[#allocation23_spill] sm:$0xff] %v6536_v12  ;;  %v2241_v48 = vrot.slane %v2126_v2, %v6215_v4  ;;  %v2253_v26 = vrot.slane %v2119_v50, %v6215_v4  ;;  %v1827_v63 = vrot.slane %v1813_v25, %v6236_v29  ;;  %v2137_v21 = vcombine.high %v2133_v22, %v2133_v22 }
 0x2fb   : > { %v2245_v34 = vrot.slane %v2134_v32, %v6215_v4  ;;  %v2257_v8 = vrot.slane %v2133_v22, %v6215_v4  ;;  %v2261_v33 = vrot.slane %v2135_v62, %v6215_v4  ;;  %v2249_v60 = vrot.slane %v2136_v24, %v6215_v4 }
 0x2fc   : > { %v2290_v56 = vmul.f32 %v2237_v43, %v6117_v36  ;;  %v2291_v47 = vmul.f32 %v2241_v48, %v7764_v28  ;;  %v2294_v59 = vmul.f32 %v2253_v26, %v6127_v19  ;;  %v6557_v13 = vrot.slane %v2137_v21, %v6215_v4  ;;  %v6575_v43 = vpop.permute.xlu0 %3815 }
 0x2fd   : > { %v2292_v55 = vmul.f32 %v2245_v34, %v6121_v51  ;;  %v6561_v38 = vmul.f32 %v2257_v8, %v7766_v61  ;;  %v6564_v50 = vmul.f32 %v2261_v33, %v6131_v58  ;;  %v2293_v2 = vmul.f32 %v2249_v60, %v7769_v0  ;;  %7770 = vst [vmem:[#allocation19_spill] sm:$0xff] %v6575_v43  ;;  %v6577_v58 = vpop.permute.xlu1 %3015 }
 0x2fe   : > { %7765 = vst [vmem:[#allocation25_spill] sm:$0xff] %v6557_v13  ;;  %v1828_v25 = vcombine.high %v1820_v23, %v1820_v23  ;;  %v1829_v22 = vcombine.high %v1827_v63, %v1827_v63  ;;  %v1836_v36 = vrot.slane %v1820_v23, %v6236_v29  ;;  %v1843_v32 = vrot.slane %v1827_v63, %v6236_v29  ;;  %v7776_v13 = vld [vmem:[#allocation13_spill] sm:$0xff] }
 0x2ff   : > { %7767 = vst [vmem:[#allocation28_spill] sm:$0xff] %v6561_v38  ;;  %7768 = vst [vmem:[#allocation15_spill] sm:$0xff] %v6564_v50  ;;  %v2365_v19 = vcombine.high %v6490_v45, %v6490_v45  ;;  %v2372_v51 = vrot.slane %v6490_v45, %v6236_v29  ;;  %v2592_v62 = vcombine.high %v6494_v17, %v6494_v17  ;;  %v7774_v50 = vld [vmem:[#allocation11_spill] sm:$0xff] }
 0x300   : > { %v1850_v24 = vrot.slane %v1828_v25, %v6236_v29  ;;  %v1857_v48 = vrot.slane %v1829_v22, %v6236_v29  ;;  %v1858_v23 = vcombine.high %v1836_v36, %v1836_v36  ;;  %v1961_v26 = vrot.slane %v1836_v36, %v6215_v4  ;;  %v7771_v25 = vld [vmem:[#allocation10_spill] sm:$0xff]  ;;  %v6598_v12 = vpop.permute.xlu0 %3819 }
 0x301   : > { %v1859_v63 = vcombine.high %v1843_v32, %v1843_v32  ;;  %v1977_v21 = vrot.slane %v1843_v32, %v6215_v4  ;;  %v2379_v34 = vrot.slane %v2365_v19, %v6236_v29  ;;  %v2380_v45 = vcombine.high %v2372_v51, %v2372_v51  ;;  %v7773_v19 = vld [vmem:[#allocation27_spill] sm:$0xff]  ;;  %7777 = vst [vmem:[#allocation5_spill] sm:$0xff] %v6598_v12 }
 0x302   : > { %v1860_v8 = vcombine.high %v1850_v24, %v1850_v24  ;;  %v1861_v33 = vcombine.high %v1857_v48, %v1857_v48  ;;  %v1965_v60 = vrot.slane %v1850_v24, %v6215_v4  ;;  %v1969_v28 = vrot.slane %v1858_v23, %v6215_v4 }
 0x303   : > { %v1981_v61 = vrot.slane %v1857_v48, %v6215_v4  ;;  %v1985_v0 = vrot.slane %v1859_v63, %v6215_v4  ;;  %v2014_v22 = vmul.f32 %v1961_v26, %v7771_v25  ;;  %v2018_v36 = vmul.f32 %v1977_v21, %v7772_v9  ;;  %v6600_v26 = vpop.permute.xlu1 %4103  ;;  %v7779_v9 = vld [vmem:[#allocation29_spill] sm:$0xff] }
 0x304   : > { %v1973_v43 = vrot.slane %v1860_v8, %v6215_v4  ;;  %v1989_v32 = vrot.slane %v1861_v33, %v6215_v4  ;;  %v2015_v49 = vmul.f32 %v1965_v60, %v7773_v19  ;;  %v2016_v38 = vmul.f32 %v1969_v28, %v7774_v50  ;;  %7778 = vst [vmem:[#allocation17_spill] sm:$0xff] %v6600_v26  ;;  %v7780_v8 = vld [vmem:[#allocation32_spill] sm:$0xff] }
 0x305   : > { %v2019_v24 = vmul.f32 %v1981_v61, %v7775_v52  ;;  %v2020_v23 = vmul.f32 %v1985_v0, %v7776_v13  ;;  %v2030_v48 = vadd.f32 %v2014_v22, %v6504_v31  ;;  %v2034_v63 = vadd.f32 %v2018_v36, %v6513_v5  ;;  %v7817_v26 = vld [vmem:[#allocation48_spill] sm:$0xff] }
 0x306   : > { %v2017_v21 = vmul.f32 %v1973_v43, %v7779_v9  ;;  %v6604_v33 = vmul.f32 %v1989_v32, %v7780_v8  ;;  %v2031_v60 = vadd.f32 %v2015_v49, %v6517_v10  ;;  %v2032_v50 = vadd.f32 %v2016_v38, %v6520_v16  ;;  %v7785_v9 = vld [vmem:[#allocation57_spill] sm:$0xff]  ;;  %v7786_v8 = vld [vmem:[#allocation34_spill] sm:$0xff] }
 0x307   : > { %v6609_v52 = vadd.f32 %v2019_v24, %v6525_v30  ;;  %v6612_v31 = vadd.f32 %v2020_v23, %v6528_v27  ;;  %v2306_v5 = vadd.f32 %v2290_v56, %v2030_v48  ;;  %v2310_v13 = vadd.f32 %v2294_v59, %v2034_v63  ;;  %v7782_v56 = vld [vmem:[#allocation82_spill] sm:$0xff]  ;;  %v7783_v59 = vld [vmem:[#allocation91_spill] sm:$0xff] }
 0x308   : > { %v2033_v28 = vadd.f32 %v2017_v21, %v6531_v7  ;;  %v2307_v61 = vadd.f32 %v2291_v47, %v2031_v60  ;;  %v2308_v0 = vadd.f32 %v2292_v55, %v2032_v50  ;;  %v2381_v43 = vcombine.high %v2379_v34, %v2379_v34  ;;  %v7784_v23 = vld [vmem:[#allocation30_spill] sm:$0xff]  ;;  %v7787_v50 = vld [vmem:[#allocation61_spill] sm:$0xff] }
 0x309   : > { %7781 = vst [vmem:[#allocation7_spill] sm:$0xff] %v6612_v31  ;;  %v2388_v25 = vrot.slane %v2372_v51, %v6236_v29  ;;  %v2395_v22 = vrot.slane %v2379_v34, %v6236_v29  ;;  %v2402_v49 = vrot.slane %v2380_v45, %v6236_v29  ;;  %v2599_v10 = vrot.slane %v6494_v17, %v6236_v29  ;;  %v6627_v34 = vpop.permute.xlu0 %3827  ;;  %v6629_v45 = vpop.permute.xlu1 %3019 }
 0x30a   : > { %v2309_v16 = vadd.f32 %v2293_v2, %v2033_v28  ;;  %v2409_v30 = vrot.slane %v2381_v43, %v6236_v29  ;;  %v2606_v27 = vrot.slane %v2592_v62, %v6236_v29  ;;  %v6624_v7 = vadd.f32 %v7783_v59, %v7782_v56  ;;  %v7788_v43 = vld [vmem:[#allocation33_spill] sm:$0xff] }
 0x30b   : > { %v2410_v47 = vcombine.high %v2388_v25, %v2388_v25  ;;  %v2411_v55 = vcombine.high %v2395_v22, %v2395_v22  ;;  %v2412_v38 = vcombine.high %v2402_v49, %v2402_v49  ;;  %v2513_v51 = vrot.slane %v2388_v25, %v6215_v4 }
 0x30c   : > { %v2413_v36 = vcombine.high %v2409_v30, %v2409_v30  ;;  %v2517_v17 = vrot.slane %v2402_v49, %v6215_v4  ;;  %v2529_v2 = vrot.slane %v2395_v22, %v6215_v4  ;;  %v2533_v62 = vrot.slane %v2409_v30, %v6215_v4  ;;  %v7789_v22 = vld [vmem:[#allocation59_spill] sm:$0xff] }
 0x30d   : > { %v2521_v32 = vrot.slane %v2410_v47, %v6215_v4  ;;  %v2525_v19 = vrot.slane %v2412_v38, %v6215_v4  ;;  %v2537_v24 = vrot.slane %v2411_v55, %v6215_v4  ;;  %v2566_v48 = vmul.f32 %v2513_v51, %v7784_v23  ;;  %v7790_v30 = vld [vmem:[#allocation35_spill] sm:$0xff] }
 0x30e   : > { %v6639_v63 = vrot.slane %v2413_v36, %v6215_v4  ;;  %v2567_v21 = vmul.f32 %v2517_v17, %v7785_v9  ;;  %v2570_v60 = vmul.f32 %v2529_v2, %v7786_v8  ;;  %v6644_v28 = vmul.f32 %v2533_v62, %v7787_v50 }
 0x30f   : > { %v2568_v25 = vmul.f32 %v2521_v32, %v7788_v43  ;;  %v2569_v49 = vmul.f32 %v2525_v19, %v7789_v22  ;;  %v6649_v59 = vmul.f32 %v2537_v24, %v7790_v30  ;;  %v6651_v47 = vadd.f32 %v2566_v48, %v2306_v5  ;;  %v6663_v19 = vpop.permute.xlu0 %3831  ;;  %v6665_v24 = vpop.permute.xlu1 %4107  ;;  %v7794_v43 = vld [vmem:[#allocation36_spill] sm:$0xff]  ;;  %v7795_v22 = vld [vmem:[#allocation89_spill] sm:$0xff] }
 0x310   : > { %v6653_v55 = vadd.f32 %v2567_v21, %v2307_v61  ;;  %v6655_v38 = vadd.f32 %v2570_v60, %v2310_v13  ;;  %v2607_v51 = vcombine.high %v2599_v10, %v2599_v10  ;;  %v2608_v36 = vcombine.high %v2606_v27, %v2606_v27  ;;  %7792 = vst [vmem:[#allocation6_spill] sm:$0xff] %v6663_v19  ;;  %v7799_v19 = vld [vmem:[#allocation94_spill] sm:$0xff] }
 0x311   : > { %7791 = vst [vmem:[#allocation21_spill] sm:$0xff] %v6649_v59  ;;  %v6657_v17 = vadd.f32 %v2568_v25, %v2308_v0  ;;  %v6659_v2 = vadd.f32 %v2569_v49, %v2309_v16  ;;  %v2615_v62 = vrot.slane %v2599_v10, %v6236_v29  ;;  %v2622_v32 = vrot.slane %v2606_v27, %v6236_v29 }
 0x312   : > { %7793 = vst [vmem:[#allocation8_spill] sm:$0xff] %v6665_v24  ;;  %v2629_v5 = vrot.slane %v2607_v51, %v6236_v29  ;;  %v2636_v61 = vrot.slane %v2608_v36, %v6236_v29  ;;  %v3144_v13 = vcombine.high %v6624_v7, %v6624_v7  ;;  %v3151_v0 = vrot.slane %v6624_v7, %v6236_v29  ;;  %v7796_v51 = vld [vmem:[#allocation87_spill] sm:$0xff]  ;;  %v7798_v24 = vld [vmem:[#allocation37_spill] sm:$0xff] }
 0x313   : > { %v2637_v16 = vcombine.high %v2615_v62, %v2615_v62  ;;  %v2638_v23 = vcombine.high %v2622_v32, %v2622_v32  ;;  %v2757_v10 = vrot.slane %v2615_v62, %v6215_v4  ;;  %v2773_v27 = vrot.slane %v2622_v32, %v6215_v4  ;;  %v7797_v62 = vld [vmem:[#allocation39_spill] sm:$0xff] }
 0x314   : > { %v2639_v48 = vcombine.high %v2629_v5, %v2629_v5  ;;  %v2640_v9 = vcombine.high %v2636_v61, %v2636_v61  ;;  %v2761_v21 = vrot.slane %v2629_v5, %v6215_v4  ;;  %v2777_v8 = vrot.slane %v2636_v61, %v6215_v4 }
 0x315   : > { %v2765_v60 = vrot.slane %v2637_v16, %v6215_v4  ;;  %v2781_v50 = vrot.slane %v2638_v23, %v6215_v4  ;;  %v2834_v25 = vmul.f32 %v2757_v10, %v7794_v43  ;;  %v2838_v7 = vmul.f32 %v2773_v27, %v7795_v22  ;;  %v6693_v10 = vpop.permute.xlu0 %3839  ;;  %v6695_v27 = vpop.permute.xlu1 %3291  ;;  %v7802_v43 = vld [vmem:[#allocation40_spill] sm:$0xff]  ;;  %v7807_v22 = vld [vmem:[#allocation83_spill] sm:$0xff] }
 0x316   : > { %v2769_v49 = vrot.slane %v2639_v48, %v6215_v4  ;;  %v2785_v30 = vrot.slane %v2640_v9, %v6215_v4  ;;  %v2835_v36 = vmul.f32 %v2761_v21, %v7796_v51  ;;  %v2839_v32 = vmul.f32 %v2777_v8, %v7797_v62  ;;  %7800 = vst [vmem:[#allocation14_spill] sm:$0xff] %v6693_v10  ;;  %v7801_v48 = vld [vmem:[#allocation38_spill] sm:$0xff]  ;;  %v7816_v10 = vld [vmem:[#allocation65_spill] sm:$0xff] }
 0x317   : > { %v2836_v5 = vmul.f32 %v2765_v60, %v7798_v24  ;;  %v2840_v61 = vmul.f32 %v2781_v50, %v7799_v19  ;;  %v6688_v16 = vadd.f32 %v2834_v25, %v6456_v54  ;;  %v6691_v23 = vadd.f32 %v2838_v7, %v6465_v57 }
 0x318   : > { %v2837_v9 = vmul.f32 %v2769_v49, %v7801_v48  ;;  %v6699_v21 = vmul.f32 %v2785_v30, %v7802_v43  ;;  %v6702_v8 = vadd.f32 %v2835_v36, %v6461_v42  ;;  %v6705_v19 = vadd.f32 %v2839_v32, %v6467_v18  ;;  %v7808_v42 = vld [vmem:[#allocation92_spill] sm:$0xff]  ;;  %v7810_v18 = vld [vmem:[#allocation93_spill] sm:$0xff] }
 0x319   : > { %v6708_v54 = vadd.f32 %v2836_v5, %v6463_v37  ;;  %v6711_v57 = vadd.f32 %v2840_v61, %v6477_v53  ;;  %v3158_v24 = vrot.slane %v3144_v13, %v6236_v29  ;;  %v3159_v60 = vcombine.high %v3151_v0, %v3151_v0  ;;  %v7809_v49 = vld [vmem:[#allocation84_spill] sm:$0xff]  ;;  %v6732_v43 = vpop.permute.xlu0 %3843 }
 0x31a   : > { %7803 = vst [vmem:[#allocation18_spill] sm:$0xff] %v6699_v21  ;;  %7804 = vst [vmem:[#allocation16_spill] sm:$0xff] %v6705_v19  ;;  %v6715_v50 = vadd.f32 %v2837_v9, %v6475_v3  ;;  %v3167_v25 = vrot.slane %v3151_v0, %v6236_v29  ;;  %v1340_v7 = vadd.f32 %v7808_v42, %v7807_v22  ;;  %v7811_v36 = vld [vmem:[#allocation96_spill] sm:$0xff]  ;;  %v7828_v19 = vld [vmem:[#allocation71_spill] sm:$0xff] }
 0x31b   : > { %7805 = vst [vmem:[#allocation10_spill] sm:$0xff] %v6711_v57  ;;  %v1417_v30 = vadd.f32 %v7810_v18, %v7809_v49  ;;  %v3160_v51 = vcombine.high %v3158_v24, %v3158_v24  ;;  %v3174_v37 = vrot.slane %v3158_v24, %v6236_v29  ;;  %v3181_v53 = vrot.slane %v3159_v60, %v6236_v29  ;;  %v6734_v24 = vpop.permute.xlu1 %3835  ;;  %v7814_v42 = vld [vmem:[#allocation44_spill] sm:$0xff] }
 0x31c   : > { %7806 = vst [vmem:[#allocation12_spill] sm:$0xff] %v6715_v50  ;;  %v6726_v13 = vadd.f32 %v7811_v36, %v6238_v11  ;;  %v3189_v62 = vcombine.high %v3167_v25, %v3167_v25  ;;  %v3309_v3 = vrot.slane %v3167_v25, %v6215_v4  ;;  %v2868_v32 = vcombine.high %v1340_v7, %v1340_v7 }
 0x31d   : > { %v2875_v0 = vrot.slane %v1340_v7, %v6236_v29  ;;  %v3188_v5 = vrot.slane %v3160_v51, %v6236_v29  ;;  %v3190_v61 = vcombine.high %v3174_v37, %v3174_v37  ;;  %v3191_v48 = vcombine.high %v3181_v53, %v3181_v53  ;;  %7812 = vst [vmem:[#allocation27_spill] sm:$0xff] %v6732_v43 }
 0x31e   : > { %v3313_v9 = vrot.slane %v3181_v53, %v6215_v4  ;;  %7813 = vst [vmem:[#allocation11_spill] sm:$0xff] %v6734_v24  ;;  %v3317_v60 = vrot.slane %v3189_v62, %v6215_v4  ;;  %v3325_v11 = vrot.slane %v3174_v37, %v6215_v4  ;;  %v6739_v18 = vmul.f32 %v3309_v3, %v7814_v42  ;;  %v7819_v62 = vld [vmem:[#allocation54_spill] sm:$0xff] }
 0x31f   : > { %v2882_v25 = vrot.slane %v2868_v32, %v6236_v29  ;;  %v3192_v7 = vcombine.high %v3188_v5, %v3188_v5  ;;  %v3321_v51 = vrot.slane %v3191_v48, %v6215_v4  ;;  %v3329_v36 = vrot.slane %v3188_v5, %v6215_v4  ;;  %v7822_v32 = vld [vmem:[#allocation49_spill] sm:$0xff]  ;;  %v7824_v48 = vld [vmem:[#allocation67_spill] sm:$0xff] }
 0x320   : > { %7815 = vst [vmem:[#allocation31_spill] sm:$0xff] %v6739_v18  ;;  %v3333_v53 = vrot.slane %v3190_v61, %v6215_v4  ;;  %v3387_v43 = vmul.f32 %v3313_v9, %v7816_v10  ;;  %v6747_v24 = vmul.f32 %v3317_v60, %v7817_v26  ;;  %v6750_v21 = vmul.f32 %v3325_v11, %v7819_v62  ;;  %v7826_v5 = vld [vmem:[#allocation69_spill] sm:$0xff]  ;;  %v3536_v62 = vpop.permute.xlu0 %3535 }
 0x321   : > { %v2883_v37 = vcombine.high %v2875_v0, %v2875_v0  ;;  %v6753_v3 = vrot.slane %v3192_v7, %v6215_v4  ;;  %v6756_v42 = vmul.f32 %v3321_v51, %v7822_v32  ;;  %v6759_v12 = vmul.f32 %v3329_v36, %v7824_v48  ;;  %v6772_v32 = vpop.permute.xlu1 %3295 }
 0x322   : > { %7818 = vst [vmem:[#allocation13_spill] sm:$0xff] %v6747_v24  ;;  %7820 = vst [vmem:[#allocation29_spill] sm:$0xff] %v6750_v21  ;;  %v6762_v61 = vmul.f32 %v3333_v53, %v7826_v5  ;;  %v2884_v10 = vcombine.high %v2882_v25, %v2882_v25  ;;  %v2891_v26 = vrot.slane %v2875_v0, %v6236_v29 }
 0x323   : > { %7821 = vst [vmem:[#allocation32_spill] sm:$0xff] %v6753_v3  ;;  %7823 = vst [vmem:[#allocation82_spill] sm:$0xff] %v6756_v42  ;;  %v2898_v9 = vrot.slane %v2882_v25, %v6236_v29  ;;  %v2905_v60 = vrot.slane %v2883_v37, %v6236_v29  ;;  %v3420_v11 = vcombine.high %v1417_v30, %v1417_v30  ;;  %v7829_v42 = vld [vmem:[#allocation43_spill] sm:$0xff] }
 0x324   : > { %7825 = vst [vmem:[#allocation91_spill] sm:$0xff] %v6759_v12  ;;  %7827 = vst [vmem:[#allocation30_spill] sm:$0xff] %v6762_v61  ;;  %v3427_v7 = vrot.slane %v1417_v30, %v6236_v29  ;;  %v2641_v51 = vcombine.high %v6726_v13, %v6726_v13  ;;  %v2648_v36 = vrot.slane %v6726_v13, %v6236_v29 }
 0x325   : > { %v2912_v53 = vrot.slane %v2884_v10, %v6236_v29  ;;  %v2913_v48 = vcombine.high %v2891_v26, %v2891_v26  ;;  %v2914_v0 = vcombine.high %v2898_v9, %v2898_v9  ;;  %v2915_v5 = vcombine.high %v2905_v60, %v2905_v60 }
 0x326   : > { %v3033_v25 = vrot.slane %v2891_v26, %v6215_v4  ;;  %v3037_v37 = vrot.slane %v2905_v60, %v6215_v4  ;;  %v3049_v30 = vrot.slane %v2898_v9, %v6215_v4  ;;  %v3434_v3 = vrot.slane %v3420_v11, %v6236_v29  ;;  %v7830_v26 = vld [vmem:[#allocation75_spill] sm:$0xff]  ;;  %v7831_v9 = vld [vmem:[#allocation45_spill] sm:$0xff] }
 0x327   : > { %v2916_v61 = vcombine.high %v2912_v53, %v2912_v53  ;;  %v3041_v57 = vrot.slane %v2913_v48, %v6215_v4  ;;  %v3045_v13 = vrot.slane %v2915_v5, %v6215_v4  ;;  %v3053_v12 = vrot.slane %v2912_v53, %v6215_v4  ;;  %v7832_v11 = vld [vmem:[#allocation73_spill] sm:$0xff]  ;;  %v7834_v5 = vld [vmem:[#allocation58_spill] sm:$0xff] }
 0x328   : > { %v3057_v10 = vrot.slane %v2914_v0, %v6215_v4  ;;  %v3110_v21 = vmul.f32 %v3033_v25, %v7828_v19  ;;  %v3111_v50 = vmul.f32 %v3037_v37, %v7829_v42  ;;  %v3114_v24 = vmul.f32 %v3049_v30, %v7830_v26  ;;  %v7833_v48 = vld [vmem:[#allocation77_spill] sm:$0xff]  ;;  %v7837_v25 = vld [vmem:[#allocation62_spill] sm:$0xff] }
 0x329   : > { %v3061_v60 = vrot.slane %v2916_v61, %v6215_v4  ;;  %v3112_v18 = vmul.f32 %v3041_v57, %v7831_v9  ;;  %v6789_v59 = vmul.f32 %v3045_v13, %v7832_v11  ;;  %v6792_v31 = vmul.f32 %v3053_v12, %v7833_v48  ;;  %v6804_v61 = vpop.permute.xlu0 %3539  ;;  %v6806_v57 = vpop.permute.xlu1 %3023 }
 0x32a   : > { %v6795_v53 = vmul.f32 %v3057_v10, %v7834_v5  ;;  %v6798_v0 = vadd.f32 %v3110_v21, %v6688_v16  ;;  %v3127_v19 = vadd.f32 %v3111_v50, %v6702_v8  ;;  %v6802_v42 = vadd.f32 %v3114_v24, %v6691_v23  ;;  %7836 = vst [vmem:[#allocation34_spill] sm:$0xff] %v6804_v61  ;;  %v7857_v61 = vld [vmem:[#allocation80_spill] sm:$0xff] }
 0x32b   : > { %v6809_v37 = vmul.f32 %v3061_v60, %v7837_v25  ;;  %v6812_v12 = vadd.f32 %v3112_v18, %v6708_v54  ;;  %v3435_v30 = vcombine.high %v3427_v7, %v3427_v7  ;;  %v3436_v13 = vcombine.high %v3434_v3, %v3434_v3 }
 0x32c   : > { %7835 = vst [vmem:[#allocation57_spill] sm:$0xff] %v6795_v53  ;;  %v3403_v10 = vadd.f32 %v3387_v43, %v3127_v19  ;;  %v3443_v16 = vrot.slane %v3427_v7, %v6236_v29  ;;  %v3450_v21 = vrot.slane %v3434_v3, %v6236_v29  ;;  %v2655_v23 = vrot.slane %v2641_v51, %v6236_v29 }
 0x32d   : > { %7838 = vst [vmem:[#allocation61_spill] sm:$0xff] %v6809_v37  ;;  %v3457_v8 = vrot.slane %v3435_v30, %v6236_v29  ;;  %v6819_v50 = vrot.slane %v3436_v13, %v6236_v29  ;;  %v2656_v24 = vcombine.high %v2648_v36, %v2648_v36  ;;  %v2664_v26 = vrot.slane %v2648_v36, %v6236_v29  ;;  %v7841_v36 = vld [vmem:[#allocation46_spill] sm:$0xff]  ;;  %v6838_v25 = vpop.permute.xlu0 %3559  ;;  %v6840_v30 = vpop.permute.xlu1 %3567 }
 0x32e   : > { %v3465_v60 = vcombine.high %v3443_v16, %v3443_v16  ;;  %v3466_v54 = vcombine.high %v3450_v21, %v3450_v21  ;;  %v3585_v18 = vrot.slane %v3443_v16, %v6215_v4  ;;  %v3601_v43 = vrot.slane %v3450_v21, %v6215_v4  ;;  %v7844_v21 = vld [vmem:[#allocation47_spill] sm:$0xff] }
 0x32f   : > { %7839 = vst [vmem:[#allocation33_spill] sm:$0xff] %v6819_v50  ;;  %v3467_v9 = vcombine.high %v3457_v8, %v3457_v8  ;;  %v3468_v3 = vcombine.high %v6819_v50, %v6819_v50  ;;  %v3589_v7 = vrot.slane %v3457_v8, %v6215_v4 }
 0x330   : > { %v3593_v11 = vrot.slane %v3465_v60, %v6215_v4  ;;  %v6831_v48 = vrot.slane %v3466_v54, %v6215_v4  ;;  %v6834_v5 = vmul.f32 %v3585_v18, %v7841_v36  ;;  %v6836_v19 = vmul.f32 %v3601_v43, %v3536_v62  ;;  %v7845_v54 = vld [vmem:[#allocation51_spill] sm:$0xff] }
 0x331   : > { %v6843_v13 = vrot.slane %v3467_v9, %v6215_v4  ;;  %v6846_v16 = vrot.slane %v3468_v3, %v6215_v4  ;;  %v3663_v8 = vmul.f32 %v3589_v7, %v7844_v21  ;;  %v2657_v60 = vcombine.high %v2655_v23, %v2655_v23  ;;  %v7846_v3 = vld [vmem:[#allocation97_spill] sm:$0xff] }
 0x332   : > { %7840 = vst [vmem:[#allocation59_spill] sm:$0xff] %v6831_v48  ;;  %7842 = vst [vmem:[#allocation35_spill] sm:$0xff] %v6836_v19  ;;  %v6850_v51 = vmul.f32 %v3593_v11, %v7845_v54  ;;  %v2671_v18 = vrot.slane %v2655_v23, %v6236_v29  ;;  %v2678_v62 = vrot.slane %v2656_v24, %v6236_v29  ;;  %v6878_v48 = vpop.permute.xlu1 %3027 }
 0x333   : > { %7843 = vst [vmem:[#allocation36_spill] sm:$0xff] %v6846_v16  ;;  %v2686_v43 = vcombine.high %v2664_v26, %v2664_v26  ;;  %v6854_v36 = vadd.f32 %v3663_v8, %v3403_v10  ;;  %v6857_v37 = vrot.slane %v2657_v60, %v6236_v29  ;;  %v2789_v9 = vrot.slane %v2664_v26, %v6215_v4  ;;  %v7847_v60 = vld [vmem:[#allocation41_spill] sm:$0xff] }
 0x334   : > { %v1421_v16 = vadd.f32 %v7846_v3, %v7782_v56  ;;  %v2687_v7 = vcombine.high %v2671_v18, %v2671_v18  ;;  %v2688_v21 = vcombine.high %v2678_v62, %v2678_v62  ;;  %v2793_v11 = vrot.slane %v2678_v62, %v6215_v4 }
 0x335   : > { %v2797_v54 = vrot.slane %v2686_v43, %v6215_v4  ;;  %v2805_v10 = vrot.slane %v2671_v18, %v6215_v4  ;;  %v2809_v24 = vrot.slane %v6857_v37, %v6215_v4  ;;  %v2842_v8 = vmul.f32 %v2789_v9, %v6413_v15  ;;  %v6876_v43 = vpop.permute.xlu0 %3563 }
 0x336   : > { %v2801_v26 = vrot.slane %v2688_v21, %v6215_v4  ;;  %v6872_v56 = vrot.slane %v2687_v7, %v6215_v4  ;;  %v2843_v3 = vmul.f32 %v2793_v11, %v7847_v60  ;;  %7848 = vst [vmem:[#allocation89_spill] sm:$0xff] %v6876_v43  ;;  %v3193_v9 = vcombine.high %v1421_v16, %v1421_v16  ;;  %v7849_v21 = vld [vmem:[#allocation42_spill] sm:$0xff] }
 0x337   : > { %v2844_v62 = vmul.f32 %v2797_v54, %v6440_v39  ;;  %v2846_v18 = vmul.f32 %v2805_v10, %v6442_v40  ;;  %v6882_v23 = vmul.f32 %v2809_v24, %v6508_v6  ;;  %v6885_v15 = vadd.f32 %v2842_v8, %v6651_v47  ;;  %v7850_v6 = vld [vmem:[#allocation98_spill] sm:$0xff]  ;;  %v7851_v10 = vld [vmem:[#allocation99_spill] sm:$0xff] }
 0x338   : > { %v2845_v7 = vmul.f32 %v2801_v26, %v7849_v21  ;;  %v6889_v53 = vadd.f32 %v2843_v3, %v6653_v55  ;;  %v3200_v11 = vrot.slane %v1421_v16, %v6236_v29  ;;  %v3207_v40 = vrot.slane %v3193_v9, %v6236_v29  ;;  %v7853_v26 = vld [vmem:[#allocation85_spill] sm:$0xff]  ;;  %v6919_v21 = vpop.permute.xlu1 %3571 }
 0x339   : > { %v6892_v39 = vadd.f32 %v2844_v62, %v6657_v17  ;;  %v6896_v54 = vadd.f32 %v2846_v18, %v6655_v38  ;;  %v1346_v47 = vadd.f32 %v7850_v6, %v7807_v22  ;;  %v1423_v24 = vadd.f32 %v7851_v10, %v7809_v49  ;;  %v6917_v9 = vpop.permute.xlu0 %3575 }
 0x33a   : > { %v6904_v8 = vadd.f32 %v2845_v7, %v6659_v2  ;;  %v3208_v55 = vcombine.high %v3200_v11, %v3200_v11  ;;  %v3216_v17 = vrot.slane %v3200_v11, %v6236_v29  ;;  %v6909_v16 = vadd.f32 %v6405_v41, %v7853_v26 }
 0x33b   : > { %v3209_v38 = vcombine.high %v3207_v40, %v3207_v40  ;;  %v6912_v60 = vrot.slane %v3207_v40, %v6236_v29  ;;  %v2917_v3 = vcombine.high %v1346_v47, %v1346_v47  ;;  %v2924_v22 = vrot.slane %v1346_v47, %v6236_v29 }
 0x33c   : > { %7852 = vst [vmem:[#allocation87_spill] sm:$0xff] %v6904_v8  ;;  %v3230_v62 = vrot.slane %v3208_v55, %v6236_v29  ;;  %v3238_v49 = vcombine.high %v3216_v17, %v3216_v17  ;;  %v3341_v2 = vrot.slane %v3216_v17, %v6215_v4  ;;  %v3469_v18 = vcombine.high %v1423_v24, %v1423_v24  ;;  %v7854_v55 = vld [vmem:[#allocation78_spill] sm:$0xff] }
 0x33d   : > { %v6922_v41 = vrot.slane %v3209_v38, %v6236_v29  ;;  %v3357_v11 = vrot.slane %v6912_v60, %v6215_v4  ;;  %v2931_v40 = vrot.slane %v2917_v3, %v6236_v29  ;;  %v2932_v7 = vcombine.high %v2924_v22, %v2924_v22 }
 0x33e   : > { %v3240_v6 = vcombine.high %v3230_v62, %v3230_v62  ;;  %v3345_v47 = vrot.slane %v3230_v62, %v6215_v4  ;;  %v3349_v10 = vrot.slane %v3238_v49, %v6215_v4  ;;  %v6932_v17 = vmul.f32 %v3341_v2, %v7854_v55 }
 0x33f   : > { %v6937_v43 = vmul.f32 %v3357_v11, %v6695_v27  ;;  %v2933_v8 = vcombine.high %v2931_v40, %v2931_v40  ;;  %v2940_v49 = vrot.slane %v2924_v22, %v6236_v29  ;;  %v2947_v2 = vrot.slane %v2931_v40, %v6236_v29  ;;  %v6962_v22 = vpop.permute.xlu1 %3299 }
 0x340   : > { %7855 = vst [vmem:[#allocation39_spill] sm:$0xff] %v6932_v17  ;;  %v3353_v50 = vrot.slane %v3240_v6, %v6215_v4  ;;  %v6941_v3 = vmul.f32 %v3345_v47, %v7857_v61  ;;  %v6944_v62 = vmul.f32 %v3349_v10, %v6473_v1  ;;  %v2954_v55 = vrot.slane %v2932_v7, %v6236_v29  ;;  %v6960_v47 = vpop.permute.xlu0 %4075  ;;  %v7865_v10 = vld [vmem:[#allocation81_spill] sm:$0xff] }
 0x341   : > { %7856 = vst [vmem:[#allocation37_spill] sm:$0xff] %v6937_v43  ;;  %v6950_v38 = vrot.slane %v2933_v8, %v6236_v29  ;;  %v3476_v27 = vrot.slane %v1423_v24, %v6236_v29  ;;  %v2962_v6 = vcombine.high %v2940_v49, %v2940_v49  ;;  %v3065_v61 = vrot.slane %v2940_v49, %v6215_v4  ;;  %v7863_v8 = vld [vmem:[#allocation79_spill] sm:$0xff] }
 0x342   : > { %7858 = vst [vmem:[#allocation94_spill] sm:$0xff] %v6941_v3  ;;  %7859 = vst [vmem:[#allocation38_spill] sm:$0xff] %v6944_v62  ;;  %v6954_v11 = vmul.f32 %v3353_v50, %v6544_v46  ;;  %v6958_v1 = vrot.slane %v3469_v18, %v6236_v29  ;;  %v2963_v40 = vcombine.high %v2947_v2, %v2947_v2  ;;  %v7861_v18 = vld [vmem:[#allocation70_spill] sm:$0xff] }
 0x343   : > { %v2964_v7 = vcombine.high %v2954_v55, %v2954_v55  ;;  %v3069_v24 = vrot.slane %v2954_v55, %v6215_v4  ;;  %v3073_v46 = vrot.slane %v2962_v6, %v6215_v4  ;;  %v3081_v50 = vrot.slane %v2947_v2, %v6215_v4  ;;  %v7862_v62 = vld [vmem:[#allocation74_spill] sm:$0xff] }
 0x344   : > { %7860 = vst [vmem:[#allocation40_spill] sm:$0xff] %v6954_v11  ;;  %v3118_v49 = vmul.f32 %v3065_v61, %v7861_v18  ;;  %v6974_v11 = vrot.slane %v2963_v40, %v6215_v4  ;;  %v3484_v17 = vcombine.high %v3476_v27, %v3476_v27  ;;  %v3492_v40 = vrot.slane %v3476_v27, %v6236_v29  ;;  %v7870_v18 = vld [vmem:[#allocation90_spill] sm:$0xff] }
 0x345   : > { %v3077_v43 = vrot.slane %v2964_v7, %v6215_v4  ;;  %v3119_v3 = vmul.f32 %v3069_v24, %v7862_v62  ;;  %v3120_v19 = vmul.f32 %v3073_v46, %v7863_v8  ;;  %v3122_v55 = vmul.f32 %v3081_v50, %v6577_v58  ;;  %v7004_v24 = vpop.permute.xlu0 %4087 }
 0x346   : > { %v6980_v6 = vadd.f32 %v3118_v49, %v6885_v15  ;;  %v6993_v62 = vrot.slane %v6958_v1, %v6236_v29  ;;  %v3506_v8 = vrot.slane %v3484_v17, %v6236_v29  ;;  %v3617_v46 = vrot.slane %v3492_v40, %v6215_v4 }
 0x347   : > { %v6985_v61 = vmul.f32 %v3077_v43, %v7865_v10  ;;  %v6988_v7 = vadd.f32 %v3119_v3, %v6889_v53  ;;  %v6996_v58 = vadd.f32 %v3120_v19, %v6892_v39  ;;  %v6999_v15 = vadd.f32 %v3122_v55, %v6896_v54  ;;  %v7006_v53 = vpop.permute.xlu1 %3303 }
 0x348   : > { %7864 = vst [vmem:[#allocation83_spill] sm:$0xff] %v6980_v6  ;;  %v3696_v43 = vcombine.high %v6909_v16, %v6909_v16  ;;  %v3514_v3 = vcombine.high %v3492_v40, %v3492_v40  ;;  %v3633_v19 = vrot.slane %v6993_v62, %v6215_v4  ;;  %v3516_v39 = vcombine.high %v3506_v8, %v3506_v8  ;;  %v7873_v40 = vld [vmem:[#allocation86_spill] sm:$0xff] }
 0x349   : > { %7866 = vst [vmem:[#allocation92_spill] sm:$0xff] %v6985_v61  ;;  %7867 = vst [vmem:[#allocation84_spill] sm:$0xff] %v6988_v7  ;;  %v3621_v54 = vrot.slane %v3506_v8, %v6215_v4  ;;  %v3703_v17 = vrot.slane %v6909_v16, %v6236_v29  ;;  %v7019_v49 = vmul.f32 %v3617_v46, %v7870_v18  ;;  %v7875_v8 = vld [vmem:[#allocation24_spill] sm:$0xff]  ;;  %v7046_v18 = vpop.permute.xlu0 %4091 }
 0x34a   : > { %7868 = vst [vmem:[#allocation93_spill] sm:$0xff] %v6996_v58  ;;  %7869 = vst [vmem:[#allocation96_spill] sm:$0xff] %v6999_v15  ;;  %v3710_v50 = vrot.slane %v3696_v43, %v6236_v29  ;;  %v3625_v10 = vrot.slane %v3514_v3, %v6215_v4  ;;  %v7022_v55 = vmul.f32 %v3633_v19, %v6840_v30 }
 0x34b   : > { %7871 = vst [vmem:[#allocation44_spill] sm:$0xff] %v7019_v49  ;;  %v1494_v27 = vadd.f32 %v6411_v14, %v7873_v40  ;;  %v7027_v2 = vrot.slane %v3516_v39, %v6215_v4  ;;  %v7030_v15 = vmul.f32 %v3621_v54, %v7875_v8  ;;  %v3711_v16 = vcombine.high %v3703_v17, %v3703_v17 }
 0x34c   : > { %7872 = vst [vmem:[#allocation65_spill] sm:$0xff] %v7022_v55  ;;  %v3712_v61 = vcombine.high %v3710_v50, %v3710_v50  ;;  %v7033_v43 = vmul.f32 %v3625_v10, %v6838_v25  ;;  %v3719_v3 = vrot.slane %v3703_v17, %v6236_v29  ;;  %v7037_v46 = vrot.slane %v3710_v50, %v6236_v29  ;;  %v7048_v25 = vpop.permute.xlu1 %3847 }
 0x34d   : > { %7874 = vst [vmem:[#allocation48_spill] sm:$0xff] %v7027_v2  ;;  %7876 = vst [vmem:[#allocation54_spill] sm:$0xff] %v7030_v15  ;;  %v3972_v30 = vcombine.high %v1494_v27, %v1494_v27  ;;  %v3733_v19 = vrot.slane %v3711_v16, %v6236_v29  ;;  %v3979_v39 = vrot.slane %v1494_v27, %v6236_v29  ;;  %v7881_v27 = vld [vmem:[#allocation50_spill] sm:$0xff] }
 0x34e   : > { %7877 = vst [vmem:[#allocation49_spill] sm:$0xff] %v7033_v43  ;;  %v7041_v14 = vrot.slane %v3712_v61, %v6236_v29  ;;  %v1498_v54 = vadd.f32 %v6426_v35, %v7853_v26  ;;  %7879 = vst [vmem:[#allocation69_spill] sm:$0xff] %v7046_v18  ;;  %v3741_v10 = vcombine.high %v3719_v3, %v3719_v3 }
 0x34f   : > { %v3742_v17 = vcombine.high %v7037_v46, %v7037_v46  ;;  %v3861_v50 = vrot.slane %v3719_v3, %v6215_v4  ;;  %v3743_v61 = vcombine.high %v3733_v19, %v3733_v19  ;;  %v3865_v16 = vrot.slane %v3733_v19, %v6215_v4 }
 0x350   : > { %7878 = vst [vmem:[#allocation67_spill] sm:$0xff] %v7041_v14  ;;  %v7061_v26 = vrot.slane %v3741_v10, %v6215_v4  ;;  %v3986_v8 = vrot.slane %v3972_v30, %v6236_v29  ;;  %v3987_v19 = vcombine.high %v3979_v39, %v3979_v39  ;;  %v7075_v58 = vrot.slane %v3979_v39, %v6236_v29  ;;  %v7089_v39 = vpop.permute.xlu0 %4099 }
 0x351   : > { %v7064_v55 = vrot.slane %v3742_v17, %v6215_v4  ;;  %v7067_v3 = vmul.f32 %v3861_v50, %v6542_v20  ;;  %v7071_v2 = vrot.slane %v3743_v61, %v6215_v4  ;;  %v3939_v43 = vmul.f32 %v3865_v16, %v7881_v27  ;;  %7882 = vst [vmem:[#allocation43_spill] sm:$0xff] %v7089_v39  ;;  %v4293_v16 = vld [vmem:[%s7615_s9 + $0x40] sm:$0xff] }
 0x352   : > { %v3988_v35 = vcombine.high %v3986_v8, %v3986_v8  ;;  %v7078_v10 = vrot.slane %v3986_v8, %v6236_v29  ;;  %v3745_v17 = vcombine.high %v1498_v54, %v1498_v54  ;;  %v3752_v15 = vrot.slane %v1498_v54, %v6236_v29 }
 0x353   : > { %7880 = vst [vmem:[#allocation71_spill] sm:$0xff] %v7064_v55  ;;  %v3955_v20 = vadd.f32 %v3939_v43, %v6854_v36  ;;  %v7083_v30 = vrot.slane %v3987_v19, %v6236_v29  ;;  %v4017_v50 = vcombine.high %v7075_v58, %v7075_v58  ;;  %v7098_v43 = vpop.permute.xlu1 %4119  ;;  %v1500_v49 = vadd.f32 %v6429_v44, %v7873_v40 }
 0x354   : > { %v7092_v27 = vrot.slane %v3988_v35, %v6236_v29  ;;  %7884 = vst [vmem:[#allocation45_spill] sm:$0xff] %v7098_v43  ;;  %v7101_v54 = vrot.slane %v3745_v17, %v6236_v29  ;;  %v4294_v35 = vld [vmem:[%s7615_s9 + $0x48] sm:$0xff]  ;;  %v3760_v61 = vcombine.high %v3752_v15, %v3752_v15  ;;  %v3768_v7 = vrot.slane %v3752_v15, %v6236_v29 }
 0x355   : > { %v4141_v8 = vrot.slane %v7083_v30, %v6215_v4  ;;  %v7114_v36 = vrot.slane %v4017_v50, %v6215_v4  ;;  %v5077_v6 = vpack.c.bf16 %v4294_v35, %v4293_v16  ;;  %v7885_v50 = vld [vmem:[#allocation23_spill] sm:$0xff]  ;;  %v4021_v14 = vcombine.high %v1500_v49, %v1500_v49  ;;  %v7890_v16 = vld [vmem:[#allocation25_spill] sm:$0xff] }
 0x356   : > { %7883 = vst [vmem:[#allocation75_spill] sm:$0xff] %v7092_v27  ;;  %v3761_v43 = vcombine.high %v7101_v54, %v7101_v54  ;;  %v7125_v39 = vrot.slane %v3760_v61, %v6236_v29  ;;  %v2037_v55 = vadd.f32 %v6604_v33, %v7885_v50  ;;  %v3790_v17 = vcombine.high %v3768_v7, %v3768_v7  ;;  %v7140_v61 = vpop.permute.xlu0 %4111 }
 0x357   : > { %v4215_v19 = vmul.f32 %v4141_v8, %v6960_v47  ;;  %v3893_v27 = vrot.slane %v3768_v7, %v6215_v4  ;;  %v4028_v40 = vrot.slane %v1500_v49, %v6236_v29  ;;  %5078 = vmatprep.subr.bf16.mxu1 %v5077_v6  ;;  %7886 = vst [vmem:[#allocation73_spill] sm:$0xff] %v7140_v61  ;;  %v7902_v61 = vld [vmem:[#allocation15_spill] sm:$0xff] }
 0x358   : > { %v7130_v18 = vrot.slane %v3761_v43, %v6236_v29  ;;  %v3792_v44 = vcombine.high %v7125_v39, %v7125_v39  ;;  %v7143_v33 = vrot.slane %v3790_v17, %v6215_v4  ;;  %v7149_v7 = vrot.slane %v4021_v14, %v6236_v29  ;;  %5080 = vmatpush3.bf16.msra.mxu1 %v5077_v6  ;;  %v7889_v43 = vld [vmem:[#allocation20_spill] sm:$0xff]  ;;  %v7892_v17 = vld [vmem:[#allocation63_spill] sm:$0xff] }
 0x359   : > { %v7133_v15 = vadd.f32 %v4215_v19, %v3955_v20  ;;  %v7146_v8 = vmul.f32 %v3893_v27, %v6627_v34  ;;  %v3580_v20 = vpop.permute.xlu1 %3579  ;;  %v2297_v35 = vmul.f32 %v7890_v16, %v7889_v43  ;;  %v4036_v49 = vcombine.high %v4028_v40, %v4028_v40 }
 0x35a   : > { %7887 = vst [vmem:[#allocation77_spill] sm:$0xff] %v7143_v33  ;;  %v7154_v19 = vrot.slane %v3792_v44, %v6215_v4  ;;  %v7157_v50 = vrot.slane %v4028_v40, %v6236_v29  ;;  %v2573_v47 = vmul.f32 %v6639_v63, %v7892_v17  ;;  %v7893_v14 = vcombine.high %v6857_v37, %v6857_v37  ;;  %v7896_v17 = vld [vmem:[#allocation22_spill] sm:$0xff] }
 0x35b   : > { %7888 = vst [vmem:[#allocation58_spill] sm:$0xff] %v7146_v8  ;;  %v2313_v34 = vadd.f32 %v2297_v35, %v2037_v55  ;;  %v7894_v27 = vcombine.high %v6950_v38, %v6950_v38  ;;  %v3241_v44 = vcombine.high %v6922_v41, %v6922_v41  ;;  %v7172_v40 = vrot.slane %v4036_v49, %v6236_v29  ;;  %v7192_v8 = vpop.permute.xlu0 %4115 }
 0x35c   : > { %7891 = vst [vmem:[#allocation62_spill] sm:$0xff] %v7154_v19  ;;  %v2817_v6 = vrot.slane %v7893_v14, %v6215_v4  ;;  %v4066_v63 = vcombine.high %v7157_v50, %v7157_v50  ;;  %v7895_v37 = vcombine.high %v6958_v1, %v6958_v1  ;;  %7897 = vst [vmem:[#allocation46_spill] sm:$0xff] %v7192_v8 }
 0x35d   : > { %v3093_v43 = vrot.slane %v7894_v27, %v6215_v4  ;;  %v2589_v35 = vadd.f32 %v2573_v47, %v2313_v34  ;;  %v3369_v19 = vrot.slane %v3241_v44, %v6215_v4  ;;  %v4296_v44 = vld [vmem:[%s7615_s9 + $0x58] sm:$0xff] }
 0x35e   : > { %v3513_v16 = vrot.slane %v7895_v37, %v6236_v29  ;;  %v2849_v14 = vmul.f32 %v2817_v6, %v7896_v17  ;;  %v7190_v55 = vrot.slane %v4066_v63, %v6215_v4  ;;  %v3852_v63 = vpop.permute.xlu1 %3851 }
 0x35f   : > { %v3125_v27 = vmul.f32 %v3093_v43, %v6878_v48  ;;  %v3401_v47 = vmul.f32 %v3369_v19, %v7006_v53  ;;  %v7898_v48 = vld [vmem:[#allocation28_spill] sm:$0xff]  ;;  %v4295_v43 = vld [vmem:[%s7615_s9 + $0x50] sm:$0xff]  ;;  %v7899_v53 = vrot.slane %v6950_v38, %v6215_v4 }
 0x360   : > { %v3517_v33 = vcombine.high %v3513_v16, %v3513_v16  ;;  %v2865_v1 = vadd.f32 %v2849_v14, %v2589_v35  ;;  %v3637_v34 = vrot.slane %v3513_v16, %v6215_v4  ;;  %v2311_v6 = vadd.f32 %v7898_v48, %v6609_v52 }
 0x361   : > { %v3123_v19 = vmul.f32 %v7899_v53, %v6629_v45  ;;  %v7900_v52 = vrot.slane %v6922_v41, %v6215_v4  ;;  %v3913_v35 = vrot.slane %v7130_v18, %v6215_v4  ;;  %v5081_v45 = vpack.c.bf16 %v4296_v44, %v4295_v43  ;;  %v7901_v53 = vld [vmem:[#allocation7_spill] sm:$0xff] }
 0x362   : > { %v3645_v37 = vrot.slane %v3517_v33, %v6215_v4  ;;  %v3141_v17 = vadd.f32 %v3125_v27, %v2865_v1  ;;  %v2587_v14 = vadd.f32 %v6644_v28, %v2311_v6  ;;  %v3675_v48 = vmul.f32 %v3637_v34, %v6919_v21  ;;  %v7903_v27 = vld [vmem:[#allocation9_spill] sm:$0xff]  ;;  %v4124_v6 = vpop.permute.xlu0 %4123 }
 0x363   : > { %v3399_v16 = vmul.f32 %v7900_v52, %v6772_v32  ;;  %v4037_v33 = vcombine.high %v7149_v7, %v7149_v7  ;;  %v3951_v38 = vmul.f32 %v3913_v35, %v7048_v25  ;;  %v2312_v8 = vadd.f32 %v7902_v61, %v7901_v53  ;;  %5082 = vmatprep.subr.bf16.mxu1 %v5081_v45  ;;  %v7904_v21 = vld [vmem:[#allocation21_spill] sm:$0xff] }
 0x364   : > { %v3677_v49 = vmul.f32 %v3645_v37, %v3580_v20  ;;  %v3417_v41 = vadd.f32 %v3401_v47, %v3141_v17  ;;  %v2863_v32 = vadd.f32 %v6882_v23, %v2587_v14  ;;  %v2848_v28 = vmul.f32 %v6872_v56, %v7903_v27  ;;  %5084 = vmatpush3.bf16.msra.mxu1 %v5081_v45 }
 0x365   : > { %v4065_v52 = vrot.slane %v4037_v33, %v6236_v29  ;;  %v2588_v1 = vadd.f32 %v7904_v21, %v2312_v8  ;;  %v3124_v20 = vmul.f32 %v6974_v11, %v6806_v57  ;;  %v7905_v25 = vcombine.high %v6912_v60, %v6912_v60  ;;  %v4297_v57 = vld [vmem:[%s7615_s9 + $0x60] sm:$0xff]  ;;  %v4298_v60 = vld [vmem:[%s7615_s9 + $0x68] sm:$0xff]  ;;  %v3856_v11 = vpop.permute.xlu1 %3855  ;;  %v7907_v21 = vld [vmem:[#allocation31_spill] sm:$0xff] }
 0x366   : > { %v7906_v23 = vcombine.high %v6993_v62, %v6993_v62  ;;  %v3693_v47 = vadd.f32 %v3677_v49, %v3417_v41  ;;  %v3139_v43 = vadd.f32 %v3123_v19, %v2863_v32  ;;  %v7240_v8 = vrot.slane %v7101_v54, %v6236_v29  ;;  %v4299_v54 = vld [vmem:[%s7615_s9 + $0x70] sm:$0xff]  ;;  %v4300_v19 = vld [vmem:[%s7615_s9 + $0x78] sm:$0xff] }
 0x367   : > { %v3365_v34 = vrot.slane %v7905_v25, %v6215_v4  ;;  %v4189_v56 = vrot.slane %v4065_v52, %v6215_v4  ;;  %v2864_v62 = vadd.f32 %v2848_v28, %v2588_v1  ;;  %v7252_v37 = vrot.slane %v7149_v7, %v6236_v29 }
 0x368   : > { %v3641_v61 = vrot.slane %v7906_v23, %v6215_v4  ;;  %v3415_v35 = vadd.f32 %v3399_v16, %v3139_v43  ;;  %v3791_v14 = vcombine.high %v7240_v8, %v7240_v8  ;;  %v5085_v33 = vpack.c.bf16 %v4298_v60, %v4297_v57 }
 0x369   : > { %v3400_v49 = vmul.f32 %v3365_v34, %v6962_v22  ;;  %v4227_v17 = vmul.f32 %v4189_v56, %v4124_v6  ;;  %v3140_v22 = vadd.f32 %v3124_v20, %v2864_v62  ;;  %v4067_v29 = vcombine.high %v7252_v37, %v7252_v37  ;;  %v4128_v34 = vpop.permute.xlu0 %4127  ;;  %v4132_v23 = vpop.permute.xlu1 %4131 }
 0x36a   : > { %v3676_v44 = vmul.f32 %v3641_v61, %v6917_v9  ;;  %v3909_v9 = vrot.slane %v7240_v8, %v6215_v4  ;;  %v4185_v7 = vrot.slane %v7252_v37, %v6215_v4  ;;  %v3691_v45 = vadd.f32 %v3675_v48, %v3415_v35  ;;  %5086 = vmatprep.subr.bf16.mxu1 %v5085_v33  ;;  %v7908_v61 = vld [vmem:[#allocation52_spill] sm:$0xff] }
 0x36b   : > { %v3917_v53 = vrot.slane %v3791_v14, %v6215_v4  ;;  %v3793_v16 = vcombine.high %v7130_v18, %v7130_v18  ;;  %v5089_v41 = vpack.c.bf16 %v4300_v19, %v4299_v54  ;;  %v3416_v32 = vadd.f32 %v3400_v49, %v3140_v22  ;;  %5088 = vmatpush3.bf16.msra.mxu1 %v5085_v33  ;;  %v7911_v19 = vld [vmem:[#allocation55_spill] sm:$0xff]  ;;  %v7912_v22 = vld [vmem:[#allocation60_spill] sm:$0xff] }
 0x36c   : > { %v4193_v27 = vrot.slane %v4067_v29, %v6215_v4  ;;  %v4069_v28 = vcombine.high %v4065_v52, %v4065_v52  ;;  %v3402_v1 = vadd.f32 %v7907_v21, %v6798_v0  ;;  %v3967_v20 = vadd.f32 %v3951_v38, %v3691_v45  ;;  %v7284_v0 = vld [vmem:[%s7614_s8] ss:$0 sm:$0xff]  ;;  %v7913_v33 = vld [vmem:[#allocation12_spill] sm:$0xff] }
 0x36d   : > { %v3952_v25 = vmul.f32 %v3917_v53, %v3852_v63  ;;  %v3921_v48 = vrot.slane %v3793_v16, %v6215_v4  ;;  %v7909_v18 = vrot.slane %v7075_v58, %v6215_v4  ;;  %v3692_v43 = vadd.f32 %v3676_v44, %v3416_v32  ;;  %5090 = vmatprep.subr.bf16.mxu1 %v5089_v41  ;;  %v7910_v58 = vld [vmem:[#allocation13_spill] sm:$0xff]  ;;  %v7917_v32 = vld [vmem:[#allocation82_spill] sm:$0xff] }
 0x36e   : > { %v4228_v56 = vmul.f32 %v4193_v27, %v4128_v34  ;;  %v4197_v52 = vrot.slane %v4069_v28, %v6215_v4  ;;  %v3678_v57 = vadd.f32 %v6834_v5, %v3402_v1  ;;  %v7286_v63 = vadd.f32 %v4227_v17, %v3967_v20  ;;  %v7914_v45 = vld [vmem:[#allocation53_spill] sm:$0xff] }
 0x36f   : > { %v4214_v6 = vmul.f32 %v7909_v18, %v7908_v61  ;;  %v3953_v38 = vmul.f32 %v3921_v48, %v3856_v11  ;;  %v4254_v60 = vadd.f32 %v7284_v0, %v7133_v15  ;;  %v3404_v62 = vadd.f32 %v7910_v58, %v6812_v12  ;;  %5092 = vmatpush3.bf16.msra.mxu1 %v5089_v41  ;;  %v7923_v48 = vld [vmem:[#allocation16_spill] sm:$0xff]  ;;  %v7929_v58 = vld [vmem:[#allocation19_spill] sm:$0xff] }
 0x370   : > { %v3968_v49 = vadd.f32 %v3952_v25, %v3692_v43  ;;  %v4229_v44 = vmul.f32 %v4197_v52, %v4132_v23  ;;  %v3954_v54 = vadd.f32 %v7067_v3, %v3678_v57  ;;  %v3940_v5 = vmul.f32 %v7061_v26, %v7911_v19  ;;  %v7925_v43 = vld [vmem:[#allocation34_spill] sm:$0xff] }
 0x371   : > { %v3969_v35 = vadd.f32 %v3953_v38, %v3693_v47  ;;  %v4270_v14 = vmax.f32 %v4254_v60, 0.0  ;;  %v3680_v17 = vadd.f32 %v6850_v51, %v3404_v62  ;;  %v4216_v11 = vmul.f32 %v7114_v36, %v7912_v22  ;;  %v7915_v47 = vld [vmem:[#allocation56_spill] sm:$0xff]  ;;  %v7928_v38 = vld [vmem:[#allocation91_spill] sm:$0xff] }
 0x372   : > { %v7298_v29 = vadd.f32 %v4228_v56, %v3968_v49  ;;  %v4230_v15 = vadd.f32 %v4214_v6, %v3954_v54  ;;  %v3129_v12 = vadd.f32 %v6789_v59, %v7913_v33  ;;  %v3665_v3 = vmul.f32 %v6843_v13, %v7914_v45  ;;  %v7918_v59 = vld [vmem:[#allocation29_spill] sm:$0xff]  ;;  %v7919_v13 = vld [vmem:[#allocation66_spill] sm:$0xff]  ;;  %v7924_v6 = vld [vmem:[#allocation35_spill] sm:$0xff] }
 0x373   : > { %v7304_v53 = vadd.f32 %v4229_v44, %v3969_v35  ;;  %v3956_v26 = vadd.f32 %v3940_v5, %v3680_v17  ;;  %v3941_v16 = vmul.f32 %v7071_v2, %v7915_v47  ;;  %v7916_v51 = vcombine.high %v7083_v30, %v7083_v30  ;;  %v7921_v2 = vld [vmem:[#allocation64_spill] sm:$0xff]  ;;  %v7926_v56 = vld [vmem:[#allocation33_spill] sm:$0xff]  ;;  %v7930_v62 = vld [vmem:[#allocation67_spill] sm:$0xff] }
 0x374   : > { %v4253_v41 = vadd.f32 %v7284_v0, %v4230_v15  ;;  %v3405_v27 = vadd.f32 %v7917_v32, %v3129_v12  ;;  %v3406_v28 = vadd.f32 %v7918_v59, %v6802_v42  ;;  %v7920_v21 = vrot.slane %v7037_v46, %v6215_v4  ;;  %v7933_v5 = vld [vmem:[#allocation10_spill] sm:$0xff]  ;;  %v7934_v35 = vld [vmem:[#allocation57_spill] sm:$0xff]  ;;  %v7935_v22 = vld [vmem:[#allocation72_spill] sm:$0xff] }
 0x375   : > { %v4149_v36 = vrot.slane %v7916_v51, %v6215_v4  ;;  %v4232_v20 = vadd.f32 %v4216_v11, %v3956_v26  ;;  %v7922_v30 = vrot.slane %v7078_v10, %v6215_v4  ;;  %v3131_v23 = vadd.f32 %v6792_v31, %v7923_v48  ;;  %v7932_v31 = vld [vmem:[#allocation75_spill] sm:$0xff]  ;;  %v7937_v45 = vld [vmem:[#allocation69_spill] sm:$0xff]  ;;  %v7940_v32 = vld [vmem:[#allocation30_spill] sm:$0xff] }
 0x376   : > { %v3942_v1 = vmul.f32 %v7920_v21, %v7919_v13  ;;  %v4269_v61 = vmax.f32 %v4253_v41, 0.0  ;;  %v3681_v18 = vadd.f32 %v3665_v3, %v3405_v27  ;;  %v3682_v42 = vadd.f32 %v7924_v6, %v3406_v28  ;;  %v7936_v11 = vld [vmem:[#allocation59_spill] sm:$0xff]  ;;  %v7938_v26 = vld [vmem:[#allocation5_spill] sm:$0xff]  ;;  %v7943_v28 = vld [vmem:[#allocation26_spill] sm:$0xff] }
 0x377   : > { %v4217_v25 = vmul.f32 %v4149_v36, %v7921_v2  ;;  %v4218_v34 = vmul.f32 %v7922_v30, %v7004_v24  ;;  %v7927_v46 = vrot.slane %v7926_v56, %v6215_v4  ;;  %v4255_v57 = vadd.f32 %v7284_v0, %v4232_v20  ;;  %v7939_v47 = vld [vmem:[#allocation71_spill] sm:$0xff]  ;;  %v7944_v13 = vld [vmem:[#allocation18_spill] sm:$0xff]  ;;  %v7946_v20 = vld [vmem:[#allocation32_spill] sm:$0xff] }
 0x378   : > { %v3407_v60 = vadd.f32 %v7928_v38, %v3131_v23  ;;  %v7931_v24 = vrot.slane %v7930_v62, %v6215_v4  ;;  %v4157_v44 = vrot.slane %v7932_v31, %v6215_v4  ;;  %4983 = vmatprep.mubr.f32.mxu1 %v4269_v61  ;;  %v3957_v54 = vadd.f32 %v3941_v16, %v3681_v18  ;;  %v7948_v30 = vld [vmem:[#allocation36_spill] sm:$0xff]  ;;  %v7949_v61 = vld [vmem:[#allocation95_spill] sm:$0xff] }
 0x379   : > { %v3667_v52 = vmul.f32 %v7927_v46, %v7925_v43  ;;  %v3958_v19 = vadd.f32 %v3942_v1, %v3682_v42  ;;  %v3132_v17 = vadd.f32 %v7934_v35, %v7933_v5  ;;  %v3668_v15 = vmul.f32 %v7936_v11, %v7935_v22  ;;  %4984 = vmatmul.mubr.f32.vlgmr.msra.gmra.mrb[12].mxu1 %v4270_v14  ;;  %v7945_v1 = vld [vmem:[#allocation68_spill] sm:$0xff]  ;;  %v7950_v42 = vld [vmem:[#allocation61_spill] sm:$0xff]  ;;  %v7956_v35 = vld [vmem:[#allocation43_spill] sm:$0xff] }
 0x37a   : > { %v3943_v49 = vmul.f32 %v7931_v24, %v7929_v58  ;;  %v4271_v33 = vmax.f32 %v4255_v57, 0.0  ;;  %v4219_v3 = vmul.f32 %v4157_v44, %v7937_v45  ;;  %v3944_v51 = vmul.f32 %v7939_v47, %v7938_v26  ;;  %v7953_v24 = vld [vmem:[#allocation83_spill] sm:$0xff]  ;;  %v7957_v22 = vld [vmem:[#allocation44_spill] sm:$0xff] }
 0x37b   : > { %v3683_v12 = vadd.f32 %v3667_v52, %v3407_v60  ;;  %v4233_v36 = vadd.f32 %v4217_v25, %v3957_v54  ;;  %v4234_v41 = vadd.f32 %v4218_v34, %v3958_v19  ;;  %v3408_v27 = vadd.f32 %v7940_v32, %v3132_v17  ;;  %v7947_v25 = vld [vmem:[#allocation76_spill] sm:$0xff] }
 0x37c   : > { %v7941_v16 = vcombine.high %v7078_v10, %v7078_v10  ;;  %4986 = vmatprep.mubr.f32.mxu1 %v4271_v33  ;;  %v2857_v21 = vadd.f32 %v7944_v13, %v7943_v28  ;;  %v3393_v2 = vmul.f32 %v7946_v20, %v7945_v1  ;;  %v3669_v34 = vmul.f32 %v7948_v30, %v7947_v25  ;;  %v7960_v45 = vld [vmem:[#allocation84_spill] sm:$0xff]  ;;  %v7967_v13 = vld [vmem:[#allocation54_spill] sm:$0xff]  ;;  %v7968_v1 = vld [vmem:[#allocation93_spill] sm:$0xff] }
 0x37d   : > { %v3959_v14 = vadd.f32 %v3943_v49, %v3683_v12  ;;  %v4256_v10 = vadd.f32 %v7284_v0, %v4233_v36  ;;  %v4257_v48 = vadd.f32 %v7284_v0, %v4234_v41  ;;  %v3684_v23 = vadd.f32 %v3668_v15, %v3408_v27  ;;  %v7954_v49 = vld [vmem:[#allocation39_spill] sm:$0xff]  ;;  %v7958_v15 = vld [vmem:[#allocation17_spill] sm:$0xff]  ;;  %v7962_v36 = vld [vmem:[#allocation6_spill] sm:$0xff] }
 0x37e   : > { %v4161_v59 = vrot.slane %v7941_v16, %v6215_v4  ;;  %v3133_v43 = vadd.f32 %v7950_v42, %v2857_v21  ;;  %v7951_v56 = vcombine.high %v7930_v62, %v7930_v62  ;;  %v7952_v52 = vcombine.high %v7932_v31, %v7932_v31  ;;  %v7955_v62 = vld [vmem:[#allocation88_spill] sm:$0xff]  ;;  %v7969_v20 = vld [vmem:[#allocation38_spill] sm:$0xff]  ;;  %v7970_v30 = vld [vmem:[#allocation11_spill] sm:$0xff] }
 0x37f   : > { %v4235_v6 = vadd.f32 %v4219_v3, %v3959_v14  ;;  %v4272_v38 = vmax.f32 %v4256_v10, 0.0  ;;  %v4273_v60 = vmax.f32 %v4257_v48, 0.0  ;;  %v3960_v58 = vadd.f32 %v3944_v51, %v3684_v23  ;;  %v7961_v3 = vld [vmem:[#allocation94_spill] sm:$0xff]  ;;  %v7964_v27 = vld [vmem:[#allocation8_spill] sm:$0xff]  ;;  %v7972_v10 = vld [vmem:[#allocation73_spill] sm:$0xff] }
 0x380   : > { %v4220_v18 = vmul.f32 %v4161_v59, %v7949_v61  ;;  %v3889_v46 = vrot.slane %v7951_v56, %v6215_v4  ;;  %v4165_v57 = vrot.slane %v7952_v52, %v6215_v4  ;;  %v3410_v44 = vadd.f32 %v7954_v49, %v7953_v24  ;;  %v7973_v23 = vld [vmem:[#allocation87_spill] sm:$0xff]  ;;  %v7974_v61 = vld [vmem:[#allocation92_spill] sm:$0xff]  ;;  %v7975_v56 = vld [vmem:[#allocation49_spill] sm:$0xff] }
 0x381   : > { %v4258_v54 = vadd.f32 %v7284_v0, %v4235_v6  ;;  %v3409_v19 = vadd.f32 %v3393_v2, %v3133_v43  ;;  %4987 = vmatmul.mubr.f32.gmra.mrb[14].mxu1 %v4272_v38  ;;  %v7959_v33 = vrot.slane %v7157_v50, %v6215_v4  ;;  %v3411_v26 = vadd.f32 %v7961_v3, %v7960_v45  ;;  %v7966_v50 = vld [vmem:[#allocation58_spill] sm:$0xff] }
 0x382   : > { %v3945_v5 = vmul.f32 %v3889_v46, %v7955_v62  ;;  %v4221_v17 = vmul.f32 %v4165_v57, %v7956_v35  ;;  %v4236_v31 = vadd.f32 %v4220_v18, %v3960_v58  ;;  %v3686_v11 = vadd.f32 %v7957_v22, %v3410_v44  ;;  %4989 = vmatprep.mubr.f32.mxu1 %v4273_v60  ;;  %v7976_v57 = vld [vmem:[#allocation40_spill] sm:$0xff]  ;;  %v7977_v60 = vld [vmem:[#allocation89_spill] sm:$0xff]  ;;  %v7979_v49 = vld [vmem:[#allocation14_spill] sm:$0xff] }
 0x383   : > { %v4222_v12 = vmul.f32 %v7959_v33, %v7958_v15  ;;  %v4274_v47 = vmax.f32 %v4258_v54, 0.0  ;;  %v3685_v51 = vadd.f32 %v3669_v34, %v3409_v19  ;;  %v7963_v41 = vrot.slane %v7125_v39, %v6215_v4  ;;  %v7971_v34 = vld [vmem:[#allocation77_spill] sm:$0xff]  ;;  %v7978_v58 = vld [vmem:[#allocation48_spill] sm:$0xff]  ;;  %v7980_v44 = vld [vmem:[#allocation62_spill] sm:$0xff] }
 0x384   : > { %v7965_v16 = vrot.slane %v7172_v40, %v6215_v4  ;;  %v4259_v14 = vadd.f32 %v7284_v0, %v4236_v31  ;;  %v3962_v28 = vadd.f32 %v7966_v50, %v3686_v11  ;;  %v3687_v21 = vadd.f32 %v7967_v13, %v3411_v26  ;;  %v7982_v22 = vld [vmem:[#allocation96_spill] sm:$0xff]  ;;  %v7983_v11 = vld [vmem:[#allocation37_spill] sm:$0xff]  ;;  %v7984_v33 = vld [vmem:[#allocation27_spill] sm:$0xff] }
 0x385   : > { %v3947_v32 = vmul.f32 %v7963_v41, %v7962_v36  ;;  %v3412_v2 = vadd.f32 %v7969_v20, %v7968_v1  ;;  %v3961_v25 = vadd.f32 %v3945_v5, %v3685_v51  ;;  %v3948_v39 = vmul.f32 %v7971_v34, %v7970_v30  ;;  %4990 = vmatmul.mubr.f32.gmra.mrb[16].mxu1 %v4274_v47  ;;  %v7985_v26 = vld [vmem:[#allocation46_spill] sm:$0xff]  ;;  %v4565_v51 = vld [vmem:[%s401_s15] sm:$0xff] }
 0x386   : > { %v4223_v59 = vmul.f32 %v7965_v16, %v7964_v27  ;;  %v4224_v48 = vmul.f32 %v7190_v55, %v7972_v10  ;;  %v3137_v18 = vadd.f32 %v7974_v61, %v7973_v23  ;;  %v4275_v6 = vmax.f32 %v4259_v14, 0.0  ;;  %v7986_v41 = vld [vmem:[#allocation65_spill] sm:$0xff] }
 0x387   : > { %v4238_v42 = vadd.f32 %v4222_v12, %v3962_v28  ;;  %v3963_v43 = vadd.f32 %v3947_v32, %v3687_v21  ;;  %v3688_v46 = vadd.f32 %v7975_v56, %v3412_v2  ;;  %v4237_v52 = vadd.f32 %v4221_v17, %v3961_v25  ;;  %v7987_v27 = vld [vmem:[#allocation45_spill] sm:$0xff] }
 0x388   : > { %v3413_v38 = vadd.f32 %v7976_v57, %v3137_v18  ;;  %v3673_v24 = vmul.f32 %v7978_v58, %v7977_v60  ;;  %v3949_v54 = vmul.f32 %v7980_v44, %v7979_v49  ;;  %4992 = vmatprep.mubr.f32.mxu1 %v4275_v6  ;;  %v7981_v5 = vcombine.high %v7172_v40, %v7172_v40  ;;  %v7455_v23 = vld [vmem:[%s7616_s10] ss:$0 sm:$0xff] }
 0x389   : > { %v4261_v55 = vadd.f32 %v7284_v0, %v4238_v42  ;;  %v4239_v19 = vadd.f32 %v4223_v59, %v3963_v43  ;;  %v3964_v62 = vadd.f32 %v3948_v39, %v3688_v46  ;;  %v4260_v17 = vadd.f32 %v7284_v0, %v4237_v52  ;;  %v4566_v59 = vld [vmem:[%s401_s15 + $0x8] sm:$0xff]  ;;  %s7556_s15 = scalar_lea.hbm %s7617_s11, %s4820_s29  ;;  %s5221_s29 = scalar_lea.vmem %s5220_s24, 512 }
 0x38a   : > { %v4181_v35 = vrot.slane %v7981_v5, %v6215_v4  ;;  %v3689_v31 = vadd.f32 %v3673_v24, %v3413_v38  ;;  %v3414_v15 = vadd.f32 %v7983_v11, %v7982_v22  ;;  %v3950_v12 = vmul.f32 %v3909_v9, %v7984_v33  ;;  %p5223_p2 = scmp.lt.s32.totalorder %s5221_s29, %s5215_s16 }
 0x38b   : > { %v4262_v45 = vadd.f32 %v7284_v0, %v4239_v19  ;;  %v4240_v3 = vadd.f32 %v4224_v48, %v3964_v62  ;;  %v4276_v36 = vmax.f32 %v4260_v17, 0.0  ;;  %v4226_v16 = vmul.f32 %v4185_v7, %v7987_v27 }
 0x38c   : > { %v4225_v47 = vmul.f32 %v4181_v35, %v7985_v26  ;;  %v3965_v40 = vadd.f32 %v3949_v54, %v3689_v31  ;;  %v3690_v32 = vadd.f32 %v7986_v41, %v3414_v15  ;;  %v4277_v14 = vmax.f32 %v4261_v55, 0.0  ;;  %p5224_p3 = por %p5223_p2, %p5222_p1 }
 0x38d   : > { %v4263_v8 = vadd.f32 %v7284_v0, %v4240_v3  ;;  %4993 = vmatmul.mubr.f32.gmra.mrb[18].mxu1 %v4276_v36  ;;  %v4567_v28 = vsub.f32 1.0, %v4565_v51  ;;  %v4568_v13 = vsub.f32 1.0, %v4566_v59  ;;  %v4278_v21 = vmax.f32 %v4262_v45, 0.0 }
 0x38e   : > { %v4241_v9 = vadd.f32 %v4225_v47, %v3965_v40  ;;  %v3966_v50 = vadd.f32 %v3950_v12, %v3690_v32  ;;  %4995 = vmatprep.mubr.f32.mxu1 %v4277_v14  ;;  %v4266_v7 = vadd.f32 %v7284_v0, %v7286_v63  ;;  %v4267_v30 = vadd.f32 %v7284_v0, %v7298_v29  ;;  %p5225_p4 = pnand %p5224_p3, %p5218_p0 }
 0x38f   : > { %4571 = vperm.xlu0 %5213, %v4567_v28   ;;  %v4279_v2 = vmax.f32 %v4263_v8, 0.0  ;;  %4575 = vperm.xlu1 %5214, %v4568_v13   ;;  %v4268_v39 = vadd.f32 %v7284_v0, %v7304_v53 }
 0x390   : > { %v4264_v1 = vadd.f32 %v7284_v0, %v4241_v9  ;;  %v4242_v20 = vadd.f32 %v4226_v16, %v3966_v50  ;;  %v4282_v34 = vmax.f32 %v4266_v7, 0.0  ;;  %v4283_v10 = vmax.f32 %v4267_v30, 0.0 }
 0x391   : > { %4996 = vmatmul.mubr.f32.gmra.mrb[20].mxu1 %v4278_v21  ;;  %v4284_v48 = vmax.f32 %v4268_v39, 0.0 }
 0x392   : > { %v4265_v4 = vadd.f32 %v7284_v0, %v4242_v20  ;;  %4998 = vmatprep.mubr.f32.mxu1 %v4279_v2  ;;  %v4280_v37 = vmax.f32 %v4264_v1, 0.0 }
 0x394   : > { %v4281_v25 = vmax.f32 %v4265_v4, 0.0 }
 0x395   : > { %4999 = vmatmul.mubr.f32.gmra.mrb[22].mxu1 %v4280_v37 }
 0x396   : > { %5001 = vmatprep.mubr.f32.mxu1 %v4281_v25 }
 0x399   : > { %5002 = vmatmul.mubr.f32.gmra.mrb[24].mxu1 %v4282_v34 }
 0x39a   : > { %5004 = vmatprep.mubr.f32.mxu1 %v4283_v10 }
 0x39d   : > { %5005 = vmatmul.mubr.f32.gmra.mrb[26].mxu1 %v4284_v48 }
 0x40e   : > { %v7461_v52 = vpop.permute.xlu0 %4571  ;;  %v7476_v16 = vpop.permute.xlu1 %4575 }
 0x40f   : > { %v4577_v54 = vrot.slane %v7461_v52, 1  ;;  %v4578_v35 = vrot.slane %v7461_v52, 2  ;;  %v4579_v15 = vrot.slane %v7461_v52, 3  ;;  %v4580_v3 = vrot.slane %v7461_v52, 4 }
 0x410   : > { %v4581_v36 = vrot.slane %v7461_v52, 5  ;;  %v4582_v8 = vrot.slane %v7461_v52, 6  ;;  %v4583_v13 = vrot.slane %v7461_v52, 7  ;;  %v4584_v37 = vrot.slane %v7476_v16, 1 }
 0x411   : > { %v4585_v39 = vrot.slane %v7476_v16, 2 }
 0x44c   : > { %v4985_v63 = vpop.f32.mrb[12].mxu1 }
 0x44d   : > { %v4380_v61 = vadd.f32 %v4985_v63, %v7455_v23  ;;  %v4374_v29 = vpop.f32.mrb[13].mxu1 }
 0x44e   : > { %v4375_v18 = vadd.f32 %v7455_v23, %v4374_v29 }
 0x44f   : > { %v4460_v6 = vsel %vm660_vm4, %v4380_v61, -inf }
 0x450   : > { %v4461_v42 = vrot.slane %v4460_v6, 4  ;;  %v4453_v0 = vsel %vm660_vm4, %v4375_v18, -inf }
 0x451   : > { %v4454_v53 = vrot.slane %v4453_v0, 4 }
 0x452   : > { %v4462_v43 = vmax.f32 %v4460_v6, %v4461_v42  ;;  %v4586_v42 = vrot.slane %v7476_v16, 3 }
 0x453   : > { %v4455_v56 = vmax.f32 %v4453_v0, %v4454_v53 }
 0x454   : > { %v4988_v46 = vpop.f32.mrb[14].mxu1  ;;  %v4463_v57 = vrot.slane %v4462_v43, 2 }
 0x455   : > { %v4390_v38 = vadd.f32 %v4988_v46, %v7455_v23  ;;  %v4384_v60 = vpop.f32.mrb[15].mxu1  ;;  %v4456_v58 = vrot.slane %v4455_v56, 2 }
 0x456   : > { %v4385_v24 = vadd.f32 %v7455_v23, %v4384_v60  ;;  %v4464_v49 = vmax.f32 %v4462_v43, %v4463_v57 }
 0x457   : > { %v4474_v44 = vsel %vm660_vm4, %v4390_v38, -inf  ;;  %v4457_v55 = vmax.f32 %v4455_v56, %v4456_v58 }
 0x458   : > { %v4475_v19 = vrot.slane %v4474_v44, 4  ;;  %v4467_v62 = vsel %vm660_vm4, %v4385_v24, -inf  ;;  %v4991_v5 = vpop.f32.mrb[16].mxu1  ;;  %v4465_v17 = vrot.slane %v4464_v49, 1 }
 0x459   : > { %v4468_v31 = vrot.slane %v4467_v62, 4  ;;  %v4400_v22 = vadd.f32 %v4991_v5, %v7455_v23  ;;  %v4394_v11 = vpop.f32.mrb[17].mxu1  ;;  %v4458_v33 = vrot.slane %v4457_v55, 1 }
 0x45a   : > { %v4476_v12 = vmax.f32 %v4474_v44, %v4475_v19  ;;  %v4395_v45 = vadd.f32 %v7455_v23, %v4394_v11  ;;  %v4466_v26 = vmax.f32 %v4464_v49, %v4465_v17  ;;  %v4587_v17 = vrot.slane %v7476_v16, 4 }
 0x45b   : > { %v4469_v47 = vmax.f32 %v4467_v62, %v4468_v31  ;;  %v4488_v51 = vsel %vm660_vm4, %v4400_v22, -inf  ;;  %v4459_v40 = vmax.f32 %v4457_v55, %v4458_v33 }
 0x45c   : > { %v4477_v41 = vrot.slane %v4476_v12, 2  ;;  %v4489_v32 = vrot.slane %v4488_v51, 4  ;;  %v4481_v27 = vsel %vm660_vm4, %v4395_v45, -inf  ;;  %v4608_v9 = vmul.f32 %v4577_v54, %v4466_v26 }
 0x45d   : > { %v4470_v59 = vrot.slane %v4469_v47, 2  ;;  %v4482_v14 = vrot.slane %v4481_v27, 4  ;;  %v4607_v21 = vmul.f32 %v7461_v52, %v4459_v40 }
 0x45e   : > { %v4478_v50 = vmax.f32 %v4476_v12, %v4477_v41  ;;  %v4490_v28 = vmax.f32 %v4488_v51, %v4489_v32  ;;  %v4639_v4 = vrot.slane %v4608_v9, 7  ;;  %v4588_v32 = vrot.slane %v7476_v16, 5 }
 0x45f   : > { %v4471_v1 = vmax.f32 %v4469_v47, %v4470_v59  ;;  %v4483_v20 = vmax.f32 %v4481_v27, %v4482_v14 }
 0x460   : > { %v4994_v2 = vpop.f32.mrb[18].mxu1  ;;  %v4479_v7 = vrot.slane %v4478_v50, 1  ;;  %v4491_v25 = vrot.slane %v4490_v28, 2  ;;  %v4640_v61 = vsel %vm1092_vm5, %v4639_v4, %v4607_v21 }
 0x461   : > { %v4410_v30 = vadd.f32 %v4994_v2, %v7455_v23  ;;  %v4404_v34 = vpop.f32.mrb[19].mxu1  ;;  %v4472_v10 = vrot.slane %v4471_v1, 1  ;;  %v4484_v48 = vrot.slane %v4483_v20, 2 }
 0x462   : > { %v4405_v63 = vadd.f32 %v7455_v23, %v4404_v34  ;;  %v4480_v29 = vmax.f32 %v4478_v50, %v4479_v7  ;;  %v4492_v18 = vmax.f32 %v4490_v28, %v4491_v25 }
 0x463   : > { %v4502_v6 = vsel %vm660_vm4, %v4410_v30, -inf  ;;  %v4473_v0 = vmax.f32 %v4471_v1, %v4472_v10  ;;  %v4485_v53 = vmax.f32 %v4483_v20, %v4484_v48 }
 0x464   : > { %v4503_v43 = vrot.slane %v4502_v6, 4  ;;  %v4495_v56 = vsel %vm660_vm4, %v4405_v63, -inf  ;;  %v4997_v46 = vpop.f32.mrb[20].mxu1  ;;  %v4493_v57 = vrot.slane %v4492_v18, 1  ;;  %v4610_v60 = vmul.f32 %v4579_v15, %v4480_v29 }
 0x465   : > { %v4496_v38 = vrot.slane %v4495_v56, 4  ;;  %v4420_v58 = vadd.f32 %v4997_v46, %v7455_v23  ;;  %v4414_v24 = vpop.f32.mrb[21].mxu1  ;;  %v4486_v49 = vrot.slane %v4485_v53, 1  ;;  %v4609_v54 = vmul.f32 %v4578_v35, %v4473_v0 }
 0x466   : > { %v4504_v44 = vmax.f32 %v4502_v6, %v4503_v43  ;;  %v4415_v55 = vadd.f32 %v7455_v23, %v4414_v24  ;;  %v4494_v19 = vmax.f32 %v4492_v18, %v4493_v57  ;;  %v4643_v45 = vrot.slane %v4610_v60, 5 }
 0x467   : > { %v4497_v62 = vmax.f32 %v4495_v56, %v4496_v38  ;;  %v4516_v5 = vsel %vm660_vm4, %v4420_v58, -inf  ;;  %v4487_v31 = vmax.f32 %v4485_v53, %v4486_v49  ;;  %v4641_v11 = vrot.slane %v4609_v54, 6 }
 0x468   : > { %v4505_v22 = vrot.slane %v4504_v44, 2  ;;  %v4517_v33 = vrot.slane %v4516_v5, 4  ;;  %v5000_v12 = vpop.f32.mrb[22].mxu1  ;;  %v4509_v26 = vsel %vm660_vm4, %v4415_v55, -inf  ;;  %v7499_v59 = vmul.f32 %v4581_v36, %v4494_v19 }
 0x469   : > { %v4498_v15 = vrot.slane %v4497_v62, 2  ;;  %v4430_v47 = vadd.f32 %v5000_v12, %v7455_v23  ;;  %v4424_v35 = vpop.f32.mrb[23].mxu1  ;;  %v4642_v40 = vsel %vm1094_vm6, %v4641_v11, %v4640_v61  ;;  %v4510_v9 = vrot.slane %v4509_v26, 4 }
 0x46a   : > { %v4506_v51 = vmax.f32 %v4504_v44, %v4505_v22  ;;  %v4518_v41 = vmax.f32 %v4516_v5, %v4517_v33  ;;  %v7502_v14 = vsel %vm1096_vm7, %v4643_v45, %v4642_v40  ;;  %v7506_v28 = vmul.f32 %v4580_v3, %v4487_v31 }
 0x46b   : > { %v4499_v27 = vmax.f32 %v4497_v62, %v4498_v15  ;;  %v4530_v1 = vsel %vm660_vm4, %v4430_v47, -inf  ;;  %v4511_v4 = vmax.f32 %v4509_v26, %v4510_v9  ;;  %v4425_v25 = vadd.f32 %v7455_v23, %v4424_v35 }
 0x46c   : > { %v4507_v50 = vrot.slane %v4506_v51, 1  ;;  %v4519_v21 = vrot.slane %v4518_v41, 2  ;;  %v5003_v20 = vpop.f32.mrb[24].mxu1  ;;  %v4531_v7 = vrot.slane %v4530_v1, 4  ;;  %v4647_v18 = vrot.slane %v7499_v59, 3 }
 0x46d   : > { %v4500_v2 = vrot.slane %v4499_v27, 1  ;;  %v4434_v36 = vpop.f32.mrb[25].mxu1  ;;  %v4440_v10 = vadd.f32 %v5003_v20, %v7455_v23  ;;  %v4512_v61 = vrot.slane %v4511_v4, 2  ;;  %v4523_v29 = vsel %vm660_vm4, %v4425_v25, -inf }
 0x46e   : > { %v4508_v30 = vmax.f32 %v4506_v51, %v4507_v50  ;;  %v4520_v34 = vmax.f32 %v4518_v41, %v4519_v21  ;;  %v4435_v48 = vadd.f32 %v7455_v23, %v4434_v36  ;;  %v4532_v3 = vmax.f32 %v4530_v1, %v4531_v7 }
 0x46f   : > { %v4501_v63 = vmax.f32 %v4499_v27, %v4500_v2  ;;  %v4524_v0 = vrot.slane %v4523_v29, 4  ;;  %v4544_v53 = vsel %vm660_vm4, %v4440_v10, -inf  ;;  %v4645_v56 = vrot.slane %v7506_v28, 4 }
 0x470   : > { %v4521_v6 = vrot.slane %v4520_v34, 1  ;;  %v5006_v43 = vpop.f32.mrb[26].mxu1  ;;  %v4513_v46 = vmax.f32 %v4511_v4, %v4512_v61  ;;  %v4533_v57 = vrot.slane %v4532_v3, 2  ;;  %v4545_v38 = vrot.slane %v4544_v53, 4 }
 0x471   : > { %v4444_v60 = vpop.f32.mrb[27].mxu1  ;;  %v4614_v58 = vmul.f32 %v4583_v13, %v4508_v30  ;;  %v4525_v49 = vmax.f32 %v4523_v29, %v4524_v0  ;;  %v4537_v44 = vsel %vm660_vm4, %v4435_v48, -inf  ;;  %v4613_v54 = vmul.f32 %v4582_v8, %v4501_v63 }
 0x472   : > { %v4522_v24 = vmax.f32 %v4520_v34, %v4521_v6  ;;  %v4514_v55 = vrot.slane %v4513_v46, 1  ;;  %v4534_v19 = vmax.f32 %v4532_v3, %v4533_v57  ;;  %v4546_v62 = vmax.f32 %v4544_v53, %v4545_v38 }
 0x473   : > { %v4526_v5 = vrot.slane %v4525_v49, 2  ;;  %v4538_v31 = vrot.slane %v4537_v44, 4  ;;  %v4450_v22 = vadd.f32 %v5006_v43, %v7455_v23  ;;  %v4445_v11 = vadd.f32 %v7455_v23, %v4444_v60 }
 0x474   : > { %v4515_v33 = vmax.f32 %v4513_v46, %v4514_v55  ;;  %v4535_v12 = vrot.slane %v4534_v19, 1  ;;  %v4547_v13 = vrot.slane %v4546_v62, 2  ;;  %v4616_v15 = vmul.f32 %v4584_v37, %v4522_v24 }
 0x475   : > { %v4527_v45 = vmax.f32 %v4525_v49, %v4526_v5  ;;  %v4539_v26 = vmax.f32 %v4537_v44, %v4538_v31  ;;  %v4558_v52 = vsel %vm660_vm4, %v4450_v22, -inf  ;;  %v4551_v8 = vsel %vm660_vm4, %v4445_v11, -inf }
 0x476   : > { %v4536_v47 = vmax.f32 %v4534_v19, %v4535_v12  ;;  %v4548_v35 = vmax.f32 %v4546_v62, %v4547_v13  ;;  %v4559_v51 = vrot.slane %v4558_v52, 4  ;;  %v4552_v40 = vrot.slane %v4551_v8, 4 }
 0x477   : > { %v4528_v41 = vrot.slane %v4527_v45, 1  ;;  %v4540_v23 = vrot.slane %v4539_v26, 2  ;;  %v4615_v27 = vmul.f32 %v7476_v16, %v4515_v33  ;;  %v4653_v59 = vrot.slane %v4616_v15, 7 }
 0x478   : > { %v4649_v9 = vrot.slane %v4613_v54, 2  ;;  %v4549_v50 = vrot.slane %v4548_v35, 1  ;;  %v4560_v37 = vmax.f32 %v4558_v52, %v4559_v51  ;;  %v4553_v28 = vmax.f32 %v4551_v8, %v4552_v40 }
 0x479   : > { %v4529_v21 = vmax.f32 %v4527_v45, %v4528_v41  ;;  %v4541_v1 = vmax.f32 %v4539_v26, %v4540_v23  ;;  %v4654_v20 = vsel %vm1092_vm5, %v4653_v59, %v4615_v27  ;;  %v4646_v2 = vsel %vm1098_vm8, %v4645_v56, %v7502_v14 }
 0x47a   : > { %v4550_v4 = vmax.f32 %v4548_v35, %v4549_v50  ;;  %v4561_v7 = vrot.slane %v4560_v37, 2  ;;  %v4554_v25 = vrot.slane %v4553_v28, 2  ;;  %v4618_v36 = vmul.f32 %v4586_v42, %v4536_v47 }
 0x47b   : > { %v4651_v30 = vrot.slane %v4614_v58, 1  ;;  %v4542_v34 = vrot.slane %v4541_v1, 1  ;;  %v4617_v10 = vmul.f32 %v4585_v39, %v4529_v21  ;;  %v4648_v48 = vsel %vm1100_vm9, %v4647_v18, %v4646_v2 }
 0x47c   : > { %v4562_v63 = vmax.f32 %v4560_v37, %v4561_v7  ;;  %v4555_v61 = vmax.f32 %v4553_v28, %v4554_v25  ;;  %v4650_v3 = vsel %vm1102_vm10, %v4649_v9, %v4648_v48  ;;  %v4620_v42 = vmul.f32 %v4588_v32, %v4550_v4 }
 0x47d   : > { %v4543_v29 = vmax.f32 %v4541_v1, %v4542_v34  ;;  %v4655_v6 = vrot.slane %v4617_v10, 6  ;;  %v4652_v14 = vsel %vm1104_vm11, %v4651_v30, %v4650_v3  ;;  %v4657_v43 = vrot.slane %v4618_v36, 5 }
 0x47e   : > { %v4563_v0 = vrot.slane %v4562_v63, 1  ;;  %v4556_v53 = vrot.slane %v4555_v61, 1  ;;  %4669 = vst.msk [vmem:[%s396_s25] sm:$0xff] %vm660_vm4, %v4652_v14  ;;  %v4589_v39 = vrot.slane %v7476_v16, 6  ;;  %v4590_v38 = vrot.slane %v7476_v16, 7 }
 0x47f   : > { %v4619_v18 = vmul.f32 %v4587_v17, %v4543_v29  ;;  %v4656_v56 = vsel %vm1094_vm6, %v4655_v6, %v4654_v20  ;;  %v4661_v49 = vrot.slane %v4620_v42, 3 }
 0x480   : > { %v4564_v46 = vmax.f32 %v4562_v63, %v4563_v0  ;;  %v4557_v57 = vmax.f32 %v4555_v61, %v4556_v53  ;;  %v4658_v60 = vsel %vm1096_vm7, %v4657_v43, %v4656_v56 }
 0x481   : > { %v4659_v58 = vrot.slane %v4619_v18, 4 }
 0x482   : > { %v4621_v32 = vmul.f32 %v4589_v39, %v4557_v57  ;;  %v4622_v24 = vmul.f32 %v4590_v38, %v4564_v46 }
 0x483   : > { %v4660_v44 = vsel %vm1098_vm8, %v4659_v58, %v4658_v60 }
 0x484   : > { %v4663_v54 = vrot.slane %v4621_v32, 2  ;;  %v4662_v17 = vsel %vm1100_vm9, %v4661_v49, %v4660_v44  ;;  %v4665_v55 = vrot.slane %v4622_v24, 1 }
 0x486   : > { %v4664_v16 = vsel %vm1102_vm10, %v4663_v54, %v4662_v17 }
 0x487   : > { %v4666_v19 = vsel %vm1104_vm11, %v4665_v55, %v4664_v16 }
 0x488   : > { %4670 = vst.msk [vmem:[%s396_s25 + $0x8] sm:$0xff] %vm660_vm4, %v4666_v19 }
 0x489   : > { %5228 = shalt.err (!%p5225_p4)
}
 0x48a   : > { %s5229_s14 = scalar_lea.hbm %s7556_s15, 256  ;;  %s5233_s13 = scalar_lea.hbm %s7617_s11, 512 }
 0x48b   : > { %p5230_p7 = scmp.ne.s32.totalorder %s7556_s15, %s5229_s14  ;;  %p5234_p10 = scmp.lt.u32.totalorder %s7556_s15, %s7617_s11 }
 0x48c   : > { %p5235_p11 = scmp.lt.u32.totalorder %s5233_s13, %s5229_s14  ;;  %p5237_p13 = scmp.lt.u32.totalorder %s5229_s14, %s7556_s15 }
 0x48d   : > { %p5231_p8 = pnand %p5230_p7, %p5393_p5 }
 0x48e   : > { %p5236_p12 = por %p5235_p11, %p5234_p10 }
 0x48f   : > { %p5232_p9 = pneg %p5231_p8 }
 0x490   : > { %p5238_p0 = por %p5237_p13, %p5236_p12 }
 0x492   : > { %p5239_p1 = pnand %p5238_p0, %p5232_p9 }
 0x494   : > { %5242 = shalt.err (!%p5239_p1)
}
 0x495   : > { %s5293_s16 = smov 128   ;;  %s5294_s29 = smov 8  }
 0x496   : > { %5097 = dma.vmem_to_hbm [thread:$0]  (%p5393_p5), %s7558_s30, 256, %s7556_s15, %s7565_s21, %s5293_s16, %s5293_s16, %s5294_s29  }
 0x497 PF: > { %p5103_p2 = scmp.ge.s32.totalorder %s5277_s20, 2  ;;  %s4700_s25 = sand.u32 1, %s5265_s17  }
 0x498   : > { %s4701_s14 = scalar_lea.sflag [#allocation3], %s4700_s25 }
 0x499   : > { %p5100_p3 = pnand %p5103_p2, %p5397_p6 }
 0x49b   : > { %5260 = dma.done.wait (!%p5100_p3), %s4701_s14, 256  }
 0x49c   : > { %5262 = vsyncadd (!%p5100_p3), %s4701_s14, 4294967040  ;;  %p21_p4 = scmp.ge.s32.totalorder %s5380_s23, 4   ;;  %s7988_s17 = smov %s5269_s18 }
 0x49d   : > { %s7989_s18 = smov %s5273_s19  ;;  %s7990_s19 = smov %s5391_s26 }
 0x49e   : > { %s7991_s20 = smov %s5380_s23  ;;  %23 = sbr.rel (!%p21_p4) target bundleno = 3 (0x3), region = 102 }
 0x4a5   :  { %4706 = vsyncpa [#allocation3], 1 }
 0x4a6   :  { %4708 = vsyncpa [#allocation3 + $0x1], 1 }

</bundles_post_ra>
